<compile_context>
chip_gen: v7x
topology: tpu7x:2x2x1
jax: 0.10.0
libtpu: 0.0.40
codegen_flags: <defaults>
</compile_context>

<pallas_src>
import math
import jax
import jax.numpy as jnp
from jax.experimental import pallas as pl
from jax.experimental.pallas import tpu as pltpu

# ---------------- config (small, deterministic, consistent with module) -----
FFT_CHANNELS = 32          # config.fft_channels  -> ninp
SEQ_LEN      = 8           # config.speak_stft_seq_len
NHEAD        = 4
NHID         = 32
NLAYERS      = 2
KERNEL_SIZE  = 3
D_MODEL      = FFT_CHANNELS // NHEAD * NHEAD   # _dm = 32
D_HEAD       = D_MODEL // NHEAD                # 8
_LN_EPS      = 1e-5

_VMEM = pl.BlockSpec(memory_space=pltpu.MemorySpace.VMEM)

# Canonical parameter ordering for the fused kernel.
_GLOBAL_PARAMS = ("init_w", "init_b", "fc_w", "fc_b")
_LAYER_PARAMS = (
    "ff1_ln_g", "ff1_ln_b", "ff1_w1", "ff1_b1", "ff1_w2", "ff1_b2",
    "mha_ln_g", "mha_ln_b", "wqkv", "bqkv", "wo", "bo",
    "conv_ln_g", "conv_ln_b", "pw1_w", "pw1_b", "dw_w", "dw_b",
    "bn_scale", "bn_shift", "pw2_w", "pw2_b",
    "ff2_ln_g", "ff2_ln_b", "ff2_w1", "ff2_b1", "ff2_w2", "ff2_b2",
    "out_ln_g", "out_ln_b",
)


# ---------------- in-kernel helpers (pure jnp on loaded values) -------------
def _layernorm(x, g, b):
    mu = jnp.mean(x, axis=-1, keepdims=True)
    var = jnp.mean((x - mu) ** 2, axis=-1, keepdims=True)
    return (x - mu) * jax.lax.rsqrt(var + _LN_EPS) * g + b


def _swish(x):
    return x * jax.nn.sigmoid(x)


def _dot(a, b):
    return jnp.dot(a, b, preferred_element_type=jnp.float32)


# ---------------- the single fused kernel -----------------------------------
def _make_fused_kernel(B):
    S, D, H, dh, K = SEQ_LEN, D_MODEL, NHEAD, D_HEAD, KERNEL_SIZE
    pad_l = (K - 1) // 2

    def kernel(x_ref, *refs):
        o_ref = refs[-1]
        g = dict(zip(_GLOBAL_PARAMS, refs[: len(_GLOBAL_PARAMS)]))
        lp = dict(zip(_LAYER_PARAMS, refs[len(_GLOBAL_PARAMS):-1]))

        # ---- init dense + ReLU  (x already (B*S, C) row-major) -------------
        x = x_ref[...].astype(jnp.float32)                           # (N, C)
        h = jnp.maximum(_dot(x, g["init_w"][...]) + g["init_b"][...], 0.0)

        for l in range(NLAYERS):
            p = {name: ref[l] for name, ref in lp.items()}           # VMEM loads

            # ---- FF1 half-step ---------------------------------------------
            t = _layernorm(h, p["ff1_ln_g"], p["ff1_ln_b"])
            t = _swish(_dot(t, p["ff1_w1"]) + p["ff1_b1"])
            t = _dot(t, p["ff1_w2"]) + p["ff1_b2"]
            h = h + 0.5 * t

            # ---- MHSA (fused QKV; 1/sqrt(dh) folded into Wq/bq) --------------
            t = _layernorm(h, p["mha_ln_g"], p["mha_ln_b"])
            qkv = _dot(t, p["wqkv"]) + p["bqkv"]                     # (N, 3D)
            batch_attn = []
            for b in range(B):                                       # static unroll
                r0 = b * S
                heads = []
                for hh in range(H):                                  # static unroll
                    c0 = hh * dh
                    q = qkv[r0:r0 + S, c0:c0 + dh]                   # pre-scaled
                    k = qkv[r0:r0 + S, D + c0:D + c0 + dh]
                    v = qkv[r0:r0 + S, 2 * D + c0:2 * D + c0 + dh]
                    s = _dot(q, k.T)                                 # (S, S)
                    s = s - jnp.max(s, axis=-1, keepdims=True)
                    pr = jnp.exp(s)
                    pr = pr / jnp.sum(pr, axis=-1, keepdims=True)
                    heads.append(_dot(pr, v))                        # (S, dh)
                batch_attn.append(jnp.concatenate(heads, axis=-1))   # (S, D)
            attn = jnp.concatenate(batch_attn, axis=0)               # (N, D)
            h = h + _dot(attn, p["wo"]) + p["bo"]

            # ---- Convolution module ------------------------------------------
            t = _layernorm(h, p["conv_ln_g"], p["conv_ln_b"])
            y = _dot(t, p["pw1_w"]) + p["pw1_b"]                     # (N, 2D)
            t = y[:, :D] * jax.nn.sigmoid(y[:, D:])                  # GLU
            w_dw = p["dw_w"]                                         # (K, D)
            conv_rows = []
            for b in range(B):                                       # static unroll
                xb = t[b * S:(b + 1) * S, :]                         # (S, D)
                acc = jnp.zeros((S, D), jnp.float32)
                for kk in range(K):                                  # static, small K
                    off = kk - pad_l
                    if off == 0:
                        sh = xb
                    elif off > 0:
                        sh = jnp.concatenate(
                            [xb[off:, :], jnp.zeros((off, D), jnp.float32)], axis=0)
                    else:
                        sh = jnp.concatenate(
                            [jnp.zeros((-off, D), jnp.float32), xb[:S + off, :]],
                            axis=0)
                    acc = acc + sh * w_dw[kk]
                conv_rows.append(acc)
            t = jnp.concatenate(conv_rows, axis=0) + p["dw_b"]       # conv bias
            t = t * p["bn_scale"] + p["bn_shift"]                    # BatchNorm(eval)
            t = _swish(t)
            h = h + _dot(t, p["pw2_w"]) + p["pw2_b"]

            # ---- FF2 half-step ------------------------------------------------
            t = _layernorm(h, p["ff2_ln_g"], p["ff2_ln_b"])
            t = _swish(_dot(t, p["ff2_w1"]) + p["ff2_b1"])
            t = _dot(t, p["ff2_w2"]) + p["ff2_b2"]
            h = h + 0.5 * t

            # ---- final per-block LayerNorm ------------------------------------
            h = _layernorm(h, p["out_ln_g"], p["out_ln_b"])

        # ---- final fc: x.view(B, -1) @ W^T + b, done as mul + reduce -----------
        fc_w = g["fc_w"][...]                                        # (S, D)
        fc_b = g["fc_b"][...]                                        # (1, 1)
        outs = []
        for b in range(B):
            hb = h[b * S:(b + 1) * S, :]
            r = jnp.sum(hb * fc_w, axis=-1, keepdims=True)           # (S, 1)
            outs.append(jnp.sum(r, axis=0, keepdims=True))           # (1, 1)
        o_ref[...] = (jnp.concatenate(outs, axis=0) + fc_b).astype(o_ref.dtype)

    return kernel


# ---------------- parameter init (deterministic, in-script) -----------------
class _KeyGen:
    def __init__(self, key):
        self._key = key

    def __call__(self):
        self._key, sub = jax.random.split(self._key)
        return sub


def _linear_params(kg, din, dout):
    w = jax.random.normal(kg(), (din, dout), jnp.float32) * (1.0 / math.sqrt(din))
    b = jnp.zeros((1, dout), jnp.float32)
    return w, b


def _ln_params(d):
    return jnp.ones((1, d), jnp.float32), jnp.zeros((1, d), jnp.float32)


def _conformer_layer_params(kg, d, nhid, ksize):
    p = {}
    # FF1
    p["ff1_ln_g"], p["ff1_ln_b"] = _ln_params(d)
    p["ff1_w1"], p["ff1_b1"] = _linear_params(kg, d, nhid)
    p["ff1_w2"], p["ff1_b2"] = _linear_params(kg, nhid, d)
    # MHSA
    p["mha_ln_g"], p["mha_ln_b"] = _ln_params(d)
    p["wq"], p["bq"] = _linear_params(kg, d, d)
    p["wk"], p["bk"] = _linear_params(kg, d, d)
    p["wv"], p["bv"] = _linear_params(kg, d, d)
    p["wo"], p["bo"] = _linear_params(kg, d, d)
    # Conv module
    p["conv_ln_g"], p["conv_ln_b"] = _ln_params(d)
    p["pw1_w"], p["pw1_b"] = _linear_params(kg, d, 2 * d)
    p["dw_w"] = (jax.random.normal(kg(), (ksize, d), jnp.float32)
                 * (1.0 / math.sqrt(ksize)))
    p["dw_b"] = jnp.zeros((1, d), jnp.float32)
    # BatchNorm eval: gamma=1, beta=0, running_mean=0, running_var=1
    eps = 1e-5
    p["bn_scale"] = jnp.full((1, d), 1.0 / math.sqrt(1.0 + eps), jnp.float32)
    p["bn_shift"] = jnp.zeros((1, d), jnp.float32)
    p["pw2_w"], p["pw2_b"] = _linear_params(kg, d, d)
    # FF2
    p["ff2_ln_g"], p["ff2_ln_b"] = _ln_params(d)
    p["ff2_w1"], p["ff2_b1"] = _linear_params(kg, d, nhid)
    p["ff2_w2"], p["ff2_b2"] = _linear_params(kg, nhid, d)
    # final LN
    p["out_ln_g"], p["out_ln_b"] = _ln_params(d)
    return p


def init_params(key):
    kg = _KeyGen(key)
    params = {}
    params["init_w"], params["init_b"] = _linear_params(kg, FFT_CHANNELS, D_MODEL)
    params["layers"] = [
        _conformer_layer_params(kg, D_MODEL, NHID, KERNEL_SIZE)
        for _ in range(NLAYERS)
    ]
    params["fc_w"], params["fc_b"] = _linear_params(kg, SEQ_LEN * D_MODEL, 1)
    return params


def prepare_params(params):
    """Fuse QKV, fold 1/sqrt(dh) into Wq/bq, reshape fc weight, stack layers."""
    scale = 1.0 / math.sqrt(D_HEAD)
    flat = [
        params["init_w"],
        params["init_b"],
        params["fc_w"].reshape(SEQ_LEN, D_MODEL),   # row-major == x.view(B,-1)
        params["fc_b"].reshape(1, 1),
    ]
    for name in _LAYER_PARAMS:
        per_layer = []
        for lp in params["layers"]:
            if name == "wqkv":
                a = jnp.concatenate([lp["wq"] * scale, lp["wk"], lp["wv"]], axis=1)
            elif name == "bqkv":
                a = jnp.concatenate([lp["bq"] * scale, lp["bk"], lp["bv"]], axis=1)
            else:
                a = lp[name]
            per_layer.append(a)
        flat.append(jnp.stack(per_layer, axis=0))
    return tuple(flat)


# ---------------- forward ----------------------------------------------------
def discriminator_forward(x, flat_params):
    """x: (B, fft_channels, seq_len) float32 (PyTorch NCL).  Returns (B, 1)."""
    B, C, S = x.shape
    assert C == FFT_CHANNELS and S == SEQ_LEN

    # x.transpose(2, 1) -> (B, S, C); flatten rows for the fused kernel.
    x2 = jnp.transpose(x, (0, 2, 1)).reshape(B * S, C)

    n_inputs = 1 + len(flat_params)
    return pl.pallas_call(
        _make_fused_kernel(B),
        out_shape=jax.ShapeDtypeStruct((B, 1), jnp.float32),
        in_specs=[_VMEM] * n_inputs,
        out_specs=_VMEM,
    )(x2, *flat_params)


# ---------------- main --------------------------------------------------------
if __name__ == "__main__":
    key = jax.random.PRNGKey(0)
    k_x, k_p = jax.random.split(key)

    B = 2
    x = jax.random.normal(k_x, (B, FFT_CHANNELS, SEQ_LEN), dtype=jnp.float32)
    params = init_params(k_p)
    flat_params = prepare_params(params)

    out = discriminator_forward(x, flat_params)
    out = jax.block_until_ready(out)

    assert out.shape == (B, 1), out.shape
    assert bool(jnp.all(jnp.isfinite(out)))
    print("KERNEL_OK")
</pallas_src>

<mosaic_0001>
module attributes {stable_mosaic.version = 11 : i64} {
  func.func @kernel(%arg0: memref<16x32xf32, #tpu.memory_space<vmem>>, %arg1: memref<32x32xf32, #tpu.memory_space<vmem>>, %arg2: memref<1x32xf32, #tpu.memory_space<vmem>>, %arg3: memref<8x32xf32, #tpu.memory_space<vmem>>, %arg4: memref<1x1xf32, #tpu.memory_space<vmem>>, %arg5: memref<2x1x32xf32, #tpu.memory_space<vmem>>, %arg6: memref<2x1x32xf32, #tpu.memory_space<vmem>>, %arg7: memref<2x32x32xf32, #tpu.memory_space<vmem>>, %arg8: memref<2x1x32xf32, #tpu.memory_space<vmem>>, %arg9: memref<2x32x32xf32, #tpu.memory_space<vmem>>, %arg10: memref<2x1x32xf32, #tpu.memory_space<vmem>>, %arg11: memref<2x1x32xf32, #tpu.memory_space<vmem>>, %arg12: memref<2x1x32xf32, #tpu.memory_space<vmem>>, %arg13: memref<2x32x96xf32, #tpu.memory_space<vmem>>, %arg14: memref<2x1x96xf32, #tpu.memory_space<vmem>>, %arg15: memref<2x32x32xf32, #tpu.memory_space<vmem>>, %arg16: memref<2x1x32xf32, #tpu.memory_space<vmem>>, %arg17: memref<2x1x32xf32, #tpu.memory_space<vmem>>, %arg18: memref<2x1x32xf32, #tpu.memory_space<vmem>>, %arg19: memref<2x32x64xf32, #tpu.memory_space<vmem>>, %arg20: memref<2x1x64xf32, #tpu.memory_space<vmem>>, %arg21: memref<2x3x32xf32, #tpu.memory_space<vmem>>, %arg22: memref<2x1x32xf32, #tpu.memory_space<vmem>>, %arg23: memref<2x1x32xf32, #tpu.memory_space<vmem>>, %arg24: memref<2x1x32xf32, #tpu.memory_space<vmem>>, %arg25: memref<2x32x32xf32, #tpu.memory_space<vmem>>, %arg26: memref<2x1x32xf32, #tpu.memory_space<vmem>>, %arg27: memref<2x1x32xf32, #tpu.memory_space<vmem>>, %arg28: memref<2x1x32xf32, #tpu.memory_space<vmem>>, %arg29: memref<2x32x32xf32, #tpu.memory_space<vmem>>, %arg30: memref<2x1x32xf32, #tpu.memory_space<vmem>>, %arg31: memref<2x32x32xf32, #tpu.memory_space<vmem>>, %arg32: memref<2x1x32xf32, #tpu.memory_space<vmem>>, %arg33: memref<2x1x32xf32, #tpu.memory_space<vmem>>, %arg34: memref<2x1x32xf32, #tpu.memory_space<vmem>>, %arg35: memref<2x1xf32, #tpu.memory_space<vmem>>) attributes {dimension_semantics = [], scalar_prefetch = 0 : i64, scratch_operands = 0 : i64, tpu.core_type = #tpu.core_type<tc>} {
    %c0 = arith.constant 0 : index
    %c0_0 = arith.constant 0 : index
    %0 = vector.load %arg0[%c0, %c0_0] : memref<16x32xf32, #tpu.memory_space<vmem>>, vector<16x32xf32>
    %c0_1 = arith.constant 0 : index
    %c0_2 = arith.constant 0 : index
    %1 = vector.load %arg1[%c0_1, %c0_2] : memref<32x32xf32, #tpu.memory_space<vmem>>, vector<32x32xf32>
    %cst = arith.constant dense<0.000000e+00> : vector<16x32xf32>
    %2 = tpu.matmul %0, %1, %cst {dimension_numbers = #tpu.dot_dimension_numbers<[1], [0], [0], [1], [0, 0, 1, 1], [], []>} : vector<16x32xf32>, vector<32x32xf32>, vector<16x32xf32> -> vector<16x32xf32>
    %c0_3 = arith.constant 0 : index
    %c0_4 = arith.constant 0 : index
    %3 = vector.load %arg2[%c0_3, %c0_4] : memref<1x32xf32, #tpu.memory_space<vmem>>, vector<1x32xf32>
    %4 = vector.broadcast %3 : vector<1x32xf32> to vector<16x32xf32>
    %5 = arith.addf %2, %4 : vector<16x32xf32>
    %cst_5 = arith.constant 0.000000e+00 : f32
    %6 = vector.broadcast %cst_5 : f32 to vector<16x32xf32>
    %7 = arith.maximumf %5, %6 : vector<16x32xf32>
    %c0_6 = arith.constant 0 : index
    %c0_7 = arith.constant 0 : index
    %c0_8 = arith.constant 0 : index
    %8 = vector.load %arg5[%c0_6, %c0_7, %c0_8] : memref<2x1x32xf32, #tpu.memory_space<vmem>>, vector<1x1x32xf32>
    %9 = vector.shape_cast %8 : vector<1x1x32xf32> to vector<1x32xf32>
    %c0_9 = arith.constant 0 : index
    %c0_10 = arith.constant 0 : index
    %c0_11 = arith.constant 0 : index
    %10 = vector.load %arg6[%c0_9, %c0_10, %c0_11] : memref<2x1x32xf32, #tpu.memory_space<vmem>>, vector<1x1x32xf32>
    %11 = vector.shape_cast %10 : vector<1x1x32xf32> to vector<1x32xf32>
    %c0_12 = arith.constant 0 : index
    %c0_13 = arith.constant 0 : index
    %c0_14 = arith.constant 0 : index
    %12 = vector.load %arg7[%c0_12, %c0_13, %c0_14] : memref<2x32x32xf32, #tpu.memory_space<vmem>>, vector<1x32x32xf32>
    %13 = vector.shape_cast %12 : vector<1x32x32xf32> to vector<32x32xf32>
    %c0_15 = arith.constant 0 : index
    %c0_16 = arith.constant 0 : index
    %c0_17 = arith.constant 0 : index
    %14 = vector.load %arg8[%c0_15, %c0_16, %c0_17] : memref<2x1x32xf32, #tpu.memory_space<vmem>>, vector<1x1x32xf32>
    %15 = vector.shape_cast %14 : vector<1x1x32xf32> to vector<1x32xf32>
    %c0_18 = arith.constant 0 : index
    %c0_19 = arith.constant 0 : index
    %c0_20 = arith.constant 0 : index
    %16 = vector.load %arg9[%c0_18, %c0_19, %c0_20] : memref<2x32x32xf32, #tpu.memory_space<vmem>>, vector<1x32x32xf32>
    %17 = vector.shape_cast %16 : vector<1x32x32xf32> to vector<32x32xf32>
    %c0_21 = arith.constant 0 : index
    %c0_22 = arith.constant 0 : index
    %c0_23 = arith.constant 0 : index
    %18 = vector.load %arg10[%c0_21, %c0_22, %c0_23] : memref<2x1x32xf32, #tpu.memory_space<vmem>>, vector<1x1x32xf32>
    %19 = vector.shape_cast %18 : vector<1x1x32xf32> to vector<1x32xf32>
    %c0_24 = arith.constant 0 : index
    %c0_25 = arith.constant 0 : index
    %c0_26 = arith.constant 0 : index
    %20 = vector.load %arg11[%c0_24, %c0_25, %c0_26] : memref<2x1x32xf32, #tpu.memory_space<vmem>>, vector<1x1x32xf32>
    %21 = vector.shape_cast %20 : vector<1x1x32xf32> to vector<1x32xf32>
    %c0_27 = arith.constant 0 : index
    %c0_28 = arith.constant 0 : index
    %c0_29 = arith.constant 0 : index
    %22 = vector.load %arg12[%c0_27, %c0_28, %c0_29] : memref<2x1x32xf32, #tpu.memory_space<vmem>>, vector<1x1x32xf32>
    %23 = vector.shape_cast %22 : vector<1x1x32xf32> to vector<1x32xf32>
    %c0_30 = arith.constant 0 : index
    %c0_31 = arith.constant 0 : index
    %c0_32 = arith.constant 0 : index
    %24 = vector.load %arg13[%c0_30, %c0_31, %c0_32] : memref<2x32x96xf32, #tpu.memory_space<vmem>>, vector<1x32x96xf32>
    %25 = vector.shape_cast %24 : vector<1x32x96xf32> to vector<32x96xf32>
    %c0_33 = arith.constant 0 : index
    %c0_34 = arith.constant 0 : index
    %c0_35 = arith.constant 0 : index
    %26 = vector.load %arg14[%c0_33, %c0_34, %c0_35] : memref<2x1x96xf32, #tpu.memory_space<vmem>>, vector<1x1x96xf32>
    %27 = vector.shape_cast %26 : vector<1x1x96xf32> to vector<1x96xf32>
    %c0_36 = arith.constant 0 : index
    %c0_37 = arith.constant 0 : index
    %c0_38 = arith.constant 0 : index
    %28 = vector.load %arg15[%c0_36, %c0_37, %c0_38] : memref<2x32x32xf32, #tpu.memory_space<vmem>>, vector<1x32x32xf32>
    %29 = vector.shape_cast %28 : vector<1x32x32xf32> to vector<32x32xf32>
    %c0_39 = arith.constant 0 : index
    %c0_40 = arith.constant 0 : index
    %c0_41 = arith.constant 0 : index
    %30 = vector.load %arg16[%c0_39, %c0_40, %c0_41] : memref<2x1x32xf32, #tpu.memory_space<vmem>>, vector<1x1x32xf32>
    %31 = vector.shape_cast %30 : vector<1x1x32xf32> to vector<1x32xf32>
    %c0_42 = arith.constant 0 : index
    %c0_43 = arith.constant 0 : index
    %c0_44 = arith.constant 0 : index
    %32 = vector.load %arg17[%c0_42, %c0_43, %c0_44] : memref<2x1x32xf32, #tpu.memory_space<vmem>>, vector<1x1x32xf32>
    %33 = vector.shape_cast %32 : vector<1x1x32xf32> to vector<1x32xf32>
    %c0_45 = arith.constant 0 : index
    %c0_46 = arith.constant 0 : index
    %c0_47 = arith.constant 0 : index
    %34 = vector.load %arg18[%c0_45, %c0_46, %c0_47] : memref<2x1x32xf32, #tpu.memory_space<vmem>>, vector<1x1x32xf32>
    %35 = vector.shape_cast %34 : vector<1x1x32xf32> to vector<1x32xf32>
    %c0_48 = arith.constant 0 : index
    %c0_49 = arith.constant 0 : index
    %c0_50 = arith.constant 0 : index
    %36 = vector.load %arg19[%c0_48, %c0_49, %c0_50] : memref<2x32x64xf32, #tpu.memory_space<vmem>>, vector<1x32x64xf32>
    %37 = vector.shape_cast %36 : vector<1x32x64xf32> to vector<32x64xf32>
    %c0_51 = arith.constant 0 : index
    %c0_52 = arith.constant 0 : index
    %c0_53 = arith.constant 0 : index
    %38 = vector.load %arg20[%c0_51, %c0_52, %c0_53] : memref<2x1x64xf32, #tpu.memory_space<vmem>>, vector<1x1x64xf32>
    %39 = vector.shape_cast %38 : vector<1x1x64xf32> to vector<1x64xf32>
    %c0_54 = arith.constant 0 : index
    %c0_55 = arith.constant 0 : index
    %c0_56 = arith.constant 0 : index
    %40 = vector.load %arg21[%c0_54, %c0_55, %c0_56] : memref<2x3x32xf32, #tpu.memory_space<vmem>>, vector<1x3x32xf32>
    %41 = vector.shape_cast %40 : vector<1x3x32xf32> to vector<3x32xf32>
    %c0_57 = arith.constant 0 : index
    %c0_58 = arith.constant 0 : index
    %c0_59 = arith.constant 0 : index
    %42 = vector.load %arg22[%c0_57, %c0_58, %c0_59] : memref<2x1x32xf32, #tpu.memory_space<vmem>>, vector<1x1x32xf32>
    %43 = vector.shape_cast %42 : vector<1x1x32xf32> to vector<1x32xf32>
    %c0_60 = arith.constant 0 : index
    %c0_61 = arith.constant 0 : index
    %c0_62 = arith.constant 0 : index
    %44 = vector.load %arg23[%c0_60, %c0_61, %c0_62] : memref<2x1x32xf32, #tpu.memory_space<vmem>>, vector<1x1x32xf32>
    %45 = vector.shape_cast %44 : vector<1x1x32xf32> to vector<1x32xf32>
    %c0_63 = arith.constant 0 : index
    %c0_64 = arith.constant 0 : index
    %c0_65 = arith.constant 0 : index
    %46 = vector.load %arg24[%c0_63, %c0_64, %c0_65] : memref<2x1x32xf32, #tpu.memory_space<vmem>>, vector<1x1x32xf32>
    %47 = vector.shape_cast %46 : vector<1x1x32xf32> to vector<1x32xf32>
    %c0_66 = arith.constant 0 : index
    %c0_67 = arith.constant 0 : index
    %c0_68 = arith.constant 0 : index
    %48 = vector.load %arg25[%c0_66, %c0_67, %c0_68] : memref<2x32x32xf32, #tpu.memory_space<vmem>>, vector<1x32x32xf32>
    %49 = vector.shape_cast %48 : vector<1x32x32xf32> to vector<32x32xf32>
    %c0_69 = arith.constant 0 : index
    %c0_70 = arith.constant 0 : index
    %c0_71 = arith.constant 0 : index
    %50 = vector.load %arg26[%c0_69, %c0_70, %c0_71] : memref<2x1x32xf32, #tpu.memory_space<vmem>>, vector<1x1x32xf32>
    %51 = vector.shape_cast %50 : vector<1x1x32xf32> to vector<1x32xf32>
    %c0_72 = arith.constant 0 : index
    %c0_73 = arith.constant 0 : index
    %c0_74 = arith.constant 0 : index
    %52 = vector.load %arg27[%c0_72, %c0_73, %c0_74] : memref<2x1x32xf32, #tpu.memory_space<vmem>>, vector<1x1x32xf32>
    %53 = vector.shape_cast %52 : vector<1x1x32xf32> to vector<1x32xf32>
    %c0_75 = arith.constant 0 : index
    %c0_76 = arith.constant 0 : index
    %c0_77 = arith.constant 0 : index
    %54 = vector.load %arg28[%c0_75, %c0_76, %c0_77] : memref<2x1x32xf32, #tpu.memory_space<vmem>>, vector<1x1x32xf32>
    %55 = vector.shape_cast %54 : vector<1x1x32xf32> to vector<1x32xf32>
    %c0_78 = arith.constant 0 : index
    %c0_79 = arith.constant 0 : index
    %c0_80 = arith.constant 0 : index
    %56 = vector.load %arg29[%c0_78, %c0_79, %c0_80] : memref<2x32x32xf32, #tpu.memory_space<vmem>>, vector<1x32x32xf32>
    %57 = vector.shape_cast %56 : vector<1x32x32xf32> to vector<32x32xf32>
    %c0_81 = arith.constant 0 : index
    %c0_82 = arith.constant 0 : index
    %c0_83 = arith.constant 0 : index
    %58 = vector.load %arg30[%c0_81, %c0_82, %c0_83] : memref<2x1x32xf32, #tpu.memory_space<vmem>>, vector<1x1x32xf32>
    %59 = vector.shape_cast %58 : vector<1x1x32xf32> to vector<1x32xf32>
    %c0_84 = arith.constant 0 : index
    %c0_85 = arith.constant 0 : index
    %c0_86 = arith.constant 0 : index
    %60 = vector.load %arg31[%c0_84, %c0_85, %c0_86] : memref<2x32x32xf32, #tpu.memory_space<vmem>>, vector<1x32x32xf32>
    %61 = vector.shape_cast %60 : vector<1x32x32xf32> to vector<32x32xf32>
    %c0_87 = arith.constant 0 : index
    %c0_88 = arith.constant 0 : index
    %c0_89 = arith.constant 0 : index
    %62 = vector.load %arg32[%c0_87, %c0_88, %c0_89] : memref<2x1x32xf32, #tpu.memory_space<vmem>>, vector<1x1x32xf32>
    %63 = vector.shape_cast %62 : vector<1x1x32xf32> to vector<1x32xf32>
    %c0_90 = arith.constant 0 : index
    %c0_91 = arith.constant 0 : index
    %c0_92 = arith.constant 0 : index
    %64 = vector.load %arg33[%c0_90, %c0_91, %c0_92] : memref<2x1x32xf32, #tpu.memory_space<vmem>>, vector<1x1x32xf32>
    %65 = vector.shape_cast %64 : vector<1x1x32xf32> to vector<1x32xf32>
    %c0_93 = arith.constant 0 : index
    %c0_94 = arith.constant 0 : index
    %c0_95 = arith.constant 0 : index
    %66 = vector.load %arg34[%c0_93, %c0_94, %c0_95] : memref<2x1x32xf32, #tpu.memory_space<vmem>>, vector<1x1x32xf32>
    %67 = vector.shape_cast %66 : vector<1x1x32xf32> to vector<1x32xf32>
    %cst_96 = arith.constant dense<0.000000e+00> : vector<16xf32>
    %68 = vector.multi_reduction <add>, %7, %cst_96 [1] : vector<16x32xf32> to vector<16xf32>
    %69 = vector.shape_cast %68 : vector<16xf32> to vector<16x1xf32>
    %cst_97 = arith.constant 3.200000e+01 : f32
    %70 = vector.broadcast %cst_97 : f32 to vector<16x1xf32>
    %71 = arith.divf %69, %70 : vector<16x1xf32>
    %72 = vector.broadcast %71 : vector<16x1xf32> to vector<16x32xf32>
    %73 = arith.subf %7, %72 : vector<16x32xf32>
    %74 = arith.mulf %73, %73 : vector<16x32xf32>
    %cst_98 = arith.constant dense<0.000000e+00> : vector<16xf32>
    %75 = vector.multi_reduction <add>, %74, %cst_98 [1] : vector<16x32xf32> to vector<16xf32>
    %76 = vector.shape_cast %75 : vector<16xf32> to vector<16x1xf32>
    %cst_99 = arith.constant 3.200000e+01 : f32
    %77 = vector.broadcast %cst_99 : f32 to vector<16x1xf32>
    %78 = arith.divf %76, %77 : vector<16x1xf32>
    %79 = vector.broadcast %71 : vector<16x1xf32> to vector<16x32xf32>
    %80 = arith.subf %7, %79 : vector<16x32xf32>
    %cst_100 = arith.constant 9.99999974E-6 : f32
    %81 = vector.broadcast %cst_100 : f32 to vector<16x1xf32>
    %82 = arith.addf %78, %81 : vector<16x1xf32>
    %83 = math.rsqrt %82 : vector<16x1xf32>
    %84 = vector.broadcast %83 : vector<16x1xf32> to vector<16x32xf32>
    %85 = arith.mulf %80, %84 : vector<16x32xf32>
    %86 = vector.broadcast %9 : vector<1x32xf32> to vector<16x32xf32>
    %87 = arith.mulf %85, %86 : vector<16x32xf32>
    %88 = vector.broadcast %11 : vector<1x32xf32> to vector<16x32xf32>
    %89 = arith.addf %87, %88 : vector<16x32xf32>
    %cst_101 = arith.constant dense<0.000000e+00> : vector<16x32xf32>
    %90 = tpu.matmul %89, %13, %cst_101 {dimension_numbers = #tpu.dot_dimension_numbers<[1], [0], [0], [1], [0, 0, 1, 1], [], []>} : vector<16x32xf32>, vector<32x32xf32>, vector<16x32xf32> -> vector<16x32xf32>
    %91 = vector.broadcast %15 : vector<1x32xf32> to vector<16x32xf32>
    %92 = arith.addf %90, %91 : vector<16x32xf32>
    %93 = arith.negf %92 : vector<16x32xf32>
    %94 = math.exp %93 : vector<16x32xf32>
    %cst_102 = arith.constant 1.000000e+00 : f32
    %95 = vector.broadcast %cst_102 : f32 to vector<16x32xf32>
    %96 = arith.addf %95, %94 : vector<16x32xf32>
    %97 = arith.divf %95, %96 : vector<16x32xf32>
    %98 = arith.mulf %92, %97 : vector<16x32xf32>
    %cst_103 = arith.constant dense<0.000000e+00> : vector<16x32xf32>
    %99 = tpu.matmul %98, %17, %cst_103 {dimension_numbers = #tpu.dot_dimension_numbers<[1], [0], [0], [1], [0, 0, 1, 1], [], []>} : vector<16x32xf32>, vector<32x32xf32>, vector<16x32xf32> -> vector<16x32xf32>
    %100 = vector.broadcast %19 : vector<1x32xf32> to vector<16x32xf32>
    %101 = arith.addf %99, %100 : vector<16x32xf32>
    %cst_104 = arith.constant 5.000000e-01 : f32
    %102 = vector.broadcast %cst_104 : f32 to vector<16x32xf32>
    %103 = arith.mulf %102, %101 : vector<16x32xf32>
    %104 = arith.addf %7, %103 : vector<16x32xf32>
    %cst_105 = arith.constant dense<0.000000e+00> : vector<16xf32>
    %105 = vector.multi_reduction <add>, %104, %cst_105 [1] : vector<16x32xf32> to vector<16xf32>
    %106 = vector.shape_cast %105 : vector<16xf32> to vector<16x1xf32>
    %cst_106 = arith.constant 3.200000e+01 : f32
    %107 = vector.broadcast %cst_106 : f32 to vector<16x1xf32>
    %108 = arith.divf %106, %107 : vector<16x1xf32>
    %109 = vector.broadcast %108 : vector<16x1xf32> to vector<16x32xf32>
    %110 = arith.subf %104, %109 : vector<16x32xf32>
    %111 = arith.mulf %110, %110 : vector<16x32xf32>
    %cst_107 = arith.constant dense<0.000000e+00> : vector<16xf32>
    %112 = vector.multi_reduction <add>, %111, %cst_107 [1] : vector<16x32xf32> to vector<16xf32>
    %113 = vector.shape_cast %112 : vector<16xf32> to vector<16x1xf32>
    %cst_108 = arith.constant 3.200000e+01 : f32
    %114 = vector.broadcast %cst_108 : f32 to vector<16x1xf32>
    %115 = arith.divf %113, %114 : vector<16x1xf32>
    %116 = vector.broadcast %108 : vector<16x1xf32> to vector<16x32xf32>
    %117 = arith.subf %104, %116 : vector<16x32xf32>
    %cst_109 = arith.constant 9.99999974E-6 : f32
    %118 = vector.broadcast %cst_109 : f32 to vector<16x1xf32>
    %119 = arith.addf %115, %118 : vector<16x1xf32>
    %120 = math.rsqrt %119 : vector<16x1xf32>
    %121 = vector.broadcast %120 : vector<16x1xf32> to vector<16x32xf32>
    %122 = arith.mulf %117, %121 : vector<16x32xf32>
    %123 = vector.broadcast %21 : vector<1x32xf32> to vector<16x32xf32>
    %124 = arith.mulf %122, %123 : vector<16x32xf32>
    %125 = vector.broadcast %23 : vector<1x32xf32> to vector<16x32xf32>
    %126 = arith.addf %124, %125 : vector<16x32xf32>
    %cst_110 = arith.constant dense<0.000000e+00> : vector<16x96xf32>
    %127 = tpu.matmul %126, %25, %cst_110 {dimension_numbers = #tpu.dot_dimension_numbers<[1], [0], [0], [1], [0, 0, 1, 1], [], []>} : vector<16x32xf32>, vector<32x96xf32>, vector<16x96xf32> -> vector<16x96xf32>
    %128 = vector.broadcast %27 : vector<1x96xf32> to vector<16x96xf32>
    %129 = arith.addf %127, %128 : vector<16x96xf32>
    %130 = vector.extract_strided_slice %129 {offsets = [0, 0], sizes = [8, 8], strides = [1, 1]} : vector<16x96xf32> to vector<8x8xf32>
    %131 = vector.extract_strided_slice %129 {offsets = [0, 32], sizes = [8, 8], strides = [1, 1]} : vector<16x96xf32> to vector<8x8xf32>
    %132 = vector.extract_strided_slice %129 {offsets = [0, 64], sizes = [8, 8], strides = [1, 1]} : vector<16x96xf32> to vector<8x8xf32>
    %133 = tpu.transpose %131, [1, 0] : vector<8x8xf32> -> vector<8x8xf32>
    %cst_111 = arith.constant dense<0.000000e+00> : vector<8x8xf32>
    %134 = tpu.matmul %130, %133, %cst_111 {dimension_numbers = #tpu.dot_dimension_numbers<[1], [0], [0], [1], [0, 0, 1, 1], [], []>} : vector<8x8xf32>, vector<8x8xf32>, vector<8x8xf32> -> vector<8x8xf32>
    %cst_112 = arith.constant dense<0xFF800000> : vector<8xf32>
    %135 = vector.multi_reduction <maximumf>, %134, %cst_112 [1] : vector<8x8xf32> to vector<8xf32>
    %136 = vector.shape_cast %135 : vector<8xf32> to vector<8x1xf32>
    %137 = vector.broadcast %136 : vector<8x1xf32> to vector<8x8xf32>
    %138 = arith.subf %134, %137 : vector<8x8xf32>
    %139 = math.exp %138 : vector<8x8xf32>
    %cst_113 = arith.constant dense<0.000000e+00> : vector<8xf32>
    %140 = vector.multi_reduction <add>, %139, %cst_113 [1] : vector<8x8xf32> to vector<8xf32>
    %141 = vector.shape_cast %140 : vector<8xf32> to vector<8x1xf32>
    %142 = vector.broadcast %141 : vector<8x1xf32> to vector<8x8xf32>
    %143 = arith.divf %139, %142 : vector<8x8xf32>
    %cst_114 = arith.constant dense<0.000000e+00> : vector<8x8xf32>
    %144 = tpu.matmul %143, %132, %cst_114 {dimension_numbers = #tpu.dot_dimension_numbers<[1], [0], [0], [1], [0, 0, 1, 1], [], []>} : vector<8x8xf32>, vector<8x8xf32>, vector<8x8xf32> -> vector<8x8xf32>
    %145 = vector.extract_strided_slice %129 {offsets = [0, 8], sizes = [8, 8], strides = [1, 1]} : vector<16x96xf32> to vector<8x8xf32>
    %146 = vector.extract_strided_slice %129 {offsets = [0, 40], sizes = [8, 8], strides = [1, 1]} : vector<16x96xf32> to vector<8x8xf32>
    %147 = vector.extract_strided_slice %129 {offsets = [0, 72], sizes = [8, 8], strides = [1, 1]} : vector<16x96xf32> to vector<8x8xf32>
    %148 = tpu.transpose %146, [1, 0] : vector<8x8xf32> -> vector<8x8xf32>
    %cst_115 = arith.constant dense<0.000000e+00> : vector<8x8xf32>
    %149 = tpu.matmul %145, %148, %cst_115 {dimension_numbers = #tpu.dot_dimension_numbers<[1], [0], [0], [1], [0, 0, 1, 1], [], []>} : vector<8x8xf32>, vector<8x8xf32>, vector<8x8xf32> -> vector<8x8xf32>
    %cst_116 = arith.constant dense<0xFF800000> : vector<8xf32>
    %150 = vector.multi_reduction <maximumf>, %149, %cst_116 [1] : vector<8x8xf32> to vector<8xf32>
    %151 = vector.shape_cast %150 : vector<8xf32> to vector<8x1xf32>
    %152 = vector.broadcast %151 : vector<8x1xf32> to vector<8x8xf32>
    %153 = arith.subf %149, %152 : vector<8x8xf32>
    %154 = math.exp %153 : vector<8x8xf32>
    %cst_117 = arith.constant dense<0.000000e+00> : vector<8xf32>
    %155 = vector.multi_reduction <add>, %154, %cst_117 [1] : vector<8x8xf32> to vector<8xf32>
    %156 = vector.shape_cast %155 : vector<8xf32> to vector<8x1xf32>
    %157 = vector.broadcast %156 : vector<8x1xf32> to vector<8x8xf32>
    %158 = arith.divf %154, %157 : vector<8x8xf32>
    %cst_118 = arith.constant dense<0.000000e+00> : vector<8x8xf32>
    %159 = tpu.matmul %158, %147, %cst_118 {dimension_numbers = #tpu.dot_dimension_numbers<[1], [0], [0], [1], [0, 0, 1, 1], [], []>} : vector<8x8xf32>, vector<8x8xf32>, vector<8x8xf32> -> vector<8x8xf32>
    %160 = vector.extract_strided_slice %129 {offsets = [0, 16], sizes = [8, 8], strides = [1, 1]} : vector<16x96xf32> to vector<8x8xf32>
    %161 = vector.extract_strided_slice %129 {offsets = [0, 48], sizes = [8, 8], strides = [1, 1]} : vector<16x96xf32> to vector<8x8xf32>
    %162 = vector.extract_strided_slice %129 {offsets = [0, 80], sizes = [8, 8], strides = [1, 1]} : vector<16x96xf32> to vector<8x8xf32>
    %163 = tpu.transpose %161, [1, 0] : vector<8x8xf32> -> vector<8x8xf32>
    %cst_119 = arith.constant dense<0.000000e+00> : vector<8x8xf32>
    %164 = tpu.matmul %160, %163, %cst_119 {dimension_numbers = #tpu.dot_dimension_numbers<[1], [0], [0], [1], [0, 0, 1, 1], [], []>} : vector<8x8xf32>, vector<8x8xf32>, vector<8x8xf32> -> vector<8x8xf32>
    %cst_120 = arith.constant dense<0xFF800000> : vector<8xf32>
    %165 = vector.multi_reduction <maximumf>, %164, %cst_120 [1] : vector<8x8xf32> to vector<8xf32>
    %166 = vector.shape_cast %165 : vector<8xf32> to vector<8x1xf32>
    %167 = vector.broadcast %166 : vector<8x1xf32> to vector<8x8xf32>
    %168 = arith.subf %164, %167 : vector<8x8xf32>
    %169 = math.exp %168 : vector<8x8xf32>
    %cst_121 = arith.constant dense<0.000000e+00> : vector<8xf32>
    %170 = vector.multi_reduction <add>, %169, %cst_121 [1] : vector<8x8xf32> to vector<8xf32>
    %171 = vector.shape_cast %170 : vector<8xf32> to vector<8x1xf32>
    %172 = vector.broadcast %171 : vector<8x1xf32> to vector<8x8xf32>
    %173 = arith.divf %169, %172 : vector<8x8xf32>
    %cst_122 = arith.constant dense<0.000000e+00> : vector<8x8xf32>
    %174 = tpu.matmul %173, %162, %cst_122 {dimension_numbers = #tpu.dot_dimension_numbers<[1], [0], [0], [1], [0, 0, 1, 1], [], []>} : vector<8x8xf32>, vector<8x8xf32>, vector<8x8xf32> -> vector<8x8xf32>
    %175 = vector.extract_strided_slice %129 {offsets = [0, 24], sizes = [8, 8], strides = [1, 1]} : vector<16x96xf32> to vector<8x8xf32>
    %176 = vector.extract_strided_slice %129 {offsets = [0, 56], sizes = [8, 8], strides = [1, 1]} : vector<16x96xf32> to vector<8x8xf32>
    %177 = vector.extract_strided_slice %129 {offsets = [0, 88], sizes = [8, 8], strides = [1, 1]} : vector<16x96xf32> to vector<8x8xf32>
    %178 = tpu.transpose %176, [1, 0] : vector<8x8xf32> -> vector<8x8xf32>
    %cst_123 = arith.constant dense<0.000000e+00> : vector<8x8xf32>
    %179 = tpu.matmul %175, %178, %cst_123 {dimension_numbers = #tpu.dot_dimension_numbers<[1], [0], [0], [1], [0, 0, 1, 1], [], []>} : vector<8x8xf32>, vector<8x8xf32>, vector<8x8xf32> -> vector<8x8xf32>
    %cst_124 = arith.constant dense<0xFF800000> : vector<8xf32>
    %180 = vector.multi_reduction <maximumf>, %179, %cst_124 [1] : vector<8x8xf32> to vector<8xf32>
    %181 = vector.shape_cast %180 : vector<8xf32> to vector<8x1xf32>
    %182 = vector.broadcast %181 : vector<8x1xf32> to vector<8x8xf32>
    %183 = arith.subf %179, %182 : vector<8x8xf32>
    %184 = math.exp %183 : vector<8x8xf32>
    %cst_125 = arith.constant dense<0.000000e+00> : vector<8xf32>
    %185 = vector.multi_reduction <add>, %184, %cst_125 [1] : vector<8x8xf32> to vector<8xf32>
    %186 = vector.shape_cast %185 : vector<8xf32> to vector<8x1xf32>
    %187 = vector.broadcast %186 : vector<8x1xf32> to vector<8x8xf32>
    %188 = arith.divf %184, %187 : vector<8x8xf32>
    %cst_126 = arith.constant dense<0.000000e+00> : vector<8x8xf32>
    %189 = tpu.matmul %188, %177, %cst_126 {dimension_numbers = #tpu.dot_dimension_numbers<[1], [0], [0], [1], [0, 0, 1, 1], [], []>} : vector<8x8xf32>, vector<8x8xf32>, vector<8x8xf32> -> vector<8x8xf32>
    %190 = tpu.concatenate %144, %159, %174, %189 in 1 : vector<8x8xf32>, vector<8x8xf32>, vector<8x8xf32>, vector<8x8xf32> -> vector<8x32xf32>
    %191 = vector.extract_strided_slice %129 {offsets = [8, 0], sizes = [8, 8], strides = [1, 1]} : vector<16x96xf32> to vector<8x8xf32>
    %192 = vector.extract_strided_slice %129 {offsets = [8, 32], sizes = [8, 8], strides = [1, 1]} : vector<16x96xf32> to vector<8x8xf32>
    %193 = vector.extract_strided_slice %129 {offsets = [8, 64], sizes = [8, 8], strides = [1, 1]} : vector<16x96xf32> to vector<8x8xf32>
    %194 = tpu.transpose %192, [1, 0] : vector<8x8xf32> -> vector<8x8xf32>
    %cst_127 = arith.constant dense<0.000000e+00> : vector<8x8xf32>
    %195 = tpu.matmul %191, %194, %cst_127 {dimension_numbers = #tpu.dot_dimension_numbers<[1], [0], [0], [1], [0, 0, 1, 1], [], []>} : vector<8x8xf32>, vector<8x8xf32>, vector<8x8xf32> -> vector<8x8xf32>
    %cst_128 = arith.constant dense<0xFF800000> : vector<8xf32>
    %196 = vector.multi_reduction <maximumf>, %195, %cst_128 [1] : vector<8x8xf32> to vector<8xf32>
    %197 = vector.shape_cast %196 : vector<8xf32> to vector<8x1xf32>
    %198 = vector.broadcast %197 : vector<8x1xf32> to vector<8x8xf32>
    %199 = arith.subf %195, %198 : vector<8x8xf32>
    %200 = math.exp %199 : vector<8x8xf32>
    %cst_129 = arith.constant dense<0.000000e+00> : vector<8xf32>
    %201 = vector.multi_reduction <add>, %200, %cst_129 [1] : vector<8x8xf32> to vector<8xf32>
    %202 = vector.shape_cast %201 : vector<8xf32> to vector<8x1xf32>
    %203 = vector.broadcast %202 : vector<8x1xf32> to vector<8x8xf32>
    %204 = arith.divf %200, %203 : vector<8x8xf32>
    %cst_130 = arith.constant dense<0.000000e+00> : vector<8x8xf32>
    %205 = tpu.matmul %204, %193, %cst_130 {dimension_numbers = #tpu.dot_dimension_numbers<[1], [0], [0], [1], [0, 0, 1, 1], [], []>} : vector<8x8xf32>, vector<8x8xf32>, vector<8x8xf32> -> vector<8x8xf32>
    %206 = vector.extract_strided_slice %129 {offsets = [8, 8], sizes = [8, 8], strides = [1, 1]} : vector<16x96xf32> to vector<8x8xf32>
    %207 = vector.extract_strided_slice %129 {offsets = [8, 40], sizes = [8, 8], strides = [1, 1]} : vector<16x96xf32> to vector<8x8xf32>
    %208 = vector.extract_strided_slice %129 {offsets = [8, 72], sizes = [8, 8], strides = [1, 1]} : vector<16x96xf32> to vector<8x8xf32>
    %209 = tpu.transpose %207, [1, 0] : vector<8x8xf32> -> vector<8x8xf32>
    %cst_131 = arith.constant dense<0.000000e+00> : vector<8x8xf32>
    %210 = tpu.matmul %206, %209, %cst_131 {dimension_numbers = #tpu.dot_dimension_numbers<[1], [0], [0], [1], [0, 0, 1, 1], [], []>} : vector<8x8xf32>, vector<8x8xf32>, vector<8x8xf32> -> vector<8x8xf32>
    %cst_132 = arith.constant dense<0xFF800000> : vector<8xf32>
    %211 = vector.multi_reduction <maximumf>, %210, %cst_132 [1] : vector<8x8xf32> to vector<8xf32>
    %212 = vector.shape_cast %211 : vector<8xf32> to vector<8x1xf32>
    %213 = vector.broadcast %212 : vector<8x1xf32> to vector<8x8xf32>
    %214 = arith.subf %210, %213 : vector<8x8xf32>
    %215 = math.exp %214 : vector<8x8xf32>
    %cst_133 = arith.constant dense<0.000000e+00> : vector<8xf32>
    %216 = vector.multi_reduction <add>, %215, %cst_133 [1] : vector<8x8xf32> to vector<8xf32>
    %217 = vector.shape_cast %216 : vector<8xf32> to vector<8x1xf32>
    %218 = vector.broadcast %217 : vector<8x1xf32> to vector<8x8xf32>
    %219 = arith.divf %215, %218 : vector<8x8xf32>
    %cst_134 = arith.constant dense<0.000000e+00> : vector<8x8xf32>
    %220 = tpu.matmul %219, %208, %cst_134 {dimension_numbers = #tpu.dot_dimension_numbers<[1], [0], [0], [1], [0, 0, 1, 1], [], []>} : vector<8x8xf32>, vector<8x8xf32>, vector<8x8xf32> -> vector<8x8xf32>
    %221 = vector.extract_strided_slice %129 {offsets = [8, 16], sizes = [8, 8], strides = [1, 1]} : vector<16x96xf32> to vector<8x8xf32>
    %222 = vector.extract_strided_slice %129 {offsets = [8, 48], sizes = [8, 8], strides = [1, 1]} : vector<16x96xf32> to vector<8x8xf32>
    %223 = vector.extract_strided_slice %129 {offsets = [8, 80], sizes = [8, 8], strides = [1, 1]} : vector<16x96xf32> to vector<8x8xf32>
    %224 = tpu.transpose %222, [1, 0] : vector<8x8xf32> -> vector<8x8xf32>
    %cst_135 = arith.constant dense<0.000000e+00> : vector<8x8xf32>
    %225 = tpu.matmul %221, %224, %cst_135 {dimension_numbers = #tpu.dot_dimension_numbers<[1], [0], [0], [1], [0, 0, 1, 1], [], []>} : vector<8x8xf32>, vector<8x8xf32>, vector<8x8xf32> -> vector<8x8xf32>
    %cst_136 = arith.constant dense<0xFF800000> : vector<8xf32>
    %226 = vector.multi_reduction <maximumf>, %225, %cst_136 [1] : vector<8x8xf32> to vector<8xf32>
    %227 = vector.shape_cast %226 : vector<8xf32> to vector<8x1xf32>
    %228 = vector.broadcast %227 : vector<8x1xf32> to vector<8x8xf32>
    %229 = arith.subf %225, %228 : vector<8x8xf32>
    %230 = math.exp %229 : vector<8x8xf32>
    %cst_137 = arith.constant dense<0.000000e+00> : vector<8xf32>
    %231 = vector.multi_reduction <add>, %230, %cst_137 [1] : vector<8x8xf32> to vector<8xf32>
    %232 = vector.shape_cast %231 : vector<8xf32> to vector<8x1xf32>
    %233 = vector.broadcast %232 : vector<8x1xf32> to vector<8x8xf32>
    %234 = arith.divf %230, %233 : vector<8x8xf32>
    %cst_138 = arith.constant dense<0.000000e+00> : vector<8x8xf32>
    %235 = tpu.matmul %234, %223, %cst_138 {dimension_numbers = #tpu.dot_dimension_numbers<[1], [0], [0], [1], [0, 0, 1, 1], [], []>} : vector<8x8xf32>, vector<8x8xf32>, vector<8x8xf32> -> vector<8x8xf32>
    %236 = vector.extract_strided_slice %129 {offsets = [8, 24], sizes = [8, 8], strides = [1, 1]} : vector<16x96xf32> to vector<8x8xf32>
    %237 = vector.extract_strided_slice %129 {offsets = [8, 56], sizes = [8, 8], strides = [1, 1]} : vector<16x96xf32> to vector<8x8xf32>
    %238 = vector.extract_strided_slice %129 {offsets = [8, 88], sizes = [8, 8], strides = [1, 1]} : vector<16x96xf32> to vector<8x8xf32>
    %239 = tpu.transpose %237, [1, 0] : vector<8x8xf32> -> vector<8x8xf32>
    %cst_139 = arith.constant dense<0.000000e+00> : vector<8x8xf32>
    %240 = tpu.matmul %236, %239, %cst_139 {dimension_numbers = #tpu.dot_dimension_numbers<[1], [0], [0], [1], [0, 0, 1, 1], [], []>} : vector<8x8xf32>, vector<8x8xf32>, vector<8x8xf32> -> vector<8x8xf32>
    %cst_140 = arith.constant dense<0xFF800000> : vector<8xf32>
    %241 = vector.multi_reduction <maximumf>, %240, %cst_140 [1] : vector<8x8xf32> to vector<8xf32>
    %242 = vector.shape_cast %241 : vector<8xf32> to vector<8x1xf32>
    %243 = vector.broadcast %242 : vector<8x1xf32> to vector<8x8xf32>
    %244 = arith.subf %240, %243 : vector<8x8xf32>
    %245 = math.exp %244 : vector<8x8xf32>
    %cst_141 = arith.constant dense<0.000000e+00> : vector<8xf32>
    %246 = vector.multi_reduction <add>, %245, %cst_141 [1] : vector<8x8xf32> to vector<8xf32>
    %247 = vector.shape_cast %246 : vector<8xf32> to vector<8x1xf32>
    %248 = vector.broadcast %247 : vector<8x1xf32> to vector<8x8xf32>
    %249 = arith.divf %245, %248 : vector<8x8xf32>
    %cst_142 = arith.constant dense<0.000000e+00> : vector<8x8xf32>
    %250 = tpu.matmul %249, %238, %cst_142 {dimension_numbers = #tpu.dot_dimension_numbers<[1], [0], [0], [1], [0, 0, 1, 1], [], []>} : vector<8x8xf32>, vector<8x8xf32>, vector<8x8xf32> -> vector<8x8xf32>
    %251 = tpu.concatenate %205, %220, %235, %250 in 1 : vector<8x8xf32>, vector<8x8xf32>, vector<8x8xf32>, vector<8x8xf32> -> vector<8x32xf32>
    %252 = tpu.concatenate %190, %251 in 0 : vector<8x32xf32>, vector<8x32xf32> -> vector<16x32xf32>
    %cst_143 = arith.constant dense<0.000000e+00> : vector<16x32xf32>
    %253 = tpu.matmul %252, %29, %cst_143 {dimension_numbers = #tpu.dot_dimension_numbers<[1], [0], [0], [1], [0, 0, 1, 1], [], []>} : vector<16x32xf32>, vector<32x32xf32>, vector<16x32xf32> -> vector<16x32xf32>
    %254 = arith.addf %104, %253 : vector<16x32xf32>
    %255 = vector.broadcast %31 : vector<1x32xf32> to vector<16x32xf32>
    %256 = arith.addf %254, %255 : vector<16x32xf32>
    %cst_144 = arith.constant dense<0.000000e+00> : vector<16xf32>
    %257 = vector.multi_reduction <add>, %256, %cst_144 [1] : vector<16x32xf32> to vector<16xf32>
    %258 = vector.shape_cast %257 : vector<16xf32> to vector<16x1xf32>
    %cst_145 = arith.constant 3.200000e+01 : f32
    %259 = vector.broadcast %cst_145 : f32 to vector<16x1xf32>
    %260 = arith.divf %258, %259 : vector<16x1xf32>
    %261 = vector.broadcast %260 : vector<16x1xf32> to vector<16x32xf32>
    %262 = arith.subf %256, %261 : vector<16x32xf32>
    %263 = arith.mulf %262, %262 : vector<16x32xf32>
    %cst_146 = arith.constant dense<0.000000e+00> : vector<16xf32>
    %264 = vector.multi_reduction <add>, %263, %cst_146 [1] : vector<16x32xf32> to vector<16xf32>
    %265 = vector.shape_cast %264 : vector<16xf32> to vector<16x1xf32>
    %cst_147 = arith.constant 3.200000e+01 : f32
    %266 = vector.broadcast %cst_147 : f32 to vector<16x1xf32>
    %267 = arith.divf %265, %266 : vector<16x1xf32>
    %268 = vector.broadcast %260 : vector<16x1xf32> to vector<16x32xf32>
    %269 = arith.subf %256, %268 : vector<16x32xf32>
    %cst_148 = arith.constant 9.99999974E-6 : f32
    %270 = vector.broadcast %cst_148 : f32 to vector<16x1xf32>
    %271 = arith.addf %267, %270 : vector<16x1xf32>
    %272 = math.rsqrt %271 : vector<16x1xf32>
    %273 = vector.broadcast %272 : vector<16x1xf32> to vector<16x32xf32>
    %274 = arith.mulf %269, %273 : vector<16x32xf32>
    %275 = vector.broadcast %33 : vector<1x32xf32> to vector<16x32xf32>
    %276 = arith.mulf %274, %275 : vector<16x32xf32>
    %277 = vector.broadcast %35 : vector<1x32xf32> to vector<16x32xf32>
    %278 = arith.addf %276, %277 : vector<16x32xf32>
    %cst_149 = arith.constant dense<0.000000e+00> : vector<16x64xf32>
    %279 = tpu.matmul %278, %37, %cst_149 {dimension_numbers = #tpu.dot_dimension_numbers<[1], [0], [0], [1], [0, 0, 1, 1], [], []>} : vector<16x32xf32>, vector<32x64xf32>, vector<16x64xf32> -> vector<16x64xf32>
    %280 = vector.broadcast %39 : vector<1x64xf32> to vector<16x64xf32>
    %281 = arith.addf %279, %280 : vector<16x64xf32>
    %282 = vector.extract_strided_slice %281 {offsets = [0, 0], sizes = [16, 32], strides = [1, 1]} : vector<16x64xf32> to vector<16x32xf32>
    %283 = vector.extract_strided_slice %281 {offsets = [0, 32], sizes = [16, 32], strides = [1, 1]} : vector<16x64xf32> to vector<16x32xf32>
    %284 = arith.negf %283 : vector<16x32xf32>
    %285 = math.exp %284 : vector<16x32xf32>
    %cst_150 = arith.constant 1.000000e+00 : f32
    %286 = vector.broadcast %cst_150 : f32 to vector<16x32xf32>
    %287 = arith.addf %286, %285 : vector<16x32xf32>
    %288 = arith.divf %286, %287 : vector<16x32xf32>
    %289 = arith.mulf %282, %288 : vector<16x32xf32>
    %290 = vector.extract_strided_slice %289 {offsets = [0, 0], sizes = [8, 32], strides = [1, 1]} : vector<16x32xf32> to vector<8x32xf32>
    %cst_151 = arith.constant 0.000000e+00 : f32
    %291 = vector.broadcast %cst_151 : f32 to vector<8x32xf32>
    %cst_152 = arith.constant 0.000000e+00 : f32
    %292 = vector.broadcast %cst_152 : f32 to vector<1x32xf32>
    %293 = vector.extract_strided_slice %290 {offsets = [0, 0], sizes = [7, 32], strides = [1, 1]} : vector<8x32xf32> to vector<7x32xf32>
    %294 = tpu.concatenate %292, %293 in 0 : vector<1x32xf32>, vector<7x32xf32> -> vector<8x32xf32>
    %295 = vector.extract_strided_slice %41 {offsets = [0, 0], sizes = [1, 32], strides = [1, 1]} : vector<3x32xf32> to vector<1x32xf32>
    %296 = vector.shape_cast %295 : vector<1x32xf32> to vector<32xf32>
    %297 = vector.shape_cast %296 : vector<32xf32> to vector<1x32xf32>
    %298 = vector.broadcast %297 : vector<1x32xf32> to vector<8x32xf32>
    %299 = arith.mulf %294, %298 : vector<8x32xf32>
    %300 = arith.addf %291, %299 : vector<8x32xf32>
    %301 = vector.extract_strided_slice %41 {offsets = [1, 0], sizes = [1, 32], strides = [1, 1]} : vector<3x32xf32> to vector<1x32xf32>
    %302 = vector.shape_cast %301 : vector<1x32xf32> to vector<32xf32>
    %303 = vector.shape_cast %302 : vector<32xf32> to vector<1x32xf32>
    %304 = vector.broadcast %303 : vector<1x32xf32> to vector<8x32xf32>
    %305 = arith.mulf %290, %304 : vector<8x32xf32>
    %306 = arith.addf %300, %305 : vector<8x32xf32>
    %307 = vector.extract_strided_slice %290 {offsets = [1, 0], sizes = [7, 32], strides = [1, 1]} : vector<8x32xf32> to vector<7x32xf32>
    %cst_153 = arith.constant 0.000000e+00 : f32
    %308 = vector.broadcast %cst_153 : f32 to vector<1x32xf32>
    %309 = tpu.concatenate %307, %308 in 0 : vector<7x32xf32>, vector<1x32xf32> -> vector<8x32xf32>
    %310 = vector.extract_strided_slice %41 {offsets = [2, 0], sizes = [1, 32], strides = [1, 1]} : vector<3x32xf32> to vector<1x32xf32>
    %311 = vector.shape_cast %310 : vector<1x32xf32> to vector<32xf32>
    %312 = vector.shape_cast %311 : vector<32xf32> to vector<1x32xf32>
    %313 = vector.broadcast %312 : vector<1x32xf32> to vector<8x32xf32>
    %314 = arith.mulf %309, %313 : vector<8x32xf32>
    %315 = arith.addf %306, %314 : vector<8x32xf32>
    %316 = vector.extract_strided_slice %289 {offsets = [8, 0], sizes = [8, 32], strides = [1, 1]} : vector<16x32xf32> to vector<8x32xf32>
    %cst_154 = arith.constant 0.000000e+00 : f32
    %317 = vector.broadcast %cst_154 : f32 to vector<8x32xf32>
    %cst_155 = arith.constant 0.000000e+00 : f32
    %318 = vector.broadcast %cst_155 : f32 to vector<1x32xf32>
    %319 = vector.extract_strided_slice %316 {offsets = [0, 0], sizes = [7, 32], strides = [1, 1]} : vector<8x32xf32> to vector<7x32xf32>
    %320 = tpu.concatenate %318, %319 in 0 : vector<1x32xf32>, vector<7x32xf32> -> vector<8x32xf32>
    %321 = vector.extract_strided_slice %41 {offsets = [0, 0], sizes = [1, 32], strides = [1, 1]} : vector<3x32xf32> to vector<1x32xf32>
    %322 = vector.shape_cast %321 : vector<1x32xf32> to vector<32xf32>
    %323 = vector.shape_cast %322 : vector<32xf32> to vector<1x32xf32>
    %324 = vector.broadcast %323 : vector<1x32xf32> to vector<8x32xf32>
    %325 = arith.mulf %320, %324 : vector<8x32xf32>
    %326 = arith.addf %317, %325 : vector<8x32xf32>
    %327 = vector.extract_strided_slice %41 {offsets = [1, 0], sizes = [1, 32], strides = [1, 1]} : vector<3x32xf32> to vector<1x32xf32>
    %328 = vector.shape_cast %327 : vector<1x32xf32> to vector<32xf32>
    %329 = vector.shape_cast %328 : vector<32xf32> to vector<1x32xf32>
    %330 = vector.broadcast %329 : vector<1x32xf32> to vector<8x32xf32>
    %331 = arith.mulf %316, %330 : vector<8x32xf32>
    %332 = arith.addf %326, %331 : vector<8x32xf32>
    %333 = vector.extract_strided_slice %316 {offsets = [1, 0], sizes = [7, 32], strides = [1, 1]} : vector<8x32xf32> to vector<7x32xf32>
    %cst_156 = arith.constant 0.000000e+00 : f32
    %334 = vector.broadcast %cst_156 : f32 to vector<1x32xf32>
    %335 = tpu.concatenate %333, %334 in 0 : vector<7x32xf32>, vector<1x32xf32> -> vector<8x32xf32>
    %336 = vector.extract_strided_slice %41 {offsets = [2, 0], sizes = [1, 32], strides = [1, 1]} : vector<3x32xf32> to vector<1x32xf32>
    %337 = vector.shape_cast %336 : vector<1x32xf32> to vector<32xf32>
    %338 = vector.shape_cast %337 : vector<32xf32> to vector<1x32xf32>
    %339 = vector.broadcast %338 : vector<1x32xf32> to vector<8x32xf32>
    %340 = arith.mulf %335, %339 : vector<8x32xf32>
    %341 = arith.addf %332, %340 : vector<8x32xf32>
    %342 = tpu.concatenate %315, %341 in 0 : vector<8x32xf32>, vector<8x32xf32> -> vector<16x32xf32>
    %343 = vector.broadcast %43 : vector<1x32xf32> to vector<16x32xf32>
    %344 = arith.addf %342, %343 : vector<16x32xf32>
    %345 = vector.broadcast %45 : vector<1x32xf32> to vector<16x32xf32>
    %346 = arith.mulf %344, %345 : vector<16x32xf32>
    %347 = vector.broadcast %47 : vector<1x32xf32> to vector<16x32xf32>
    %348 = arith.addf %346, %347 : vector<16x32xf32>
    %349 = arith.negf %348 : vector<16x32xf32>
    %350 = math.exp %349 : vector<16x32xf32>
    %cst_157 = arith.constant 1.000000e+00 : f32
    %351 = vector.broadcast %cst_157 : f32 to vector<16x32xf32>
    %352 = arith.addf %351, %350 : vector<16x32xf32>
    %353 = arith.divf %351, %352 : vector<16x32xf32>
    %354 = arith.mulf %348, %353 : vector<16x32xf32>
    %cst_158 = arith.constant dense<0.000000e+00> : vector<16x32xf32>
    %355 = tpu.matmul %354, %49, %cst_158 {dimension_numbers = #tpu.dot_dimension_numbers<[1], [0], [0], [1], [0, 0, 1, 1], [], []>} : vector<16x32xf32>, vector<32x32xf32>, vector<16x32xf32> -> vector<16x32xf32>
    %356 = arith.addf %256, %355 : vector<16x32xf32>
    %357 = vector.broadcast %51 : vector<1x32xf32> to vector<16x32xf32>
    %358 = arith.addf %356, %357 : vector<16x32xf32>
    %cst_159 = arith.constant dense<0.000000e+00> : vector<16xf32>
    %359 = vector.multi_reduction <add>, %358, %cst_159 [1] : vector<16x32xf32> to vector<16xf32>
    %360 = vector.shape_cast %359 : vector<16xf32> to vector<16x1xf32>
    %cst_160 = arith.constant 3.200000e+01 : f32
    %361 = vector.broadcast %cst_160 : f32 to vector<16x1xf32>
    %362 = arith.divf %360, %361 : vector<16x1xf32>
    %363 = vector.broadcast %362 : vector<16x1xf32> to vector<16x32xf32>
    %364 = arith.subf %358, %363 : vector<16x32xf32>
    %365 = arith.mulf %364, %364 : vector<16x32xf32>
    %cst_161 = arith.constant dense<0.000000e+00> : vector<16xf32>
    %366 = vector.multi_reduction <add>, %365, %cst_161 [1] : vector<16x32xf32> to vector<16xf32>
    %367 = vector.shape_cast %366 : vector<16xf32> to vector<16x1xf32>
    %cst_162 = arith.constant 3.200000e+01 : f32
    %368 = vector.broadcast %cst_162 : f32 to vector<16x1xf32>
    %369 = arith.divf %367, %368 : vector<16x1xf32>
    %370 = vector.broadcast %362 : vector<16x1xf32> to vector<16x32xf32>
    %371 = arith.subf %358, %370 : vector<16x32xf32>
    %cst_163 = arith.constant 9.99999974E-6 : f32
    %372 = vector.broadcast %cst_163 : f32 to vector<16x1xf32>
    %373 = arith.addf %369, %372 : vector<16x1xf32>
    %374 = math.rsqrt %373 : vector<16x1xf32>
    %375 = vector.broadcast %374 : vector<16x1xf32> to vector<16x32xf32>
    %376 = arith.mulf %371, %375 : vector<16x32xf32>
    %377 = vector.broadcast %53 : vector<1x32xf32> to vector<16x32xf32>
    %378 = arith.mulf %376, %377 : vector<16x32xf32>
    %379 = vector.broadcast %55 : vector<1x32xf32> to vector<16x32xf32>
    %380 = arith.addf %378, %379 : vector<16x32xf32>
    %cst_164 = arith.constant dense<0.000000e+00> : vector<16x32xf32>
    %381 = tpu.matmul %380, %57, %cst_164 {dimension_numbers = #tpu.dot_dimension_numbers<[1], [0], [0], [1], [0, 0, 1, 1], [], []>} : vector<16x32xf32>, vector<32x32xf32>, vector<16x32xf32> -> vector<16x32xf32>
    %382 = vector.broadcast %59 : vector<1x32xf32> to vector<16x32xf32>
    %383 = arith.addf %381, %382 : vector<16x32xf32>
    %384 = arith.negf %383 : vector<16x32xf32>
    %385 = math.exp %384 : vector<16x32xf32>
    %cst_165 = arith.constant 1.000000e+00 : f32
    %386 = vector.broadcast %cst_165 : f32 to vector<16x32xf32>
    %387 = arith.addf %386, %385 : vector<16x32xf32>
    %388 = arith.divf %386, %387 : vector<16x32xf32>
    %389 = arith.mulf %383, %388 : vector<16x32xf32>
    %cst_166 = arith.constant dense<0.000000e+00> : vector<16x32xf32>
    %390 = tpu.matmul %389, %61, %cst_166 {dimension_numbers = #tpu.dot_dimension_numbers<[1], [0], [0], [1], [0, 0, 1, 1], [], []>} : vector<16x32xf32>, vector<32x32xf32>, vector<16x32xf32> -> vector<16x32xf32>
    %391 = vector.broadcast %63 : vector<1x32xf32> to vector<16x32xf32>
    %392 = arith.addf %390, %391 : vector<16x32xf32>
    %cst_167 = arith.constant 5.000000e-01 : f32
    %393 = vector.broadcast %cst_167 : f32 to vector<16x32xf32>
    %394 = arith.mulf %393, %392 : vector<16x32xf32>
    %395 = arith.addf %358, %394 : vector<16x32xf32>
    %cst_168 = arith.constant dense<0.000000e+00> : vector<16xf32>
    %396 = vector.multi_reduction <add>, %395, %cst_168 [1] : vector<16x32xf32> to vector<16xf32>
    %397 = vector.shape_cast %396 : vector<16xf32> to vector<16x1xf32>
    %cst_169 = arith.constant 3.200000e+01 : f32
    %398 = vector.broadcast %cst_169 : f32 to vector<16x1xf32>
    %399 = arith.divf %397, %398 : vector<16x1xf32>
    %400 = vector.broadcast %399 : vector<16x1xf32> to vector<16x32xf32>
    %401 = arith.subf %395, %400 : vector<16x32xf32>
    %402 = arith.mulf %401, %401 : vector<16x32xf32>
    %cst_170 = arith.constant dense<0.000000e+00> : vector<16xf32>
    %403 = vector.multi_reduction <add>, %402, %cst_170 [1] : vector<16x32xf32> to vector<16xf32>
    %404 = vector.shape_cast %403 : vector<16xf32> to vector<16x1xf32>
    %cst_171 = arith.constant 3.200000e+01 : f32
    %405 = vector.broadcast %cst_171 : f32 to vector<16x1xf32>
    %406 = arith.divf %404, %405 : vector<16x1xf32>
    %407 = vector.broadcast %399 : vector<16x1xf32> to vector<16x32xf32>
    %408 = arith.subf %395, %407 : vector<16x32xf32>
    %cst_172 = arith.constant 9.99999974E-6 : f32
    %409 = vector.broadcast %cst_172 : f32 to vector<16x1xf32>
    %410 = arith.addf %406, %409 : vector<16x1xf32>
    %411 = math.rsqrt %410 : vector<16x1xf32>
    %412 = vector.broadcast %411 : vector<16x1xf32> to vector<16x32xf32>
    %413 = arith.mulf %408, %412 : vector<16x32xf32>
    %414 = vector.broadcast %65 : vector<1x32xf32> to vector<16x32xf32>
    %415 = arith.mulf %413, %414 : vector<16x32xf32>
    %416 = vector.broadcast %67 : vector<1x32xf32> to vector<16x32xf32>
    %417 = arith.addf %415, %416 : vector<16x32xf32>
    %c1 = arith.constant 1 : index
    %c0_173 = arith.constant 0 : index
    %c0_174 = arith.constant 0 : index
    %418 = vector.load %arg5[%c1, %c0_173, %c0_174] : memref<2x1x32xf32, #tpu.memory_space<vmem>>, vector<1x1x32xf32>
    %419 = vector.shape_cast %418 : vector<1x1x32xf32> to vector<1x32xf32>
    %c1_175 = arith.constant 1 : index
    %c0_176 = arith.constant 0 : index
    %c0_177 = arith.constant 0 : index
    %420 = vector.load %arg6[%c1_175, %c0_176, %c0_177] : memref<2x1x32xf32, #tpu.memory_space<vmem>>, vector<1x1x32xf32>
    %421 = vector.shape_cast %420 : vector<1x1x32xf32> to vector<1x32xf32>
    %c1_178 = arith.constant 1 : index
    %c0_179 = arith.constant 0 : index
    %c0_180 = arith.constant 0 : index
    %422 = vector.load %arg7[%c1_178, %c0_179, %c0_180] : memref<2x32x32xf32, #tpu.memory_space<vmem>>, vector<1x32x32xf32>
    %423 = vector.shape_cast %422 : vector<1x32x32xf32> to vector<32x32xf32>
    %c1_181 = arith.constant 1 : index
    %c0_182 = arith.constant 0 : index
    %c0_183 = arith.constant 0 : index
    %424 = vector.load %arg8[%c1_181, %c0_182, %c0_183] : memref<2x1x32xf32, #tpu.memory_space<vmem>>, vector<1x1x32xf32>
    %425 = vector.shape_cast %424 : vector<1x1x32xf32> to vector<1x32xf32>
    %c1_184 = arith.constant 1 : index
    %c0_185 = arith.constant 0 : index
    %c0_186 = arith.constant 0 : index
    %426 = vector.load %arg9[%c1_184, %c0_185, %c0_186] : memref<2x32x32xf32, #tpu.memory_space<vmem>>, vector<1x32x32xf32>
    %427 = vector.shape_cast %426 : vector<1x32x32xf32> to vector<32x32xf32>
    %c1_187 = arith.constant 1 : index
    %c0_188 = arith.constant 0 : index
    %c0_189 = arith.constant 0 : index
    %428 = vector.load %arg10[%c1_187, %c0_188, %c0_189] : memref<2x1x32xf32, #tpu.memory_space<vmem>>, vector<1x1x32xf32>
    %429 = vector.shape_cast %428 : vector<1x1x32xf32> to vector<1x32xf32>
    %c1_190 = arith.constant 1 : index
    %c0_191 = arith.constant 0 : index
    %c0_192 = arith.constant 0 : index
    %430 = vector.load %arg11[%c1_190, %c0_191, %c0_192] : memref<2x1x32xf32, #tpu.memory_space<vmem>>, vector<1x1x32xf32>
    %431 = vector.shape_cast %430 : vector<1x1x32xf32> to vector<1x32xf32>
    %c1_193 = arith.constant 1 : index
    %c0_194 = arith.constant 0 : index
    %c0_195 = arith.constant 0 : index
    %432 = vector.load %arg12[%c1_193, %c0_194, %c0_195] : memref<2x1x32xf32, #tpu.memory_space<vmem>>, vector<1x1x32xf32>
    %433 = vector.shape_cast %432 : vector<1x1x32xf32> to vector<1x32xf32>
    %c1_196 = arith.constant 1 : index
    %c0_197 = arith.constant 0 : index
    %c0_198 = arith.constant 0 : index
    %434 = vector.load %arg13[%c1_196, %c0_197, %c0_198] : memref<2x32x96xf32, #tpu.memory_space<vmem>>, vector<1x32x96xf32>
    %435 = vector.shape_cast %434 : vector<1x32x96xf32> to vector<32x96xf32>
    %c1_199 = arith.constant 1 : index
    %c0_200 = arith.constant 0 : index
    %c0_201 = arith.constant 0 : index
    %436 = vector.load %arg14[%c1_199, %c0_200, %c0_201] : memref<2x1x96xf32, #tpu.memory_space<vmem>>, vector<1x1x96xf32>
    %437 = vector.shape_cast %436 : vector<1x1x96xf32> to vector<1x96xf32>
    %c1_202 = arith.constant 1 : index
    %c0_203 = arith.constant 0 : index
    %c0_204 = arith.constant 0 : index
    %438 = vector.load %arg15[%c1_202, %c0_203, %c0_204] : memref<2x32x32xf32, #tpu.memory_space<vmem>>, vector<1x32x32xf32>
    %439 = vector.shape_cast %438 : vector<1x32x32xf32> to vector<32x32xf32>
    %c1_205 = arith.constant 1 : index
    %c0_206 = arith.constant 0 : index
    %c0_207 = arith.constant 0 : index
    %440 = vector.load %arg16[%c1_205, %c0_206, %c0_207] : memref<2x1x32xf32, #tpu.memory_space<vmem>>, vector<1x1x32xf32>
    %441 = vector.shape_cast %440 : vector<1x1x32xf32> to vector<1x32xf32>
    %c1_208 = arith.constant 1 : index
    %c0_209 = arith.constant 0 : index
    %c0_210 = arith.constant 0 : index
    %442 = vector.load %arg17[%c1_208, %c0_209, %c0_210] : memref<2x1x32xf32, #tpu.memory_space<vmem>>, vector<1x1x32xf32>
    %443 = vector.shape_cast %442 : vector<1x1x32xf32> to vector<1x32xf32>
    %c1_211 = arith.constant 1 : index
    %c0_212 = arith.constant 0 : index
    %c0_213 = arith.constant 0 : index
    %444 = vector.load %arg18[%c1_211, %c0_212, %c0_213] : memref<2x1x32xf32, #tpu.memory_space<vmem>>, vector<1x1x32xf32>
    %445 = vector.shape_cast %444 : vector<1x1x32xf32> to vector<1x32xf32>
    %c1_214 = arith.constant 1 : index
    %c0_215 = arith.constant 0 : index
    %c0_216 = arith.constant 0 : index
    %446 = vector.load %arg19[%c1_214, %c0_215, %c0_216] : memref<2x32x64xf32, #tpu.memory_space<vmem>>, vector<1x32x64xf32>
    %447 = vector.shape_cast %446 : vector<1x32x64xf32> to vector<32x64xf32>
    %c1_217 = arith.constant 1 : index
    %c0_218 = arith.constant 0 : index
    %c0_219 = arith.constant 0 : index
    %448 = vector.load %arg20[%c1_217, %c0_218, %c0_219] : memref<2x1x64xf32, #tpu.memory_space<vmem>>, vector<1x1x64xf32>
    %449 = vector.shape_cast %448 : vector<1x1x64xf32> to vector<1x64xf32>
    %c1_220 = arith.constant 1 : index
    %c0_221 = arith.constant 0 : index
    %c0_222 = arith.constant 0 : index
    %450 = vector.load %arg21[%c1_220, %c0_221, %c0_222] : memref<2x3x32xf32, #tpu.memory_space<vmem>>, vector<1x3x32xf32>
    %451 = vector.shape_cast %450 : vector<1x3x32xf32> to vector<3x32xf32>
    %c1_223 = arith.constant 1 : index
    %c0_224 = arith.constant 0 : index
    %c0_225 = arith.constant 0 : index
    %452 = vector.load %arg22[%c1_223, %c0_224, %c0_225] : memref<2x1x32xf32, #tpu.memory_space<vmem>>, vector<1x1x32xf32>
    %453 = vector.shape_cast %452 : vector<1x1x32xf32> to vector<1x32xf32>
    %c1_226 = arith.constant 1 : index
    %c0_227 = arith.constant 0 : index
    %c0_228 = arith.constant 0 : index
    %454 = vector.load %arg23[%c1_226, %c0_227, %c0_228] : memref<2x1x32xf32, #tpu.memory_space<vmem>>, vector<1x1x32xf32>
    %455 = vector.shape_cast %454 : vector<1x1x32xf32> to vector<1x32xf32>
    %c1_229 = arith.constant 1 : index
    %c0_230 = arith.constant 0 : index
    %c0_231 = arith.constant 0 : index
    %456 = vector.load %arg24[%c1_229, %c0_230, %c0_231] : memref<2x1x32xf32, #tpu.memory_space<vmem>>, vector<1x1x32xf32>
    %457 = vector.shape_cast %456 : vector<1x1x32xf32> to vector<1x32xf32>
    %c1_232 = arith.constant 1 : index
    %c0_233 = arith.constant 0 : index
    %c0_234 = arith.constant 0 : index
    %458 = vector.load %arg25[%c1_232, %c0_233, %c0_234] : memref<2x32x32xf32, #tpu.memory_space<vmem>>, vector<1x32x32xf32>
    %459 = vector.shape_cast %458 : vector<1x32x32xf32> to vector<32x32xf32>
    %c1_235 = arith.constant 1 : index
    %c0_236 = arith.constant 0 : index
    %c0_237 = arith.constant 0 : index
    %460 = vector.load %arg26[%c1_235, %c0_236, %c0_237] : memref<2x1x32xf32, #tpu.memory_space<vmem>>, vector<1x1x32xf32>
    %461 = vector.shape_cast %460 : vector<1x1x32xf32> to vector<1x32xf32>
    %c1_238 = arith.constant 1 : index
    %c0_239 = arith.constant 0 : index
    %c0_240 = arith.constant 0 : index
    %462 = vector.load %arg27[%c1_238, %c0_239, %c0_240] : memref<2x1x32xf32, #tpu.memory_space<vmem>>, vector<1x1x32xf32>
    %463 = vector.shape_cast %462 : vector<1x1x32xf32> to vector<1x32xf32>
    %c1_241 = arith.constant 1 : index
    %c0_242 = arith.constant 0 : index
    %c0_243 = arith.constant 0 : index
    %464 = vector.load %arg28[%c1_241, %c0_242, %c0_243] : memref<2x1x32xf32, #tpu.memory_space<vmem>>, vector<1x1x32xf32>
    %465 = vector.shape_cast %464 : vector<1x1x32xf32> to vector<1x32xf32>
    %c1_244 = arith.constant 1 : index
    %c0_245 = arith.constant 0 : index
    %c0_246 = arith.constant 0 : index
    %466 = vector.load %arg29[%c1_244, %c0_245, %c0_246] : memref<2x32x32xf32, #tpu.memory_space<vmem>>, vector<1x32x32xf32>
    %467 = vector.shape_cast %466 : vector<1x32x32xf32> to vector<32x32xf32>
    %c1_247 = arith.constant 1 : index
    %c0_248 = arith.constant 0 : index
    %c0_249 = arith.constant 0 : index
    %468 = vector.load %arg30[%c1_247, %c0_248, %c0_249] : memref<2x1x32xf32, #tpu.memory_space<vmem>>, vector<1x1x32xf32>
    %469 = vector.shape_cast %468 : vector<1x1x32xf32> to vector<1x32xf32>
    %c1_250 = arith.constant 1 : index
    %c0_251 = arith.constant 0 : index
    %c0_252 = arith.constant 0 : index
    %470 = vector.load %arg31[%c1_250, %c0_251, %c0_252] : memref<2x32x32xf32, #tpu.memory_space<vmem>>, vector<1x32x32xf32>
    %471 = vector.shape_cast %470 : vector<1x32x32xf32> to vector<32x32xf32>
    %c1_253 = arith.constant 1 : index
    %c0_254 = arith.constant 0 : index
    %c0_255 = arith.constant 0 : index
    %472 = vector.load %arg32[%c1_253, %c0_254, %c0_255] : memref<2x1x32xf32, #tpu.memory_space<vmem>>, vector<1x1x32xf32>
    %473 = vector.shape_cast %472 : vector<1x1x32xf32> to vector<1x32xf32>
    %c1_256 = arith.constant 1 : index
    %c0_257 = arith.constant 0 : index
    %c0_258 = arith.constant 0 : index
    %474 = vector.load %arg33[%c1_256, %c0_257, %c0_258] : memref<2x1x32xf32, #tpu.memory_space<vmem>>, vector<1x1x32xf32>
    %475 = vector.shape_cast %474 : vector<1x1x32xf32> to vector<1x32xf32>
    %c1_259 = arith.constant 1 : index
    %c0_260 = arith.constant 0 : index
    %c0_261 = arith.constant 0 : index
    %476 = vector.load %arg34[%c1_259, %c0_260, %c0_261] : memref<2x1x32xf32, #tpu.memory_space<vmem>>, vector<1x1x32xf32>
    %477 = vector.shape_cast %476 : vector<1x1x32xf32> to vector<1x32xf32>
    %cst_262 = arith.constant dense<0.000000e+00> : vector<16xf32>
    %478 = vector.multi_reduction <add>, %417, %cst_262 [1] : vector<16x32xf32> to vector<16xf32>
    %479 = vector.shape_cast %478 : vector<16xf32> to vector<16x1xf32>
    %cst_263 = arith.constant 3.200000e+01 : f32
    %480 = vector.broadcast %cst_263 : f32 to vector<16x1xf32>
    %481 = arith.divf %479, %480 : vector<16x1xf32>
    %482 = vector.broadcast %481 : vector<16x1xf32> to vector<16x32xf32>
    %483 = arith.subf %417, %482 : vector<16x32xf32>
    %484 = arith.mulf %483, %483 : vector<16x32xf32>
    %cst_264 = arith.constant dense<0.000000e+00> : vector<16xf32>
    %485 = vector.multi_reduction <add>, %484, %cst_264 [1] : vector<16x32xf32> to vector<16xf32>
    %486 = vector.shape_cast %485 : vector<16xf32> to vector<16x1xf32>
    %cst_265 = arith.constant 3.200000e+01 : f32
    %487 = vector.broadcast %cst_265 : f32 to vector<16x1xf32>
    %488 = arith.divf %486, %487 : vector<16x1xf32>
    %489 = vector.broadcast %481 : vector<16x1xf32> to vector<16x32xf32>
    %490 = arith.subf %417, %489 : vector<16x32xf32>
    %cst_266 = arith.constant 9.99999974E-6 : f32
    %491 = vector.broadcast %cst_266 : f32 to vector<16x1xf32>
    %492 = arith.addf %488, %491 : vector<16x1xf32>
    %493 = math.rsqrt %492 : vector<16x1xf32>
    %494 = vector.broadcast %493 : vector<16x1xf32> to vector<16x32xf32>
    %495 = arith.mulf %490, %494 : vector<16x32xf32>
    %496 = vector.broadcast %419 : vector<1x32xf32> to vector<16x32xf32>
    %497 = arith.mulf %495, %496 : vector<16x32xf32>
    %498 = vector.broadcast %421 : vector<1x32xf32> to vector<16x32xf32>
    %499 = arith.addf %497, %498 : vector<16x32xf32>
    %cst_267 = arith.constant dense<0.000000e+00> : vector<16x32xf32>
    %500 = tpu.matmul %499, %423, %cst_267 {dimension_numbers = #tpu.dot_dimension_numbers<[1], [0], [0], [1], [0, 0, 1, 1], [], []>} : vector<16x32xf32>, vector<32x32xf32>, vector<16x32xf32> -> vector<16x32xf32>
    %501 = vector.broadcast %425 : vector<1x32xf32> to vector<16x32xf32>
    %502 = arith.addf %500, %501 : vector<16x32xf32>
    %503 = arith.negf %502 : vector<16x32xf32>
    %504 = math.exp %503 : vector<16x32xf32>
    %cst_268 = arith.constant 1.000000e+00 : f32
    %505 = vector.broadcast %cst_268 : f32 to vector<16x32xf32>
    %506 = arith.addf %505, %504 : vector<16x32xf32>
    %507 = arith.divf %505, %506 : vector<16x32xf32>
    %508 = arith.mulf %502, %507 : vector<16x32xf32>
    %cst_269 = arith.constant dense<0.000000e+00> : vector<16x32xf32>
    %509 = tpu.matmul %508, %427, %cst_269 {dimension_numbers = #tpu.dot_dimension_numbers<[1], [0], [0], [1], [0, 0, 1, 1], [], []>} : vector<16x32xf32>, vector<32x32xf32>, vector<16x32xf32> -> vector<16x32xf32>
    %510 = vector.broadcast %429 : vector<1x32xf32> to vector<16x32xf32>
    %511 = arith.addf %509, %510 : vector<16x32xf32>
    %cst_270 = arith.constant 5.000000e-01 : f32
    %512 = vector.broadcast %cst_270 : f32 to vector<16x32xf32>
    %513 = arith.mulf %512, %511 : vector<16x32xf32>
    %514 = arith.addf %417, %513 : vector<16x32xf32>
    %cst_271 = arith.constant dense<0.000000e+00> : vector<16xf32>
    %515 = vector.multi_reduction <add>, %514, %cst_271 [1] : vector<16x32xf32> to vector<16xf32>
    %516 = vector.shape_cast %515 : vector<16xf32> to vector<16x1xf32>
    %cst_272 = arith.constant 3.200000e+01 : f32
    %517 = vector.broadcast %cst_272 : f32 to vector<16x1xf32>
    %518 = arith.divf %516, %517 : vector<16x1xf32>
    %519 = vector.broadcast %518 : vector<16x1xf32> to vector<16x32xf32>
    %520 = arith.subf %514, %519 : vector<16x32xf32>
    %521 = arith.mulf %520, %520 : vector<16x32xf32>
    %cst_273 = arith.constant dense<0.000000e+00> : vector<16xf32>
    %522 = vector.multi_reduction <add>, %521, %cst_273 [1] : vector<16x32xf32> to vector<16xf32>
    %523 = vector.shape_cast %522 : vector<16xf32> to vector<16x1xf32>
    %cst_274 = arith.constant 3.200000e+01 : f32
    %524 = vector.broadcast %cst_274 : f32 to vector<16x1xf32>
    %525 = arith.divf %523, %524 : vector<16x1xf32>
    %526 = vector.broadcast %518 : vector<16x1xf32> to vector<16x32xf32>
    %527 = arith.subf %514, %526 : vector<16x32xf32>
    %cst_275 = arith.constant 9.99999974E-6 : f32
    %528 = vector.broadcast %cst_275 : f32 to vector<16x1xf32>
    %529 = arith.addf %525, %528 : vector<16x1xf32>
    %530 = math.rsqrt %529 : vector<16x1xf32>
    %531 = vector.broadcast %530 : vector<16x1xf32> to vector<16x32xf32>
    %532 = arith.mulf %527, %531 : vector<16x32xf32>
    %533 = vector.broadcast %431 : vector<1x32xf32> to vector<16x32xf32>
    %534 = arith.mulf %532, %533 : vector<16x32xf32>
    %535 = vector.broadcast %433 : vector<1x32xf32> to vector<16x32xf32>
    %536 = arith.addf %534, %535 : vector<16x32xf32>
    %cst_276 = arith.constant dense<0.000000e+00> : vector<16x96xf32>
    %537 = tpu.matmul %536, %435, %cst_276 {dimension_numbers = #tpu.dot_dimension_numbers<[1], [0], [0], [1], [0, 0, 1, 1], [], []>} : vector<16x32xf32>, vector<32x96xf32>, vector<16x96xf32> -> vector<16x96xf32>
    %538 = vector.broadcast %437 : vector<1x96xf32> to vector<16x96xf32>
    %539 = arith.addf %537, %538 : vector<16x96xf32>
    %540 = vector.extract_strided_slice %539 {offsets = [0, 0], sizes = [8, 8], strides = [1, 1]} : vector<16x96xf32> to vector<8x8xf32>
    %541 = vector.extract_strided_slice %539 {offsets = [0, 32], sizes = [8, 8], strides = [1, 1]} : vector<16x96xf32> to vector<8x8xf32>
    %542 = vector.extract_strided_slice %539 {offsets = [0, 64], sizes = [8, 8], strides = [1, 1]} : vector<16x96xf32> to vector<8x8xf32>
    %543 = tpu.transpose %541, [1, 0] : vector<8x8xf32> -> vector<8x8xf32>
    %cst_277 = arith.constant dense<0.000000e+00> : vector<8x8xf32>
    %544 = tpu.matmul %540, %543, %cst_277 {dimension_numbers = #tpu.dot_dimension_numbers<[1], [0], [0], [1], [0, 0, 1, 1], [], []>} : vector<8x8xf32>, vector<8x8xf32>, vector<8x8xf32> -> vector<8x8xf32>
    %cst_278 = arith.constant dense<0xFF800000> : vector<8xf32>
    %545 = vector.multi_reduction <maximumf>, %544, %cst_278 [1] : vector<8x8xf32> to vector<8xf32>
    %546 = vector.shape_cast %545 : vector<8xf32> to vector<8x1xf32>
    %547 = vector.broadcast %546 : vector<8x1xf32> to vector<8x8xf32>
    %548 = arith.subf %544, %547 : vector<8x8xf32>
    %549 = math.exp %548 : vector<8x8xf32>
    %cst_279 = arith.constant dense<0.000000e+00> : vector<8xf32>
    %550 = vector.multi_reduction <add>, %549, %cst_279 [1] : vector<8x8xf32> to vector<8xf32>
    %551 = vector.shape_cast %550 : vector<8xf32> to vector<8x1xf32>
    %552 = vector.broadcast %551 : vector<8x1xf32> to vector<8x8xf32>
    %553 = arith.divf %549, %552 : vector<8x8xf32>
    %cst_280 = arith.constant dense<0.000000e+00> : vector<8x8xf32>
    %554 = tpu.matmul %553, %542, %cst_280 {dimension_numbers = #tpu.dot_dimension_numbers<[1], [0], [0], [1], [0, 0, 1, 1], [], []>} : vector<8x8xf32>, vector<8x8xf32>, vector<8x8xf32> -> vector<8x8xf32>
    %555 = vector.extract_strided_slice %539 {offsets = [0, 8], sizes = [8, 8], strides = [1, 1]} : vector<16x96xf32> to vector<8x8xf32>
    %556 = vector.extract_strided_slice %539 {offsets = [0, 40], sizes = [8, 8], strides = [1, 1]} : vector<16x96xf32> to vector<8x8xf32>
    %557 = vector.extract_strided_slice %539 {offsets = [0, 72], sizes = [8, 8], strides = [1, 1]} : vector<16x96xf32> to vector<8x8xf32>
    %558 = tpu.transpose %556, [1, 0] : vector<8x8xf32> -> vector<8x8xf32>
    %cst_281 = arith.constant dense<0.000000e+00> : vector<8x8xf32>
    %559 = tpu.matmul %555, %558, %cst_281 {dimension_numbers = #tpu.dot_dimension_numbers<[1], [0], [0], [1], [0, 0, 1, 1], [], []>} : vector<8x8xf32>, vector<8x8xf32>, vector<8x8xf32> -> vector<8x8xf32>
    %cst_282 = arith.constant dense<0xFF800000> : vector<8xf32>
    %560 = vector.multi_reduction <maximumf>, %559, %cst_282 [1] : vector<8x8xf32> to vector<8xf32>
    %561 = vector.shape_cast %560 : vector<8xf32> to vector<8x1xf32>
    %562 = vector.broadcast %561 : vector<8x1xf32> to vector<8x8xf32>
    %563 = arith.subf %559, %562 : vector<8x8xf32>
    %564 = math.exp %563 : vector<8x8xf32>
    %cst_283 = arith.constant dense<0.000000e+00> : vector<8xf32>
    %565 = vector.multi_reduction <add>, %564, %cst_283 [1] : vector<8x8xf32> to vector<8xf32>
    %566 = vector.shape_cast %565 : vector<8xf32> to vector<8x1xf32>
    %567 = vector.broadcast %566 : vector<8x1xf32> to vector<8x8xf32>
    %568 = arith.divf %564, %567 : vector<8x8xf32>
    %cst_284 = arith.constant dense<0.000000e+00> : vector<8x8xf32>
    %569 = tpu.matmul %568, %557, %cst_284 {dimension_numbers = #tpu.dot_dimension_numbers<[1], [0], [0], [1], [0, 0, 1, 1], [], []>} : vector<8x8xf32>, vector<8x8xf32>, vector<8x8xf32> -> vector<8x8xf32>
    %570 = vector.extract_strided_slice %539 {offsets = [0, 16], sizes = [8, 8], strides = [1, 1]} : vector<16x96xf32> to vector<8x8xf32>
    %571 = vector.extract_strided_slice %539 {offsets = [0, 48], sizes = [8, 8], strides = [1, 1]} : vector<16x96xf32> to vector<8x8xf32>
    %572 = vector.extract_strided_slice %539 {offsets = [0, 80], sizes = [8, 8], strides = [1, 1]} : vector<16x96xf32> to vector<8x8xf32>
    %573 = tpu.transpose %571, [1, 0] : vector<8x8xf32> -> vector<8x8xf32>
    %cst_285 = arith.constant dense<0.000000e+00> : vector<8x8xf32>
    %574 = tpu.matmul %570, %573, %cst_285 {dimension_numbers = #tpu.dot_dimension_numbers<[1], [0], [0], [1], [0, 0, 1, 1], [], []>} : vector<8x8xf32>, vector<8x8xf32>, vector<8x8xf32> -> vector<8x8xf32>
    %cst_286 = arith.constant dense<0xFF800000> : vector<8xf32>
    %575 = vector.multi_reduction <maximumf>, %574, %cst_286 [1] : vector<8x8xf32> to vector<8xf32>
    %576 = vector.shape_cast %575 : vector<8xf32> to vector<8x1xf32>
    %577 = vector.broadcast %576 : vector<8x1xf32> to vector<8x8xf32>
    %578 = arith.subf %574, %577 : vector<8x8xf32>
    %579 = math.exp %578 : vector<8x8xf32>
    %cst_287 = arith.constant dense<0.000000e+00> : vector<8xf32>
    %580 = vector.multi_reduction <add>, %579, %cst_287 [1] : vector<8x8xf32> to vector<8xf32>
    %581 = vector.shape_cast %580 : vector<8xf32> to vector<8x1xf32>
    %582 = vector.broadcast %581 : vector<8x1xf32> to vector<8x8xf32>
    %583 = arith.divf %579, %582 : vector<8x8xf32>
    %cst_288 = arith.constant dense<0.000000e+00> : vector<8x8xf32>
    %584 = tpu.matmul %583, %572, %cst_288 {dimension_numbers = #tpu.dot_dimension_numbers<[1], [0], [0], [1], [0, 0, 1, 1], [], []>} : vector<8x8xf32>, vector<8x8xf32>, vector<8x8xf32> -> vector<8x8xf32>
    %585 = vector.extract_strided_slice %539 {offsets = [0, 24], sizes = [8, 8], strides = [1, 1]} : vector<16x96xf32> to vector<8x8xf32>
    %586 = vector.extract_strided_slice %539 {offsets = [0, 56], sizes = [8, 8], strides = [1, 1]} : vector<16x96xf32> to vector<8x8xf32>
    %587 = vector.extract_strided_slice %539 {offsets = [0, 88], sizes = [8, 8], strides = [1, 1]} : vector<16x96xf32> to vector<8x8xf32>
    %588 = tpu.transpose %586, [1, 0] : vector<8x8xf32> -> vector<8x8xf32>
    %cst_289 = arith.constant dense<0.000000e+00> : vector<8x8xf32>
    %589 = tpu.matmul %585, %588, %cst_289 {dimension_numbers = #tpu.dot_dimension_numbers<[1], [0], [0], [1], [0, 0, 1, 1], [], []>} : vector<8x8xf32>, vector<8x8xf32>, vector<8x8xf32> -> vector<8x8xf32>
    %cst_290 = arith.constant dense<0xFF800000> : vector<8xf32>
    %590 = vector.multi_reduction <maximumf>, %589, %cst_290 [1] : vector<8x8xf32> to vector<8xf32>
    %591 = vector.shape_cast %590 : vector<8xf32> to vector<8x1xf32>
    %592 = vector.broadcast %591 : vector<8x1xf32> to vector<8x8xf32>
    %593 = arith.subf %589, %592 : vector<8x8xf32>
    %594 = math.exp %593 : vector<8x8xf32>
    %cst_291 = arith.constant dense<0.000000e+00> : vector<8xf32>
    %595 = vector.multi_reduction <add>, %594, %cst_291 [1] : vector<8x8xf32> to vector<8xf32>
    %596 = vector.shape_cast %595 : vector<8xf32> to vector<8x1xf32>
    %597 = vector.broadcast %596 : vector<8x1xf32> to vector<8x8xf32>
    %598 = arith.divf %594, %597 : vector<8x8xf32>
    %cst_292 = arith.constant dense<0.000000e+00> : vector<8x8xf32>
    %599 = tpu.matmul %598, %587, %cst_292 {dimension_numbers = #tpu.dot_dimension_numbers<[1], [0], [0], [1], [0, 0, 1, 1], [], []>} : vector<8x8xf32>, vector<8x8xf32>, vector<8x8xf32> -> vector<8x8xf32>
    %600 = tpu.concatenate %554, %569, %584, %599 in 1 : vector<8x8xf32>, vector<8x8xf32>, vector<8x8xf32>, vector<8x8xf32> -> vector<8x32xf32>
    %601 = vector.extract_strided_slice %539 {offsets = [8, 0], sizes = [8, 8], strides = [1, 1]} : vector<16x96xf32> to vector<8x8xf32>
    %602 = vector.extract_strided_slice %539 {offsets = [8, 32], sizes = [8, 8], strides = [1, 1]} : vector<16x96xf32> to vector<8x8xf32>
    %603 = vector.extract_strided_slice %539 {offsets = [8, 64], sizes = [8, 8], strides = [1, 1]} : vector<16x96xf32> to vector<8x8xf32>
    %604 = tpu.transpose %602, [1, 0] : vector<8x8xf32> -> vector<8x8xf32>
    %cst_293 = arith.constant dense<0.000000e+00> : vector<8x8xf32>
    %605 = tpu.matmul %601, %604, %cst_293 {dimension_numbers = #tpu.dot_dimension_numbers<[1], [0], [0], [1], [0, 0, 1, 1], [], []>} : vector<8x8xf32>, vector<8x8xf32>, vector<8x8xf32> -> vector<8x8xf32>
    %cst_294 = arith.constant dense<0xFF800000> : vector<8xf32>
    %606 = vector.multi_reduction <maximumf>, %605, %cst_294 [1] : vector<8x8xf32> to vector<8xf32>
    %607 = vector.shape_cast %606 : vector<8xf32> to vector<8x1xf32>
    %608 = vector.broadcast %607 : vector<8x1xf32> to vector<8x8xf32>
    %609 = arith.subf %605, %608 : vector<8x8xf32>
    %610 = math.exp %609 : vector<8x8xf32>
    %cst_295 = arith.constant dense<0.000000e+00> : vector<8xf32>
    %611 = vector.multi_reduction <add>, %610, %cst_295 [1] : vector<8x8xf32> to vector<8xf32>
    %612 = vector.shape_cast %611 : vector<8xf32> to vector<8x1xf32>
    %613 = vector.broadcast %612 : vector<8x1xf32> to vector<8x8xf32>
    %614 = arith.divf %610, %613 : vector<8x8xf32>
    %cst_296 = arith.constant dense<0.000000e+00> : vector<8x8xf32>
    %615 = tpu.matmul %614, %603, %cst_296 {dimension_numbers = #tpu.dot_dimension_numbers<[1], [0], [0], [1], [0, 0, 1, 1], [], []>} : vector<8x8xf32>, vector<8x8xf32>, vector<8x8xf32> -> vector<8x8xf32>
    %616 = vector.extract_strided_slice %539 {offsets = [8, 8], sizes = [8, 8], strides = [1, 1]} : vector<16x96xf32> to vector<8x8xf32>
    %617 = vector.extract_strided_slice %539 {offsets = [8, 40], sizes = [8, 8], strides = [1, 1]} : vector<16x96xf32> to vector<8x8xf32>
    %618 = vector.extract_strided_slice %539 {offsets = [8, 72], sizes = [8, 8], strides = [1, 1]} : vector<16x96xf32> to vector<8x8xf32>
    %619 = tpu.transpose %617, [1, 0] : vector<8x8xf32> -> vector<8x8xf32>
    %cst_297 = arith.constant dense<0.000000e+00> : vector<8x8xf32>
    %620 = tpu.matmul %616, %619, %cst_297 {dimension_numbers = #tpu.dot_dimension_numbers<[1], [0], [0], [1], [0, 0, 1, 1], [], []>} : vector<8x8xf32>, vector<8x8xf32>, vector<8x8xf32> -> vector<8x8xf32>
    %cst_298 = arith.constant dense<0xFF800000> : vector<8xf32>
    %621 = vector.multi_reduction <maximumf>, %620, %cst_298 [1] : vector<8x8xf32> to vector<8xf32>
    %622 = vector.shape_cast %621 : vector<8xf32> to vector<8x1xf32>
    %623 = vector.broadcast %622 : vector<8x1xf32> to vector<8x8xf32>
    %624 = arith.subf %620, %623 : vector<8x8xf32>
    %625 = math.exp %624 : vector<8x8xf32>
    %cst_299 = arith.constant dense<0.000000e+00> : vector<8xf32>
    %626 = vector.multi_reduction <add>, %625, %cst_299 [1] : vector<8x8xf32> to vector<8xf32>
    %627 = vector.shape_cast %626 : vector<8xf32> to vector<8x1xf32>
    %628 = vector.broadcast %627 : vector<8x1xf32> to vector<8x8xf32>
    %629 = arith.divf %625, %628 : vector<8x8xf32>
    %cst_300 = arith.constant dense<0.000000e+00> : vector<8x8xf32>
    %630 = tpu.matmul %629, %618, %cst_300 {dimension_numbers = #tpu.dot_dimension_numbers<[1], [0], [0], [1], [0, 0, 1, 1], [], []>} : vector<8x8xf32>, vector<8x8xf32>, vector<8x8xf32> -> vector<8x8xf32>
    %631 = vector.extract_strided_slice %539 {offsets = [8, 16], sizes = [8, 8], strides = [1, 1]} : vector<16x96xf32> to vector<8x8xf32>
    %632 = vector.extract_strided_slice %539 {offsets = [8, 48], sizes = [8, 8], strides = [1, 1]} : vector<16x96xf32> to vector<8x8xf32>
    %633 = vector.extract_strided_slice %539 {offsets = [8, 80], sizes = [8, 8], strides = [1, 1]} : vector<16x96xf32> to vector<8x8xf32>
    %634 = tpu.transpose %632, [1, 0] : vector<8x8xf32> -> vector<8x8xf32>
    %cst_301 = arith.constant dense<0.000000e+00> : vector<8x8xf32>
    %635 = tpu.matmul %631, %634, %cst_301 {dimension_numbers = #tpu.dot_dimension_numbers<[1], [0], [0], [1], [0, 0, 1, 1], [], []>} : vector<8x8xf32>, vector<8x8xf32>, vector<8x8xf32> -> vector<8x8xf32>
    %cst_302 = arith.constant dense<0xFF800000> : vector<8xf32>
    %636 = vector.multi_reduction <maximumf>, %635, %cst_302 [1] : vector<8x8xf32> to vector<8xf32>
    %637 = vector.shape_cast %636 : vector<8xf32> to vector<8x1xf32>
    %638 = vector.broadcast %637 : vector<8x1xf32> to vector<8x8xf32>
    %639 = arith.subf %635, %638 : vector<8x8xf32>
    %640 = math.exp %639 : vector<8x8xf32>
    %cst_303 = arith.constant dense<0.000000e+00> : vector<8xf32>
    %641 = vector.multi_reduction <add>, %640, %cst_303 [1] : vector<8x8xf32> to vector<8xf32>
    %642 = vector.shape_cast %641 : vector<8xf32> to vector<8x1xf32>
    %643 = vector.broadcast %642 : vector<8x1xf32> to vector<8x8xf32>
    %644 = arith.divf %640, %643 : vector<8x8xf32>
    %cst_304 = arith.constant dense<0.000000e+00> : vector<8x8xf32>
    %645 = tpu.matmul %644, %633, %cst_304 {dimension_numbers = #tpu.dot_dimension_numbers<[1], [0], [0], [1], [0, 0, 1, 1], [], []>} : vector<8x8xf32>, vector<8x8xf32>, vector<8x8xf32> -> vector<8x8xf32>
    %646 = vector.extract_strided_slice %539 {offsets = [8, 24], sizes = [8, 8], strides = [1, 1]} : vector<16x96xf32> to vector<8x8xf32>
    %647 = vector.extract_strided_slice %539 {offsets = [8, 56], sizes = [8, 8], strides = [1, 1]} : vector<16x96xf32> to vector<8x8xf32>
    %648 = vector.extract_strided_slice %539 {offsets = [8, 88], sizes = [8, 8], strides = [1, 1]} : vector<16x96xf32> to vector<8x8xf32>
    %649 = tpu.transpose %647, [1, 0] : vector<8x8xf32> -> vector<8x8xf32>
    %cst_305 = arith.constant dense<0.000000e+00> : vector<8x8xf32>
    %650 = tpu.matmul %646, %649, %cst_305 {dimension_numbers = #tpu.dot_dimension_numbers<[1], [0], [0], [1], [0, 0, 1, 1], [], []>} : vector<8x8xf32>, vector<8x8xf32>, vector<8x8xf32> -> vector<8x8xf32>
    %cst_306 = arith.constant dense<0xFF800000> : vector<8xf32>
    %651 = vector.multi_reduction <maximumf>, %650, %cst_306 [1] : vector<8x8xf32> to vector<8xf32>
    %652 = vector.shape_cast %651 : vector<8xf32> to vector<8x1xf32>
    %653 = vector.broadcast %652 : vector<8x1xf32> to vector<8x8xf32>
    %654 = arith.subf %650, %653 : vector<8x8xf32>
    %655 = math.exp %654 : vector<8x8xf32>
    %cst_307 = arith.constant dense<0.000000e+00> : vector<8xf32>
    %656 = vector.multi_reduction <add>, %655, %cst_307 [1] : vector<8x8xf32> to vector<8xf32>
    %657 = vector.shape_cast %656 : vector<8xf32> to vector<8x1xf32>
    %658 = vector.broadcast %657 : vector<8x1xf32> to vector<8x8xf32>
    %659 = arith.divf %655, %658 : vector<8x8xf32>
    %cst_308 = arith.constant dense<0.000000e+00> : vector<8x8xf32>
    %660 = tpu.matmul %659, %648, %cst_308 {dimension_numbers = #tpu.dot_dimension_numbers<[1], [0], [0], [1], [0, 0, 1, 1], [], []>} : vector<8x8xf32>, vector<8x8xf32>, vector<8x8xf32> -> vector<8x8xf32>
    %661 = tpu.concatenate %615, %630, %645, %660 in 1 : vector<8x8xf32>, vector<8x8xf32>, vector<8x8xf32>, vector<8x8xf32> -> vector<8x32xf32>
    %662 = tpu.concatenate %600, %661 in 0 : vector<8x32xf32>, vector<8x32xf32> -> vector<16x32xf32>
    %cst_309 = arith.constant dense<0.000000e+00> : vector<16x32xf32>
    %663 = tpu.matmul %662, %439, %cst_309 {dimension_numbers = #tpu.dot_dimension_numbers<[1], [0], [0], [1], [0, 0, 1, 1], [], []>} : vector<16x32xf32>, vector<32x32xf32>, vector<16x32xf32> -> vector<16x32xf32>
    %664 = arith.addf %514, %663 : vector<16x32xf32>
    %665 = vector.broadcast %441 : vector<1x32xf32> to vector<16x32xf32>
    %666 = arith.addf %664, %665 : vector<16x32xf32>
    %cst_310 = arith.constant dense<0.000000e+00> : vector<16xf32>
    %667 = vector.multi_reduction <add>, %666, %cst_310 [1] : vector<16x32xf32> to vector<16xf32>
    %668 = vector.shape_cast %667 : vector<16xf32> to vector<16x1xf32>
    %cst_311 = arith.constant 3.200000e+01 : f32
    %669 = vector.broadcast %cst_311 : f32 to vector<16x1xf32>
    %670 = arith.divf %668, %669 : vector<16x1xf32>
    %671 = vector.broadcast %670 : vector<16x1xf32> to vector<16x32xf32>
    %672 = arith.subf %666, %671 : vector<16x32xf32>
    %673 = arith.mulf %672, %672 : vector<16x32xf32>
    %cst_312 = arith.constant dense<0.000000e+00> : vector<16xf32>
    %674 = vector.multi_reduction <add>, %673, %cst_312 [1] : vector<16x32xf32> to vector<16xf32>
    %675 = vector.shape_cast %674 : vector<16xf32> to vector<16x1xf32>
    %cst_313 = arith.constant 3.200000e+01 : f32
    %676 = vector.broadcast %cst_313 : f32 to vector<16x1xf32>
    %677 = arith.divf %675, %676 : vector<16x1xf32>
    %678 = vector.broadcast %670 : vector<16x1xf32> to vector<16x32xf32>
    %679 = arith.subf %666, %678 : vector<16x32xf32>
    %cst_314 = arith.constant 9.99999974E-6 : f32
    %680 = vector.broadcast %cst_314 : f32 to vector<16x1xf32>
    %681 = arith.addf %677, %680 : vector<16x1xf32>
    %682 = math.rsqrt %681 : vector<16x1xf32>
    %683 = vector.broadcast %682 : vector<16x1xf32> to vector<16x32xf32>
    %684 = arith.mulf %679, %683 : vector<16x32xf32>
    %685 = vector.broadcast %443 : vector<1x32xf32> to vector<16x32xf32>
    %686 = arith.mulf %684, %685 : vector<16x32xf32>
    %687 = vector.broadcast %445 : vector<1x32xf32> to vector<16x32xf32>
    %688 = arith.addf %686, %687 : vector<16x32xf32>
    %cst_315 = arith.constant dense<0.000000e+00> : vector<16x64xf32>
    %689 = tpu.matmul %688, %447, %cst_315 {dimension_numbers = #tpu.dot_dimension_numbers<[1], [0], [0], [1], [0, 0, 1, 1], [], []>} : vector<16x32xf32>, vector<32x64xf32>, vector<16x64xf32> -> vector<16x64xf32>
    %690 = vector.broadcast %449 : vector<1x64xf32> to vector<16x64xf32>
    %691 = arith.addf %689, %690 : vector<16x64xf32>
    %692 = vector.extract_strided_slice %691 {offsets = [0, 0], sizes = [16, 32], strides = [1, 1]} : vector<16x64xf32> to vector<16x32xf32>
    %693 = vector.extract_strided_slice %691 {offsets = [0, 32], sizes = [16, 32], strides = [1, 1]} : vector<16x64xf32> to vector<16x32xf32>
    %694 = arith.negf %693 : vector<16x32xf32>
    %695 = math.exp %694 : vector<16x32xf32>
    %cst_316 = arith.constant 1.000000e+00 : f32
    %696 = vector.broadcast %cst_316 : f32 to vector<16x32xf32>
    %697 = arith.addf %696, %695 : vector<16x32xf32>
    %698 = arith.divf %696, %697 : vector<16x32xf32>
    %699 = arith.mulf %692, %698 : vector<16x32xf32>
    %700 = vector.extract_strided_slice %699 {offsets = [0, 0], sizes = [8, 32], strides = [1, 1]} : vector<16x32xf32> to vector<8x32xf32>
    %cst_317 = arith.constant 0.000000e+00 : f32
    %701 = vector.broadcast %cst_317 : f32 to vector<8x32xf32>
    %cst_318 = arith.constant 0.000000e+00 : f32
    %702 = vector.broadcast %cst_318 : f32 to vector<1x32xf32>
    %703 = vector.extract_strided_slice %700 {offsets = [0, 0], sizes = [7, 32], strides = [1, 1]} : vector<8x32xf32> to vector<7x32xf32>
    %704 = tpu.concatenate %702, %703 in 0 : vector<1x32xf32>, vector<7x32xf32> -> vector<8x32xf32>
    %705 = vector.extract_strided_slice %451 {offsets = [0, 0], sizes = [1, 32], strides = [1, 1]} : vector<3x32xf32> to vector<1x32xf32>
    %706 = vector.shape_cast %705 : vector<1x32xf32> to vector<32xf32>
    %707 = vector.shape_cast %706 : vector<32xf32> to vector<1x32xf32>
    %708 = vector.broadcast %707 : vector<1x32xf32> to vector<8x32xf32>
    %709 = arith.mulf %704, %708 : vector<8x32xf32>
    %710 = arith.addf %701, %709 : vector<8x32xf32>
    %711 = vector.extract_strided_slice %451 {offsets = [1, 0], sizes = [1, 32], strides = [1, 1]} : vector<3x32xf32> to vector<1x32xf32>
    %712 = vector.shape_cast %711 : vector<1x32xf32> to vector<32xf32>
    %713 = vector.shape_cast %712 : vector<32xf32> to vector<1x32xf32>
    %714 = vector.broadcast %713 : vector<1x32xf32> to vector<8x32xf32>
    %715 = arith.mulf %700, %714 : vector<8x32xf32>
    %716 = arith.addf %710, %715 : vector<8x32xf32>
    %717 = vector.extract_strided_slice %700 {offsets = [1, 0], sizes = [7, 32], strides = [1, 1]} : vector<8x32xf32> to vector<7x32xf32>
    %cst_319 = arith.constant 0.000000e+00 : f32
    %718 = vector.broadcast %cst_319 : f32 to vector<1x32xf32>
    %719 = tpu.concatenate %717, %718 in 0 : vector<7x32xf32>, vector<1x32xf32> -> vector<8x32xf32>
    %720 = vector.extract_strided_slice %451 {offsets = [2, 0], sizes = [1, 32], strides = [1, 1]} : vector<3x32xf32> to vector<1x32xf32>
    %721 = vector.shape_cast %720 : vector<1x32xf32> to vector<32xf32>
    %722 = vector.shape_cast %721 : vector<32xf32> to vector<1x32xf32>
    %723 = vector.broadcast %722 : vector<1x32xf32> to vector<8x32xf32>
    %724 = arith.mulf %719, %723 : vector<8x32xf32>
    %725 = arith.addf %716, %724 : vector<8x32xf32>
    %726 = vector.extract_strided_slice %699 {offsets = [8, 0], sizes = [8, 32], strides = [1, 1]} : vector<16x32xf32> to vector<8x32xf32>
    %cst_320 = arith.constant 0.000000e+00 : f32
    %727 = vector.broadcast %cst_320 : f32 to vector<8x32xf32>
    %cst_321 = arith.constant 0.000000e+00 : f32
    %728 = vector.broadcast %cst_321 : f32 to vector<1x32xf32>
    %729 = vector.extract_strided_slice %726 {offsets = [0, 0], sizes = [7, 32], strides = [1, 1]} : vector<8x32xf32> to vector<7x32xf32>
    %730 = tpu.concatenate %728, %729 in 0 : vector<1x32xf32>, vector<7x32xf32> -> vector<8x32xf32>
    %731 = vector.extract_strided_slice %451 {offsets = [0, 0], sizes = [1, 32], strides = [1, 1]} : vector<3x32xf32> to vector<1x32xf32>
    %732 = vector.shape_cast %731 : vector<1x32xf32> to vector<32xf32>
    %733 = vector.shape_cast %732 : vector<32xf32> to vector<1x32xf32>
    %734 = vector.broadcast %733 : vector<1x32xf32> to vector<8x32xf32>
    %735 = arith.mulf %730, %734 : vector<8x32xf32>
    %736 = arith.addf %727, %735 : vector<8x32xf32>
    %737 = vector.extract_strided_slice %451 {offsets = [1, 0], sizes = [1, 32], strides = [1, 1]} : vector<3x32xf32> to vector<1x32xf32>
    %738 = vector.shape_cast %737 : vector<1x32xf32> to vector<32xf32>
    %739 = vector.shape_cast %738 : vector<32xf32> to vector<1x32xf32>
    %740 = vector.broadcast %739 : vector<1x32xf32> to vector<8x32xf32>
    %741 = arith.mulf %726, %740 : vector<8x32xf32>
    %742 = arith.addf %736, %741 : vector<8x32xf32>
    %743 = vector.extract_strided_slice %726 {offsets = [1, 0], sizes = [7, 32], strides = [1, 1]} : vector<8x32xf32> to vector<7x32xf32>
    %cst_322 = arith.constant 0.000000e+00 : f32
    %744 = vector.broadcast %cst_322 : f32 to vector<1x32xf32>
    %745 = tpu.concatenate %743, %744 in 0 : vector<7x32xf32>, vector<1x32xf32> -> vector<8x32xf32>
    %746 = vector.extract_strided_slice %451 {offsets = [2, 0], sizes = [1, 32], strides = [1, 1]} : vector<3x32xf32> to vector<1x32xf32>
    %747 = vector.shape_cast %746 : vector<1x32xf32> to vector<32xf32>
    %748 = vector.shape_cast %747 : vector<32xf32> to vector<1x32xf32>
    %749 = vector.broadcast %748 : vector<1x32xf32> to vector<8x32xf32>
    %750 = arith.mulf %745, %749 : vector<8x32xf32>
    %751 = arith.addf %742, %750 : vector<8x32xf32>
    %752 = tpu.concatenate %725, %751 in 0 : vector<8x32xf32>, vector<8x32xf32> -> vector<16x32xf32>
    %753 = vector.broadcast %453 : vector<1x32xf32> to vector<16x32xf32>
    %754 = arith.addf %752, %753 : vector<16x32xf32>
    %755 = vector.broadcast %455 : vector<1x32xf32> to vector<16x32xf32>
    %756 = arith.mulf %754, %755 : vector<16x32xf32>
    %757 = vector.broadcast %457 : vector<1x32xf32> to vector<16x32xf32>
    %758 = arith.addf %756, %757 : vector<16x32xf32>
    %759 = arith.negf %758 : vector<16x32xf32>
    %760 = math.exp %759 : vector<16x32xf32>
    %cst_323 = arith.constant 1.000000e+00 : f32
    %761 = vector.broadcast %cst_323 : f32 to vector<16x32xf32>
    %762 = arith.addf %761, %760 : vector<16x32xf32>
    %763 = arith.divf %761, %762 : vector<16x32xf32>
    %764 = arith.mulf %758, %763 : vector<16x32xf32>
    %cst_324 = arith.constant dense<0.000000e+00> : vector<16x32xf32>
    %765 = tpu.matmul %764, %459, %cst_324 {dimension_numbers = #tpu.dot_dimension_numbers<[1], [0], [0], [1], [0, 0, 1, 1], [], []>} : vector<16x32xf32>, vector<32x32xf32>, vector<16x32xf32> -> vector<16x32xf32>
    %766 = arith.addf %666, %765 : vector<16x32xf32>
    %767 = vector.broadcast %461 : vector<1x32xf32> to vector<16x32xf32>
    %768 = arith.addf %766, %767 : vector<16x32xf32>
    %cst_325 = arith.constant dense<0.000000e+00> : vector<16xf32>
    %769 = vector.multi_reduction <add>, %768, %cst_325 [1] : vector<16x32xf32> to vector<16xf32>
    %770 = vector.shape_cast %769 : vector<16xf32> to vector<16x1xf32>
    %cst_326 = arith.constant 3.200000e+01 : f32
    %771 = vector.broadcast %cst_326 : f32 to vector<16x1xf32>
    %772 = arith.divf %770, %771 : vector<16x1xf32>
    %773 = vector.broadcast %772 : vector<16x1xf32> to vector<16x32xf32>
    %774 = arith.subf %768, %773 : vector<16x32xf32>
    %775 = arith.mulf %774, %774 : vector<16x32xf32>
    %cst_327 = arith.constant dense<0.000000e+00> : vector<16xf32>
    %776 = vector.multi_reduction <add>, %775, %cst_327 [1] : vector<16x32xf32> to vector<16xf32>
    %777 = vector.shape_cast %776 : vector<16xf32> to vector<16x1xf32>
    %cst_328 = arith.constant 3.200000e+01 : f32
    %778 = vector.broadcast %cst_328 : f32 to vector<16x1xf32>
    %779 = arith.divf %777, %778 : vector<16x1xf32>
    %780 = vector.broadcast %772 : vector<16x1xf32> to vector<16x32xf32>
    %781 = arith.subf %768, %780 : vector<16x32xf32>
    %cst_329 = arith.constant 9.99999974E-6 : f32
    %782 = vector.broadcast %cst_329 : f32 to vector<16x1xf32>
    %783 = arith.addf %779, %782 : vector<16x1xf32>
    %784 = math.rsqrt %783 : vector<16x1xf32>
    %785 = vector.broadcast %784 : vector<16x1xf32> to vector<16x32xf32>
    %786 = arith.mulf %781, %785 : vector<16x32xf32>
    %787 = vector.broadcast %463 : vector<1x32xf32> to vector<16x32xf32>
    %788 = arith.mulf %786, %787 : vector<16x32xf32>
    %789 = vector.broadcast %465 : vector<1x32xf32> to vector<16x32xf32>
    %790 = arith.addf %788, %789 : vector<16x32xf32>
    %cst_330 = arith.constant dense<0.000000e+00> : vector<16x32xf32>
    %791 = tpu.matmul %790, %467, %cst_330 {dimension_numbers = #tpu.dot_dimension_numbers<[1], [0], [0], [1], [0, 0, 1, 1], [], []>} : vector<16x32xf32>, vector<32x32xf32>, vector<16x32xf32> -> vector<16x32xf32>
    %792 = vector.broadcast %469 : vector<1x32xf32> to vector<16x32xf32>
    %793 = arith.addf %791, %792 : vector<16x32xf32>
    %794 = arith.negf %793 : vector<16x32xf32>
    %795 = math.exp %794 : vector<16x32xf32>
    %cst_331 = arith.constant 1.000000e+00 : f32
    %796 = vector.broadcast %cst_331 : f32 to vector<16x32xf32>
    %797 = arith.addf %796, %795 : vector<16x32xf32>
    %798 = arith.divf %796, %797 : vector<16x32xf32>
    %799 = arith.mulf %793, %798 : vector<16x32xf32>
    %cst_332 = arith.constant dense<0.000000e+00> : vector<16x32xf32>
    %800 = tpu.matmul %799, %471, %cst_332 {dimension_numbers = #tpu.dot_dimension_numbers<[1], [0], [0], [1], [0, 0, 1, 1], [], []>} : vector<16x32xf32>, vector<32x32xf32>, vector<16x32xf32> -> vector<16x32xf32>
    %801 = vector.broadcast %473 : vector<1x32xf32> to vector<16x32xf32>
    %802 = arith.addf %800, %801 : vector<16x32xf32>
    %cst_333 = arith.constant 5.000000e-01 : f32
    %803 = vector.broadcast %cst_333 : f32 to vector<16x32xf32>
    %804 = arith.mulf %803, %802 : vector<16x32xf32>
    %805 = arith.addf %768, %804 : vector<16x32xf32>
    %cst_334 = arith.constant dense<0.000000e+00> : vector<16xf32>
    %806 = vector.multi_reduction <add>, %805, %cst_334 [1] : vector<16x32xf32> to vector<16xf32>
    %807 = vector.shape_cast %806 : vector<16xf32> to vector<16x1xf32>
    %cst_335 = arith.constant 3.200000e+01 : f32
    %808 = vector.broadcast %cst_335 : f32 to vector<16x1xf32>
    %809 = arith.divf %807, %808 : vector<16x1xf32>
    %810 = vector.broadcast %809 : vector<16x1xf32> to vector<16x32xf32>
    %811 = arith.subf %805, %810 : vector<16x32xf32>
    %812 = arith.mulf %811, %811 : vector<16x32xf32>
    %cst_336 = arith.constant dense<0.000000e+00> : vector<16xf32>
    %813 = vector.multi_reduction <add>, %812, %cst_336 [1] : vector<16x32xf32> to vector<16xf32>
    %814 = vector.shape_cast %813 : vector<16xf32> to vector<16x1xf32>
    %cst_337 = arith.constant 3.200000e+01 : f32
    %815 = vector.broadcast %cst_337 : f32 to vector<16x1xf32>
    %816 = arith.divf %814, %815 : vector<16x1xf32>
    %817 = vector.broadcast %809 : vector<16x1xf32> to vector<16x32xf32>
    %818 = arith.subf %805, %817 : vector<16x32xf32>
    %cst_338 = arith.constant 9.99999974E-6 : f32
    %819 = vector.broadcast %cst_338 : f32 to vector<16x1xf32>
    %820 = arith.addf %816, %819 : vector<16x1xf32>
    %821 = math.rsqrt %820 : vector<16x1xf32>
    %822 = vector.broadcast %821 : vector<16x1xf32> to vector<16x32xf32>
    %823 = arith.mulf %818, %822 : vector<16x32xf32>
    %824 = vector.broadcast %475 : vector<1x32xf32> to vector<16x32xf32>
    %825 = arith.mulf %823, %824 : vector<16x32xf32>
    %826 = vector.broadcast %477 : vector<1x32xf32> to vector<16x32xf32>
    %827 = arith.addf %825, %826 : vector<16x32xf32>
    %c0_339 = arith.constant 0 : index
    %c0_340 = arith.constant 0 : index
    %828 = vector.load %arg3[%c0_339, %c0_340] : memref<8x32xf32, #tpu.memory_space<vmem>>, vector<8x32xf32>
    %c0_341 = arith.constant 0 : index
    %c0_342 = arith.constant 0 : index
    %829 = vector.load %arg4[%c0_341, %c0_342] : memref<1x1xf32, #tpu.memory_space<vmem>>, vector<1x1xf32>
    %830 = vector.extract_strided_slice %827 {offsets = [0, 0], sizes = [8, 32], strides = [1, 1]} : vector<16x32xf32> to vector<8x32xf32>
    %831 = arith.mulf %830, %828 : vector<8x32xf32>
    %cst_343 = arith.constant dense<0.000000e+00> : vector<8xf32>
    %832 = vector.multi_reduction <add>, %831, %cst_343 [1] : vector<8x32xf32> to vector<8xf32>
    %833 = vector.shape_cast %832 : vector<8xf32> to vector<8x1xf32>
    %cst_344 = arith.constant dense<0.000000e+00> : vector<1xf32>
    %834 = vector.multi_reduction <add>, %833, %cst_344 [0] : vector<8x1xf32> to vector<1xf32>
    %835 = vector.shape_cast %834 : vector<1xf32> to vector<1x1xf32>
    %836 = vector.extract_strided_slice %827 {offsets = [8, 0], sizes = [8, 32], strides = [1, 1]} : vector<16x32xf32> to vector<8x32xf32>
    %837 = arith.mulf %836, %828 : vector<8x32xf32>
    %cst_345 = arith.constant dense<0.000000e+00> : vector<8xf32>
    %838 = vector.multi_reduction <add>, %837, %cst_345 [1] : vector<8x32xf32> to vector<8xf32>
    %839 = vector.shape_cast %838 : vector<8xf32> to vector<8x1xf32>
    %cst_346 = arith.constant dense<0.000000e+00> : vector<1xf32>
    %840 = vector.multi_reduction <add>, %839, %cst_346 [0] : vector<8x1xf32> to vector<1xf32>
    %841 = vector.shape_cast %840 : vector<1xf32> to vector<1x1xf32>
    %842 = tpu.concatenate %835, %841 in 0 : vector<1x1xf32>, vector<1x1xf32> -> vector<2x1xf32>
    %843 = vector.broadcast %829 : vector<1x1xf32> to vector<2x1xf32>
    %844 = arith.addf %842, %843 : vector<2x1xf32>
    %c0_347 = arith.constant 0 : index
    %c0_348 = arith.constant 0 : index
    %845 = vector.load %arg35[%c0_347, %c0_348] : memref<2x1xf32, #tpu.memory_space<vmem>>, vector<2x1xf32>
    tpu.vector_store %arg35[%c0_347, %c0_348], %844 {strides = array<i32>} : memref<2x1xf32, #tpu.memory_space<vmem>>, vector<2x1xf32>,
    return
  }
}

</mosaic_0001>

<bundles_post_ra>
// kernel: tpu_custom_call.1
= control target key start
LH: loop header
LB: loop body
LE: loop exit
PB: predicated region body
PF: predicated region fallthrough
CT: control target
= control target key end

     0   :  { %s7267_s6 = smov 1   ;;  %s7268_s10 = smov 2   ;;  %s8338_s0 = inlined_call_operand.smem [shape: u32[36], index: -1, kind: input, shape index: {}] }
   0x1   :  { %s7354_s5 = sld [smem:[%s8338_s0]]   ;;  %s7269_s14 = smov 3  }
   0x2   :  { %s7359_s9 = sld [smem:[%s8338_s0 + %s7267_s6]]   ;;  %s7270_s18 = smov 4  }
   0x3   :  { %s7364_s13 = sld [smem:[%s8338_s0 + %s7268_s10]]   ;;  %s7271_s22 = smov 5  }
   0x4   :  { %s7369_s17 = sld [smem:[%s8338_s0 + %s7269_s14]]   ;;  %s7272_s26 = smov 6  }
   0x5   :  { %s5584_s21 = sld [smem:[%s8338_s0 + %s7270_s18]]   ;;  %s7273_s30 = smov 7  }
   0x6   :  { %s7377_s25 = sld [smem:[%s8338_s0 + %s7271_s22]]   ;;  %s7274_s4 = smov 8  }
   0x7   :  { %s7382_s29 = sld [smem:[%s8338_s0 + %s7272_s26]]   ;;  %s7275_s10 = smov 9  }
   0x8   :  { %s7387_s3 = sld [smem:[%s8338_s0 + %s7273_s30]]   ;;  %s7276_s15 = smov 10  }
   0x9   :  { %8355 = sst [smem:[#allocation57_spill]] %s7364_s13  ;;  %s7277_s20 = smov 11  }
   0xa   :  { %s7392_s8 = sld [smem:[%s8338_s0 + %s7274_s4]]   ;;  %s7278_s26 = smov 12  }
   0xb   :  { %s7397_s14 = sld [smem:[%s8338_s0 + %s7275_s10]]   ;;  %v76_v0 = vstv %s5584_s21  ;;  %s7279_s1 = smov 13  }
   0xc   :  { %8356 = sst [smem:[#allocation58_spill]] %s7377_s25  ;;  %77 = vst [vmem:[#allocation2] sm:$0x1] %v76_v0  ;;  %s7280_s21 = smov 14  }
   0xd   :  { %s7402_s19 = sld [smem:[%s8338_s0 + %s7276_s15]]   ;;  %s7281_s12 = smov 15  }
   0xe   :  { %8357 = sst [smem:[#allocation59_spill]] %s7387_s3  ;;  %s7283_s27 = smov 17  }
   0xf   :  { %s7407_s24 = sld [smem:[%s8338_s0 + %s7277_s20]]   ;;  %s7282_s20 = smov 16  }
  0x10   :  { %s7412_s30 = sld [smem:[%s8338_s0 + %s7278_s26]]   ;;  %s7284_s4 = smov 18  }
  0x11   :  { %8358 = sst [smem:[#allocation60_spill]] %s7397_s14 }
  0x12   :  { %s7417_s6 = sld [smem:[%s8338_s0 + %s7279_s1]]  }
  0x13   :  { %s7422_s11 = sld [smem:[%s8338_s0 + %s7280_s21]]  }
  0x14   :  { %s7427_s18 = sld [smem:[%s8338_s0 + %s7281_s12]]   ;;  %s7285_s12 = smov 19  }
  0x15   :  { %8359 = sst [smem:[#allocation61_spill]] %s7407_s24 }
  0x16   :  { %s7432_s26 = sld [smem:[%s8338_s0 + %s7282_s20]]   ;;  %s7286_s20 = smov 20  }
  0x17   :  { %s7437_s2 = sld [smem:[%s8338_s0 + %s7283_s27]]   ;;  %s7287_s27 = smov 21  }
  0x18   :  { %8360 = sst [smem:[#allocation62_spill]] %s7417_s6 }
  0x19   :  { %s7442_s10 = sld [smem:[%s8338_s0 + %s7284_s4]]   ;;  %s7288_s4 = smov 22  }
  0x1a   :  { %8361 = sst [smem:[#allocation63_spill]] %s7427_s18 }
  0x1b   :  { %s7447_s18 = sld [smem:[%s8338_s0 + %s7285_s12]]   ;;  %s7289_s12 = smov 23  }
  0x1c   :  { %8362 = sst [smem:[#allocation64_spill]] %s7432_s26 }
  0x1d   :  { %s7452_s25 = sld [smem:[%s8338_s0 + %s7286_s20]]   ;;  %s7290_s20 = smov 24  }
  0x1e   :  { %s7457_s13 = sld [smem:[%s8338_s0 + %s7287_s27]]   ;;  %s7291_s27 = smov 25  }
  0x1f   :  { %8363 = sst [smem:[#allocation65_spill]] %s7442_s10 }
  0x20   :  { %s7462_s10 = sld [smem:[%s8338_s0 + %s7288_s4]]   ;;  %s7292_s4 = smov 26  }
  0x21   :  { %s7467_s26 = sld [smem:[%s8338_s0 + %s7289_s12]]   ;;  %s7293_s12 = smov 27  }
  0x22   :  { %s7482_s6 = sld [smem:[%s8338_s0 + %s7292_s4]]   ;;  %s7296_s4 = smov 30  }
  0x23   :  { %8364 = sst [smem:[#allocation66_spill]] %s7452_s25 }
  0x24   :  { %8365 = sst [smem:[#allocation67_spill]] %s7457_s13 }
  0x25   :  { %s7472_s25 = sld [smem:[%s8338_s0 + %s7290_s20]]   ;;  %s7294_s20 = smov 28  }
  0x26   :  { %s7477_s13 = sld [smem:[%s8338_s0 + %s7291_s27]]   ;;  %s7295_s27 = smov 29  }
  0x27   :  { %8366 = sst [smem:[#allocation68_spill]] %s7467_s26 }
  0x28   :  { %s7487_s26 = sld [smem:[%s8338_s0 + %s7293_s12]]   ;;  %s7297_s12 = smov 31  }
  0x29   :  { %s7492_s24 = sld [smem:[%s8338_s0 + %s7294_s20]]   ;;  %s7298_s20 = smov 32  }
  0x2a   :  { %s7502_s14 = sld [smem:[%s8338_s0 + %s7296_s4]]   ;;  %s7300_s4 = smov 34  }
  0x2b   :  { %s7512_s3 = sld [smem:[%s8338_s0 + %s7298_s20]]  }
  0x2c   :  { %8367 = sst [smem:[#allocation69_spill]] %s7477_s13 }
  0x2d   :  { %s7497_s13 = sld [smem:[%s8338_s0 + %s7295_s27]]   ;;  %s7299_s27 = smov 33  }
  0x2e   :  { %8368 = sst [smem:[#allocation70_spill]] %s7487_s26 }
  0x2f   :  { %s7507_s26 = sld [smem:[%s8338_s0 + %s7297_s12]]   ;;  %s7301_s12 = smov 35  }
  0x30   :  { %8370 = sst [smem:[#allocation72_spill]] %s7502_s14 }
  0x31   :  { %s7522_s14 = sld [smem:[%s8338_s0 + %s7300_s4]]  }
  0x33   :  { %8369 = sst [smem:[#allocation71_spill]] %s7497_s13 }
  0x34   :  { %s7517_s13 = sld [smem:[%s8338_s0 + %s7299_s27]]  }
  0x35   :  { %8371 = sst [smem:[#allocation73_spill]] %s7507_s26 }
  0x36   :  { %s7527_s26 = sld [smem:[%s8338_s0 + %s7301_s12]]  }
  0x37   :  { %78 = vsyncpa [#allocation4], 0 }
  0x38   :  { %79 = vsyncpa [#allocation6], 0 }
  0x39   :  { %80 = vsyncpa [#allocation9], 0 }
  0x3a   :  { %81 = vsyncpa [#allocation12], 0 }
  0x3b   :  { %82 = vsyncpa [#allocation15], 0 }
  0x3c   :  { %83 = vsyncpa [#allocation18], 0 }
  0x3d   :  { %84 = vsyncpa [#allocation21], 0 }
  0x3e   :  { %85 = vsyncpa [#allocation24], 0 }
  0x3f   :  { %86 = vsyncpa [#allocation27], 0 }
  0x40   :  { %87 = vsyncpa [#allocation30], 0 }
  0x41   :  { %88 = vsyncpa [#allocation33], 0 }
  0x42   :  { %89 = vsyncpa [#allocation36], 0 }
  0x43   :  { %90 = vsyncpa [#allocation39], 0 }
  0x44   :  { %91 = vsyncpa [#allocation42], 0  ;;  %s7302_s20 = smov [#allocation5]   ;;  %s7303_s22 = smov [#allocation8]  }
  0x45   :  { %s109_s0 = sshll.u32 %s7302_s20, 4  ;;  %s137_s23 = sshll.u32 %s7303_s22, 4  ;;  %s110_s0 = int_to_ptr.vmem [resolvable:$true] %s109_s0  ;;  %s7529_s23 = int_to_ptr.vmem [resolvable:$true] %s137_s23 }
  0x46   :  { %s6667_s27 = scalar_lea.hbm %s7359_s9, 512 }
  0x47   :  { %p6668_p0 = scmp.ne.s32.totalorder %s7359_s9, %s6667_s27  ;;  %p6671_p1 = scmp.lt.u32.totalorder %s6667_s27, %s7359_s9 }
  0x49   :  { %p6673_p2 = pnand %p6671_p1, %p6668_p0 }
  0x4b   :  { %6676 = shalt.err (!%p6673_p2)
}
  0x4c   :  { %s6677_s28 = scalar_lea.vmem %s110_s0, 512  ;;  %p6682_p4 = scmp.lt.s32.totalorder %s110_s0, %s110_s0 }
  0x4d   :  { %p6678_p3 = scmp.ne.s32.totalorder %s110_s0, %s6677_s28  ;;  %p6683_p5 = scmp.lt.s32.totalorder %s6677_s28, %s6677_s28 }
  0x4f   :  { %p6684_p6 = por %p6683_p5, %p6682_p4 }
  0x51   :  { %p6685_p7 = pnand %p6684_p6, %p6678_p3 }
  0x53   :  { %6688 = shalt.err (!%p6685_p7)
}
  0x54   :  { %s7304_s1 = smov 128   ;;  %s7305_s4 = smov 8  }
  0x55   :  { %115 = dma.hbm_to_vmem [thread:$0]  %s7359_s9, 512, %s110_s0, [#allocation6], %s7304_s1, %s7304_s1, %s7305_s4  }
  0x56   :  { %s6689_s21 = scalar_lea.hbm %s7382_s29, 32 }
  0x57   :  { %p6690_p8 = scmp.ne.s32.totalorder %s7382_s29, %s6689_s21  ;;  %p6693_p9 = scmp.lt.u32.totalorder %s6689_s21, %s7382_s29 }
  0x59   :  { %p6695_p10 = pnand %p6693_p9, %p6690_p8 }
  0x5b   :  { %6698 = shalt.err (!%p6695_p10)
}
  0x5c   :  { %s6699_s7 = scalar_lea.vmem %s7529_s23, 32  ;;  %p6704_p12 = scmp.lt.s32.totalorder %s7529_s23, %s7529_s23 }
  0x5d   :  { %p6700_p11 = scmp.ne.s32.totalorder %s7529_s23, %s6699_s7  ;;  %p6705_p13 = scmp.lt.s32.totalorder %s6699_s7, %s6699_s7 }
  0x5f   :  { %p6706_p0 = por %p6705_p13, %p6704_p12 }
  0x61   :  { %p6707_p1 = pnand %p6706_p0, %p6700_p11 }
  0x63   :  { %6710 = shalt.err (!%p6707_p1)
}
  0x64   :  { %s7306_s12 = smov 16   ;;  %s7307_s9 = smov 1  }
  0x65   :  { %143 = dma.hbm_to_vmem [thread:$0]  %s7382_s29, 32, %s7529_s23, [#allocation9], %s7306_s12, %s7306_s12, %s7307_s9  }
  0x66   :  { %s7308_s15 = smov [#allocation11]   ;;  %s7309_s20 = smov [#allocation14]  }
  0x67   :  { %s161_s16 = sshll.u32 %s7308_s15, 4  ;;  %s185_s0 = sshll.u32 %s7309_s20, 4  ;;  %s162_s16 = int_to_ptr.vmem [resolvable:$true] %s161_s16  ;;  %s7550_s0 = int_to_ptr.vmem [resolvable:$true] %s185_s0 }
  0x68   :  { %s6711_s22 = scalar_lea.hbm %s7392_s8, 32 }
  0x69   :  { %p6712_p2 = scmp.ne.s32.totalorder %s7392_s8, %s6711_s22  ;;  %p6715_p3 = scmp.lt.u32.totalorder %s6711_s22, %s7392_s8 }
  0x6b   :  { %p6717_p4 = pnand %p6715_p3, %p6712_p2 }
  0x6d   :  { %6720 = shalt.err (!%p6717_p4)
}
  0x6e   :  { %s6721_s27 = scalar_lea.vmem %s162_s16, 32  ;;  %p6726_p6 = scmp.lt.s32.totalorder %s162_s16, %s162_s16 }
  0x6f   :  { %p6722_p5 = scmp.ne.s32.totalorder %s162_s16, %s6721_s27  ;;  %p6727_p7 = scmp.lt.s32.totalorder %s6721_s27, %s6721_s27 }
  0x71   :  { %p6728_p8 = por %p6727_p7, %p6726_p6 }
  0x73   :  { %p6729_p9 = pnand %p6728_p8, %p6722_p5 }
  0x75   :  { %6732 = shalt.err (!%p6729_p9)
}
  0x76   :  { %167 = dma.hbm_to_vmem [thread:$0]  %s7392_s8, 32, %s162_s16, [#allocation12], %s7306_s12, %s7306_s12, %s7307_s9  }
  0x77   :  { %s6733_s29 = scalar_lea.hbm %s7402_s19, 32 }
  0x78   :  { %p6734_p10 = scmp.ne.s32.totalorder %s7402_s19, %s6733_s29  ;;  %p6737_p11 = scmp.lt.u32.totalorder %s6733_s29, %s7402_s19 }
  0x7a   :  { %p6739_p12 = pnand %p6737_p11, %p6734_p10 }
  0x7c   :  { %6742 = shalt.err (!%p6739_p12)
}
  0x7d   :  { %s6743_s23 = scalar_lea.vmem %s7550_s0, 32  ;;  %p6748_p0 = scmp.lt.s32.totalorder %s7550_s0, %s7550_s0 }
  0x7e   :  { %p6744_p13 = scmp.ne.s32.totalorder %s7550_s0, %s6743_s23  ;;  %p6749_p1 = scmp.lt.s32.totalorder %s6743_s23, %s6743_s23 }
  0x80   :  { %p6750_p2 = por %p6749_p1, %p6748_p0 }
  0x82   :  { %p6751_p3 = pnand %p6750_p2, %p6744_p13 }
  0x84   :  { %6754 = shalt.err (!%p6751_p3)
}
  0x85   :  { %191 = dma.hbm_to_vmem [thread:$0]  %s7402_s19, 32, %s7550_s0, [#allocation15], %s7306_s12, %s7306_s12, %s7307_s9  }
  0x86   :  { %s7310_s8 = smov [#allocation17]   ;;  %s7311_s21 = smov [#allocation20]  }
  0x87   :  { %s209_s28 = sshll.u32 %s7310_s8, 4  ;;  %s233_s7 = sshll.u32 %s7311_s21, 4  ;;  %s210_s28 = int_to_ptr.vmem [resolvable:$true] %s209_s28  ;;  %s7571_s7 = int_to_ptr.vmem [resolvable:$true] %s233_s7 }
  0x88   :  { %s6755_s15 = scalar_lea.hbm %s7412_s30, 32 }
  0x89   :  { %p6756_p4 = scmp.ne.s32.totalorder %s7412_s30, %s6755_s15  ;;  %p6759_p5 = scmp.lt.u32.totalorder %s6755_s15, %s7412_s30 }
  0x8b   :  { %p6761_p6 = pnand %p6759_p5, %p6756_p4 }
  0x8d   :  { %6764 = shalt.err (!%p6761_p6)
}
  0x8e   :  { %s6765_s16 = scalar_lea.vmem %s210_s28, 32  ;;  %p6770_p8 = scmp.lt.s32.totalorder %s210_s28, %s210_s28 }
  0x8f   :  { %p6766_p7 = scmp.ne.s32.totalorder %s210_s28, %s6765_s16  ;;  %p6771_p9 = scmp.lt.s32.totalorder %s6765_s16, %s6765_s16 }
  0x91   :  { %p6772_p10 = por %p6771_p9, %p6770_p8 }
  0x93   :  { %p6773_p11 = pnand %p6772_p10, %p6766_p7 }
  0x95   :  { %6776 = shalt.err (!%p6773_p11)
}
  0x96   :  { %215 = dma.hbm_to_vmem [thread:$0]  %s7412_s30, 32, %s210_s28, [#allocation18], %s7306_s12, %s7306_s12, %s7307_s9  }
  0x97   :  { %s6777_s19 = scalar_lea.hbm %s7422_s11, 32 }
  0x98   :  { %p6778_p12 = scmp.ne.s32.totalorder %s7422_s11, %s6777_s19  ;;  %p6781_p13 = scmp.lt.u32.totalorder %s6777_s19, %s7422_s11 }
  0x9a   :  { %p6783_p0 = pnand %p6781_p13, %p6778_p12 }
  0x9c   :  { %6786 = shalt.err (!%p6783_p0)
}
  0x9d   :  { %s6787_s20 = scalar_lea.vmem %s7571_s7, 32  ;;  %p6792_p2 = scmp.lt.s32.totalorder %s7571_s7, %s7571_s7 }
  0x9e   :  { %p6788_p1 = scmp.ne.s32.totalorder %s7571_s7, %s6787_s20  ;;  %p6793_p3 = scmp.lt.s32.totalorder %s6787_s20, %s6787_s20 }
  0xa0   :  { %p6794_p4 = por %p6793_p3, %p6792_p2 }
  0xa2   :  { %p6795_p5 = pnand %p6794_p4, %p6788_p1 }
  0xa4   :  { %6798 = shalt.err (!%p6795_p5)
}
  0xa5   :  { %239 = dma.hbm_to_vmem [thread:$0]  %s7422_s11, 32, %s7571_s7, [#allocation21], %s7306_s12, %s7306_s12, %s7307_s9  }
  0xa6   :  { %s7312_s30 = smov [#allocation23]   ;;  %s7313_s22 = smov [#allocation26]  }
  0xa7   :  { %s259_s0 = sshll.u32 %s7312_s30, 4  ;;  %s283_s27 = sshll.u32 %s7313_s22, 4  ;;  %s260_s0 = int_to_ptr.vmem [resolvable:$true] %s259_s0  ;;  %s7592_s27 = int_to_ptr.vmem [resolvable:$true] %s283_s27 }
  0xa8   :  { %s6799_s29 = scalar_lea.hbm %s7437_s2, 32 }
  0xa9   :  { %p6800_p6 = scmp.ne.s32.totalorder %s7437_s2, %s6799_s29  ;;  %p6803_p7 = scmp.lt.u32.totalorder %s6799_s29, %s7437_s2 }
  0xab   :  { %p6805_p8 = pnand %p6803_p7, %p6800_p6 }
  0xad   :  { %6808 = shalt.err (!%p6805_p8)
}
  0xae   :  { %s6809_s23 = scalar_lea.vmem %s260_s0, 32  ;;  %p6814_p10 = scmp.lt.s32.totalorder %s260_s0, %s260_s0 }
  0xaf   :  { %p6810_p9 = scmp.ne.s32.totalorder %s260_s0, %s6809_s23  ;;  %p6815_p11 = scmp.lt.s32.totalorder %s6809_s23, %s6809_s23 }
  0xb1   :  { %p6816_p12 = por %p6815_p11, %p6814_p10 }
  0xb3   :  { %p6817_p13 = pnand %p6816_p12, %p6810_p9 }
  0xb5   :  { %6820 = shalt.err (!%p6817_p13)
}
  0xb6   :  { %265 = dma.hbm_to_vmem [thread:$0]  %s7437_s2, 32, %s260_s0, [#allocation24], %s7306_s12, %s7306_s12, %s7307_s9  }
  0xb7   :  { %s6821_s11 = scalar_lea.hbm %s7447_s18, 1024 }
  0xb8   :  { %p6822_p0 = scmp.ne.s32.totalorder %s7447_s18, %s6821_s11  ;;  %p6825_p1 = scmp.lt.u32.totalorder %s6821_s11, %s7447_s18 }
  0xba   :  { %p6827_p2 = pnand %p6825_p1, %p6822_p0 }
  0xbc   :  { %6830 = shalt.err (!%p6827_p2)
}
  0xbd   :  { %s6831_s8 = scalar_lea.vmem %s7592_s27, 1024  ;;  %p6836_p4 = scmp.lt.s32.totalorder %s7592_s27, %s7592_s27 }
  0xbe   :  { %p6832_p3 = scmp.ne.s32.totalorder %s7592_s27, %s6831_s8  ;;  %p6837_p5 = scmp.lt.s32.totalorder %s6831_s8, %s6831_s8 }
  0xc0   :  { %p6838_p6 = por %p6837_p5, %p6836_p4 }
  0xc2   :  { %p6839_p7 = pnand %p6838_p6, %p6832_p3 }
  0xc4   :  { %6842 = shalt.err (!%p6839_p7)
}
  0xc5   :  { %289 = dma.hbm_to_vmem [thread:$0]  %s7447_s18, 1024, %s7592_s27, [#allocation27], %s7304_s1, %s7304_s1, %s7305_s4  }
  0xc6   :  { %s7314_s2 = smov [#allocation29]   ;;  %s7315_s21 = smov [#allocation32]  }
  0xc7   :  { %s309_s28 = sshll.u32 %s7314_s2, 4  ;;  %s333_s7 = sshll.u32 %s7315_s21, 4  ;;  %s310_s28 = int_to_ptr.vmem [resolvable:$true] %s309_s28  ;;  %s7613_s7 = int_to_ptr.vmem [resolvable:$true] %s333_s7 }
  0xc8   :  { %s6843_s15 = scalar_lea.hbm %s7462_s10, 32 }
  0xc9   :  { %p6844_p8 = scmp.ne.s32.totalorder %s7462_s10, %s6843_s15  ;;  %p6847_p9 = scmp.lt.u32.totalorder %s6843_s15, %s7462_s10 }
  0xcb   :  { %p6849_p10 = pnand %p6847_p9, %p6844_p8 }
  0xcd   :  { %6852 = shalt.err (!%p6849_p10)
}
  0xce   :  { %s6853_s16 = scalar_lea.vmem %s310_s28, 32  ;;  %p6858_p12 = scmp.lt.s32.totalorder %s310_s28, %s310_s28 }
  0xcf   :  { %p6854_p11 = scmp.ne.s32.totalorder %s310_s28, %s6853_s16  ;;  %p6859_p13 = scmp.lt.s32.totalorder %s6853_s16, %s6853_s16 }
  0xd1   :  { %p6860_p0 = por %p6859_p13, %p6858_p12 }
  0xd3   :  { %p6861_p1 = pnand %p6860_p0, %p6854_p11 }
  0xd5   :  { %6864 = shalt.err (!%p6861_p1)
}
  0xd6   :  { %315 = dma.hbm_to_vmem [thread:$0]  %s7462_s10, 32, %s310_s28, [#allocation30], %s7306_s12, %s7306_s12, %s7307_s9  }
  0xd7   :  { %s6865_s18 = scalar_lea.hbm %s7472_s25, 32 }
  0xd8   :  { %p6866_p2 = scmp.ne.s32.totalorder %s7472_s25, %s6865_s18  ;;  %p6869_p3 = scmp.lt.u32.totalorder %s6865_s18, %s7472_s25 }
  0xda   :  { %p6871_p4 = pnand %p6869_p3, %p6866_p2 }
  0xdc   :  { %6874 = shalt.err (!%p6871_p4)
}
  0xdd   :  { %s6875_s19 = scalar_lea.vmem %s7613_s7, 32  ;;  %p6880_p6 = scmp.lt.s32.totalorder %s7613_s7, %s7613_s7 }
  0xde   :  { %p6876_p5 = scmp.ne.s32.totalorder %s7613_s7, %s6875_s19  ;;  %p6881_p7 = scmp.lt.s32.totalorder %s6875_s19, %s6875_s19 }
  0xe0   :  { %p6882_p8 = por %p6881_p7, %p6880_p6 }
  0xe2   :  { %p6883_p9 = pnand %p6882_p8, %p6876_p5 }
  0xe4   :  { %6886 = shalt.err (!%p6883_p9)
}
  0xe5   :  { %339 = dma.hbm_to_vmem [thread:$0]  %s7472_s25, 32, %s7613_s7, [#allocation33], %s7306_s12, %s7306_s12, %s7307_s9  }
  0xe6   :  { %s7316_s10 = smov [#allocation35]   ;;  %s7317_s30 = smov [#allocation38]  }
  0xe7   :  { %s357_s20 = sshll.u32 %s7316_s10, 4  ;;  %s381_s0 = sshll.u32 %s7317_s30, 4  ;;  %s358_s20 = int_to_ptr.vmem [resolvable:$true] %s357_s20  ;;  %s7634_s0 = int_to_ptr.vmem [resolvable:$true] %s381_s0 }
  0xe8   :  { %s6887_s22 = scalar_lea.hbm %s7482_s6, 32 }
  0xe9   :  { %p6888_p10 = scmp.ne.s32.totalorder %s7482_s6, %s6887_s22  ;;  %p6891_p11 = scmp.lt.u32.totalorder %s6887_s22, %s7482_s6 }
  0xeb   :  { %p6893_p12 = pnand %p6891_p11, %p6888_p10 }
  0xed   :  { %6896 = shalt.err (!%p6893_p12)
}
  0xee   :  { %s6897_s27 = scalar_lea.vmem %s358_s20, 32  ;;  %p6902_p0 = scmp.lt.s32.totalorder %s358_s20, %s358_s20 }
  0xef   :  { %p6898_p13 = scmp.ne.s32.totalorder %s358_s20, %s6897_s27  ;;  %p6903_p1 = scmp.lt.s32.totalorder %s6897_s27, %s6897_s27 }
  0xf1   :  { %p6904_p2 = por %p6903_p1, %p6902_p0 }
  0xf3   :  { %p6905_p3 = pnand %p6904_p2, %p6898_p13 }
  0xf5   :  { %6908 = shalt.err (!%p6905_p3)
}
  0xf6   :  { %363 = dma.hbm_to_vmem [thread:$0]  %s7482_s6, 32, %s358_s20, [#allocation36], %s7306_s12, %s7306_s12, %s7307_s9  }
  0xf7   :  { %s6909_s25 = scalar_lea.hbm %s7492_s24, 32 }
  0xf8   :  { %p6910_p4 = scmp.ne.s32.totalorder %s7492_s24, %s6909_s25  ;;  %p6913_p5 = scmp.lt.u32.totalorder %s6909_s25, %s7492_s24 }
  0xfa   :  { %p6915_p6 = pnand %p6913_p5, %p6910_p4 }
  0xfc   :  { %6918 = shalt.err (!%p6915_p6)
}
  0xfd   :  { %s6919_s29 = scalar_lea.vmem %s7634_s0, 32  ;;  %p6924_p8 = scmp.lt.s32.totalorder %s7634_s0, %s7634_s0 }
  0xfe   :  { %p6920_p7 = scmp.ne.s32.totalorder %s7634_s0, %s6919_s29  ;;  %p6925_p9 = scmp.lt.s32.totalorder %s6919_s29, %s6919_s29 }
 0x100   :  { %p6926_p10 = por %p6925_p9, %p6924_p8 }
 0x102   :  { %p6927_p11 = pnand %p6926_p10, %p6920_p7 }
 0x104   :  { %6930 = shalt.err (!%p6927_p11)
}
 0x105   :  { %387 = dma.hbm_to_vmem [thread:$0]  %s7492_s24, 32, %s7634_s0, [#allocation39], %s7306_s12, %s7306_s12, %s7307_s9  }
 0x106   :  { %s7318_s6 = smov [#allocation3]   ;;  %s7319_s11 = smov [#allocation7]  }
 0x107   :  { %s97_s23 = sshll.u32 %s7318_s6, 4  ;;  %s124_s8 = sshll.u32 %s7319_s11, 4  ;;  %s98_s23 = int_to_ptr.vmem [resolvable:$true] %s97_s23  ;;  %s125_s8 = int_to_ptr.vmem [resolvable:$true] %s124_s8 }
 0x108   :  { %s6931_s2 = scalar_lea.hbm %s7354_s5, 256 }
 0x109   :  { %p6932_p12 = scmp.ne.s32.totalorder %s7354_s5, %s6931_s2  ;;  %p6935_p13 = scmp.lt.u32.totalorder %s6931_s2, %s7354_s5 }
 0x10b   :  { %p6937_p0 = pnand %p6935_p13, %p6932_p12 }
 0x10d   :  { %6940 = shalt.err (!%p6937_p0)
}
 0x10e   :  { %s6941_s28 = scalar_lea.vmem %s98_s23, 256  ;;  %p6946_p2 = scmp.lt.s32.totalorder %s98_s23, %s98_s23 }
 0x10f   :  { %p6942_p1 = scmp.ne.s32.totalorder %s98_s23, %s6941_s28  ;;  %p6947_p3 = scmp.lt.s32.totalorder %s6941_s28, %s6941_s28 }
 0x111   :  { %p6948_p4 = por %p6947_p3, %p6946_p2 }
 0x113   :  { %p6949_p5 = pnand %p6948_p4, %p6942_p1 }
 0x115   :  { %6952 = shalt.err (!%p6949_p5)
}
 0x116   :  { %103 = dma.hbm_to_vmem [thread:$0]  %s7354_s5, 256, %s98_s23, [#allocation4], %s7304_s1, %s7304_s1, %s7305_s4  }
 0x117   :  { %s6953_s24 = scalar_lea.hbm %s7369_s17, 128 }
 0x118   :  { %p6954_p6 = scmp.ne.s32.totalorder %s7369_s17, %s6953_s24  ;;  %p6957_p7 = scmp.lt.u32.totalorder %s6953_s24, %s7369_s17 }
 0x11a   :  { %p6959_p8 = pnand %p6957_p7, %p6954_p6 }
 0x11c   :  { %6962 = shalt.err (!%p6959_p8)
}
 0x11d   :  { %s6963_s21 = scalar_lea.vmem %s125_s8, 128  ;;  %p6968_p10 = scmp.lt.s32.totalorder %s125_s8, %s125_s8 }
 0x11e   :  { %p6964_p9 = scmp.ne.s32.totalorder %s125_s8, %s6963_s21  ;;  %p6969_p11 = scmp.lt.s32.totalorder %s6963_s21, %s6963_s21 }
 0x120   :  { %p6970_p12 = por %p6969_p11, %p6968_p10 }
 0x122   :  { %p6971_p13 = pnand %p6970_p12, %p6964_p9 }
 0x124   :  { %6974 = shalt.err (!%p6971_p13)
}
 0x125   :  { %s8372_s7 = sld [smem:[#allocation59_spill]]  ;;  %s7320_s15 = smov [#allocation10]  }
 0x126   :  { %127 = dma.hbm_to_vmem [thread:$0]  %s7369_s17, 128, %s125_s8, [#allocation6]  }
 0x127   :  { %s149_s16 = sshll.u32 %s7320_s15, 4  ;;  %s7321_s5 = smov [#allocation13]   ;;  %s150_s16 = int_to_ptr.vmem [resolvable:$true] %s149_s16 }
 0x128   :  { %s173_s18 = sshll.u32 %s7321_s5, 4  ;;  %s7666_s18 = int_to_ptr.vmem [resolvable:$true] %s173_s18 }
 0x12b   :  { %s6975_s19 = scalar_lea.hbm %s8372_s7, 1024 }
 0x12c   :  { %p6976_p0 = scmp.ne.s32.totalorder %s8372_s7, %s6975_s19  ;;  %p6979_p1 = scmp.lt.u32.totalorder %s6975_s19, %s8372_s7 }
 0x12e   :  { %p6981_p2 = pnand %p6979_p1, %p6976_p0 }
 0x130   :  { %6984 = shalt.err (!%p6981_p2)
}
 0x131   :  { %s6985_s10 = scalar_lea.vmem %s150_s16, 1024  ;;  %p6990_p4 = scmp.lt.s32.totalorder %s150_s16, %s150_s16 }
 0x132   :  { %p6986_p3 = scmp.ne.s32.totalorder %s150_s16, %s6985_s10  ;;  %p6991_p5 = scmp.lt.s32.totalorder %s6985_s10, %s6985_s10 }
 0x134   :  { %p6992_p6 = por %p6991_p5, %p6990_p4 }
 0x136   :  { %p6993_p7 = pnand %p6992_p6, %p6986_p3 }
 0x138   :  { %6996 = shalt.err (!%p6993_p7)
}
 0x139   :  { %s8373_s17 = sld [smem:[#allocation60_spill]] }
 0x13a   :  { %155 = dma.hbm_to_vmem [thread:$0]  %s8372_s7, 1024, %s150_s16, [#allocation9], %s7304_s1, %s7304_s1, %s7305_s4  }
 0x13f   :  { %s6997_s20 = scalar_lea.hbm %s8373_s17, 1024 }
 0x140   :  { %p6998_p8 = scmp.ne.s32.totalorder %s8373_s17, %s6997_s20  ;;  %p7001_p9 = scmp.lt.u32.totalorder %s6997_s20, %s8373_s17 }
 0x142   :  { %p7003_p10 = pnand %p7001_p9, %p6998_p8 }
 0x144   :  { %7006 = shalt.err (!%p7003_p10)
}
 0x145   :  { %s7007_s30 = scalar_lea.vmem %s7666_s18, 1024  ;;  %p7012_p12 = scmp.lt.s32.totalorder %s7666_s18, %s7666_s18 }
 0x146   :  { %p7008_p11 = scmp.ne.s32.totalorder %s7666_s18, %s7007_s30  ;;  %p7013_p13 = scmp.lt.s32.totalorder %s7007_s30, %s7007_s30 }
 0x148   :  { %p7014_p0 = por %p7013_p13, %p7012_p12 }
 0x14a   :  { %p7015_p1 = pnand %p7014_p0, %p7008_p11 }
 0x14c   :  { %7018 = shalt.err (!%p7015_p1)
}
 0x14d   :  { %s8374_s0 = sld [smem:[#allocation61_spill]]  ;;  %s7322_s22 = smov [#allocation16]  }
 0x14e   :  { %179 = dma.hbm_to_vmem [thread:$0]  %s8373_s17, 1024, %s7666_s18, [#allocation12], %s7304_s1, %s7304_s1, %s7305_s4  }
 0x14f   :  { %s197_s27 = sshll.u32 %s7322_s22, 4  ;;  %s7323_s25 = smov [#allocation19]   ;;  %s198_s27 = int_to_ptr.vmem [resolvable:$true] %s197_s27 }
 0x150   :  { %s221_s29 = sshll.u32 %s7323_s25, 4  ;;  %s7687_s29 = int_to_ptr.vmem [resolvable:$true] %s221_s29 }
 0x153   :  { %s7019_s6 = scalar_lea.hbm %s8374_s0, 32 }
 0x154   :  { %p7020_p2 = scmp.ne.s32.totalorder %s8374_s0, %s7019_s6  ;;  %p7023_p3 = scmp.lt.u32.totalorder %s7019_s6, %s8374_s0 }
 0x156   :  { %p7025_p4 = pnand %p7023_p3, %p7020_p2 }
 0x158   :  { %7028 = shalt.err (!%p7025_p4)
}
 0x159   :  { %s7029_s23 = scalar_lea.vmem %s198_s27, 32  ;;  %p7034_p6 = scmp.lt.s32.totalorder %s198_s27, %s198_s27 }
 0x15a   :  { %p7030_p5 = scmp.ne.s32.totalorder %s198_s27, %s7029_s23  ;;  %p7035_p7 = scmp.lt.s32.totalorder %s7029_s23, %s7029_s23 }
 0x15c   :  { %p7036_p8 = por %p7035_p7, %p7034_p6 }
 0x15e   :  { %p7037_p9 = pnand %p7036_p8, %p7030_p5 }
 0x160   :  { %7040 = shalt.err (!%p7037_p9)
}
 0x161   :  { %s8375_s11 = sld [smem:[#allocation62_spill]] }
 0x162   :  { %203 = dma.hbm_to_vmem [thread:$0]  %s8374_s0, 32, %s198_s27, [#allocation15], %s7306_s12, %s7306_s12, %s7307_s9  }
 0x167   :  { %s7041_s8 = scalar_lea.hbm %s8375_s11, 1024 }
 0x168   :  { %p7042_p10 = scmp.ne.s32.totalorder %s8375_s11, %s7041_s8  ;;  %p7045_p11 = scmp.lt.u32.totalorder %s7041_s8, %s8375_s11 }
 0x16a   :  { %p7047_p12 = pnand %p7045_p11, %p7042_p10 }
 0x16c   :  { %7050 = shalt.err (!%p7047_p12)
}
 0x16d   :  { %s7051_s2 = scalar_lea.vmem %s7687_s29, 1024  ;;  %p7056_p0 = scmp.lt.s32.totalorder %s7687_s29, %s7687_s29 }
 0x16e   :  { %p7052_p13 = scmp.ne.s32.totalorder %s7687_s29, %s7051_s2  ;;  %p7057_p1 = scmp.lt.s32.totalorder %s7051_s2, %s7051_s2 }
 0x170   :  { %p7058_p2 = por %p7057_p1, %p7056_p0 }
 0x172   :  { %p7059_p3 = pnand %p7058_p2, %p7052_p13 }
 0x174   :  { %7062 = shalt.err (!%p7059_p3)
}
 0x175   :  { %s8376_s28 = sld [smem:[#allocation64_spill]]  ;;  %s7324_s24 = smov [#allocation22]  }
 0x176   :  { %227 = dma.hbm_to_vmem [thread:$0]  %s8375_s11, 1024, %s7687_s29, [#allocation18], %s7304_s1, %s7304_s1, %s7305_s4  }
 0x177   :  { %s247_s21 = sshll.u32 %s7324_s24, 4  ;;  %s7325_s7 = smov [#allocation25]   ;;  %s248_s21 = int_to_ptr.vmem [resolvable:$true] %s247_s21 }
 0x178   :  { %s271_s15 = sshll.u32 %s7325_s7, 4  ;;  %s7708_s15 = int_to_ptr.vmem [resolvable:$true] %s271_s15 }
 0x17b   :  { %s7063_s16 = scalar_lea.hbm %s8376_s28, 32 }
 0x17c   :  { %p7064_p4 = scmp.ne.s32.totalorder %s8376_s28, %s7063_s16  ;;  %p7067_p5 = scmp.lt.u32.totalorder %s7063_s16, %s8376_s28 }
 0x17e   :  { %p7069_p6 = pnand %p7067_p5, %p7064_p4 }
 0x180   :  { %7072 = shalt.err (!%p7069_p6)
}
 0x181   :  { %s7073_s5 = scalar_lea.vmem %s248_s21, 32  ;;  %p7078_p8 = scmp.lt.s32.totalorder %s248_s21, %s248_s21 }
 0x182   :  { %p7074_p7 = scmp.ne.s32.totalorder %s248_s21, %s7073_s5  ;;  %p7079_p9 = scmp.lt.s32.totalorder %s7073_s5, %s7073_s5 }
 0x184   :  { %p7080_p10 = por %p7079_p9, %p7078_p8 }
 0x186   :  { %p7081_p11 = pnand %p7080_p10, %p7074_p7 }
 0x188   :  { %7084 = shalt.err (!%p7081_p11)
}
 0x189   :  { %s8377_s18 = sld [smem:[#allocation65_spill]] }
 0x18a   :  { %253 = dma.hbm_to_vmem [thread:$0]  %s8376_s28, 32, %s248_s21, [#allocation21], %s7306_s12, %s7306_s12, %s7307_s9  }
 0x18f   :  { %s7085_s19 = scalar_lea.hbm %s8377_s18, 32 }
 0x190   :  { %p7086_p12 = scmp.ne.s32.totalorder %s8377_s18, %s7085_s19  ;;  %p7089_p13 = scmp.lt.u32.totalorder %s7085_s19, %s8377_s18 }
 0x192   :  { %p7091_p0 = pnand %p7089_p13, %p7086_p12 }
 0x194   :  { %7094 = shalt.err (!%p7091_p0)
}
 0x195   :  { %s7095_s10 = scalar_lea.vmem %s7708_s15, 32  ;;  %p7100_p2 = scmp.lt.s32.totalorder %s7708_s15, %s7708_s15 }
 0x196   :  { %p7096_p1 = scmp.ne.s32.totalorder %s7708_s15, %s7095_s10  ;;  %p7101_p3 = scmp.lt.s32.totalorder %s7095_s10, %s7095_s10 }
 0x198   :  { %p7102_p4 = por %p7101_p3, %p7100_p2 }
 0x19a   :  { %p7103_p5 = pnand %p7102_p4, %p7096_p1 }
 0x19c   :  { %7106 = shalt.err (!%p7103_p5)
}
 0x19d   :  { %s8378_s17 = sld [smem:[#allocation66_spill]]  ;;  %s7326_s20 = smov [#allocation28]  }
 0x19e   :  { %277 = dma.hbm_to_vmem [thread:$0]  %s8377_s18, 32, %s7708_s15, [#allocation24], %s7306_s12, %s7306_s12, %s7307_s9  }
 0x19f   :  { %s295_s30 = sshll.u32 %s7326_s20, 4  ;;  %s7327_s0 = smov [#allocation31]   ;;  %s296_s30 = int_to_ptr.vmem [resolvable:$true] %s295_s30 }
 0x1a0   :  { %s321_s22 = sshll.u32 %s7327_s0, 4  ;;  %s7729_s22 = int_to_ptr.vmem [resolvable:$true] %s321_s22 }
 0x1a3   :  { %s7107_s27 = scalar_lea.hbm %s8378_s17, 32 }
 0x1a4   :  { %p7108_p6 = scmp.ne.s32.totalorder %s8378_s17, %s7107_s27  ;;  %p7111_p7 = scmp.lt.u32.totalorder %s7107_s27, %s8378_s17 }
 0x1a6   :  { %p7113_p8 = pnand %p7111_p7, %p7108_p6 }
 0x1a8   :  { %7116 = shalt.err (!%p7113_p8)
}
 0x1a9   :  { %s7117_s25 = scalar_lea.vmem %s296_s30, 32  ;;  %p7122_p10 = scmp.lt.s32.totalorder %s296_s30, %s296_s30 }
 0x1aa   :  { %p7118_p9 = scmp.ne.s32.totalorder %s296_s30, %s7117_s25  ;;  %p7123_p11 = scmp.lt.s32.totalorder %s7117_s25, %s7117_s25 }
 0x1ac   :  { %p7124_p12 = por %p7123_p11, %p7122_p10 }
 0x1ae   :  { %p7125_p13 = pnand %p7124_p12, %p7118_p9 }
 0x1b0   :  { %7128 = shalt.err (!%p7125_p13)
}
 0x1b1   :  { %s8379_s29 = sld [smem:[#allocation68_spill]] }
 0x1b2   :  { %301 = dma.hbm_to_vmem [thread:$0]  %s8378_s17, 32, %s296_s30, [#allocation27], %s7306_s12, %s7306_s12, %s7307_s9  }
 0x1b7   :  { %s7129_s6 = scalar_lea.hbm %s8379_s29, 32 }
 0x1b8   :  { %p7130_p0 = scmp.ne.s32.totalorder %s8379_s29, %s7129_s6  ;;  %p7133_p1 = scmp.lt.u32.totalorder %s7129_s6, %s8379_s29 }
 0x1ba   :  { %p7135_p2 = pnand %p7133_p1, %p7130_p0 }
 0x1bc   :  { %7138 = shalt.err (!%p7135_p2)
}
 0x1bd   :  { %s7139_s23 = scalar_lea.vmem %s7729_s22, 32  ;;  %p7144_p4 = scmp.lt.s32.totalorder %s7729_s22, %s7729_s22 }
 0x1be   :  { %p7140_p3 = scmp.ne.s32.totalorder %s7729_s22, %s7139_s23  ;;  %p7145_p5 = scmp.lt.s32.totalorder %s7139_s23, %s7139_s23 }
 0x1c0   :  { %p7146_p6 = por %p7145_p5, %p7144_p4 }
 0x1c2   :  { %p7147_p7 = pnand %p7146_p6, %p7140_p3 }
 0x1c4   :  { %7150 = shalt.err (!%p7147_p7)
}
 0x1c5   :  { %s8380_s11 = sld [smem:[#allocation69_spill]]  ;;  %s7328_s8 = smov [#allocation34]  }
 0x1c6   :  { %327 = dma.hbm_to_vmem [thread:$0]  %s8379_s29, 32, %s7729_s22, [#allocation30], %s7306_s12, %s7306_s12, %s7307_s9  }
 0x1c7   :  { %s345_s2 = sshll.u32 %s7328_s8, 4  ;;  %s7329_s28 = smov [#allocation37]   ;;  %s346_s2 = int_to_ptr.vmem [resolvable:$true] %s345_s2 }
 0x1c8   :  { %s369_s24 = sshll.u32 %s7329_s28, 4  ;;  %s7750_s24 = int_to_ptr.vmem [resolvable:$true] %s369_s24 }
 0x1cb   :  { %s7151_s21 = scalar_lea.hbm %s8380_s11, 1024 }
 0x1cc   :  { %p7152_p8 = scmp.ne.s32.totalorder %s8380_s11, %s7151_s21  ;;  %p7155_p9 = scmp.lt.u32.totalorder %s7151_s21, %s8380_s11 }
 0x1ce   :  { %p7157_p10 = pnand %p7155_p9, %p7152_p8 }
 0x1d0   :  { %7160 = shalt.err (!%p7157_p10)
}
 0x1d1   :  { %s7161_s7 = scalar_lea.vmem %s346_s2, 1024  ;;  %p7166_p12 = scmp.lt.s32.totalorder %s346_s2, %s346_s2 }
 0x1d2   :  { %p7162_p11 = scmp.ne.s32.totalorder %s346_s2, %s7161_s7  ;;  %p7167_p13 = scmp.lt.s32.totalorder %s7161_s7, %s7161_s7 }
 0x1d4   :  { %p7168_p0 = por %p7167_p13, %p7166_p12 }
 0x1d6   :  { %p7169_p1 = pnand %p7168_p0, %p7162_p11 }
 0x1d8   :  { %7172 = shalt.err (!%p7169_p1)
}
 0x1d9   :  { %s8381_s15 = sld [smem:[#allocation70_spill]] }
 0x1da   :  { %351 = dma.hbm_to_vmem [thread:$0]  %s8380_s11, 1024, %s346_s2, [#allocation33], %s7304_s1, %s7304_s1, %s7305_s4  }
 0x1df   :  { %s7173_s16 = scalar_lea.hbm %s8381_s15, 32 }
 0x1e0   :  { %p7174_p2 = scmp.ne.s32.totalorder %s8381_s15, %s7173_s16  ;;  %p7177_p3 = scmp.lt.u32.totalorder %s7173_s16, %s8381_s15 }
 0x1e2   :  { %p7179_p4 = pnand %p7177_p3, %p7174_p2 }
 0x1e4   :  { %7182 = shalt.err (!%p7179_p4)
}
 0x1e5   :  { %s7183_s5 = scalar_lea.vmem %s7750_s24, 32  ;;  %p7188_p6 = scmp.lt.s32.totalorder %s7750_s24, %s7750_s24 }
 0x1e6   :  { %p7184_p5 = scmp.ne.s32.totalorder %s7750_s24, %s7183_s5  ;;  %p7189_p7 = scmp.lt.s32.totalorder %s7183_s5, %s7183_s5 }
 0x1e8   :  { %p7190_p8 = por %p7189_p7, %p7188_p6 }
 0x1ea   :  { %p7191_p9 = pnand %p7190_p8, %p7184_p5 }
 0x1ec   :  { %7194 = shalt.err (!%p7191_p9)
}
 0x1ed   :  { %s8382_s18 = sld [smem:[#allocation71_spill]]  ;;  %s7330_s19 = smov [#allocation40]  }
 0x1ee   :  { %375 = dma.hbm_to_vmem [thread:$0]  %s8381_s15, 32, %s7750_s24, [#allocation36], %s7306_s12, %s7306_s12, %s7307_s9  }
 0x1ef   :  { %s393_s10 = sshll.u32 %s7330_s19, 4  ;;  %s7331_s17 = smov [#allocation41]   ;;  %s394_s10 = int_to_ptr.vmem [resolvable:$true] %s393_s10 }
 0x1f0   :  { %s405_s20 = sshll.u32 %s7331_s17, 4  ;;  %s7771_s20 = int_to_ptr.vmem [resolvable:$true] %s405_s20 }
 0x1f3   :  { %s7195_s30 = scalar_lea.hbm %s8382_s18, 1024 }
 0x1f4   :  { %p7196_p10 = scmp.ne.s32.totalorder %s8382_s18, %s7195_s30  ;;  %p7199_p11 = scmp.lt.u32.totalorder %s7195_s30, %s8382_s18 }
 0x1f6   :  { %p7201_p12 = pnand %p7199_p11, %p7196_p10 }
 0x1f8   :  { %7204 = shalt.err (!%p7201_p12)
}
 0x1f9   :  { %s7205_s0 = scalar_lea.vmem %s394_s10, 1024  ;;  %p7210_p0 = scmp.lt.s32.totalorder %s394_s10, %s394_s10 }
 0x1fa   :  { %p7206_p13 = scmp.ne.s32.totalorder %s394_s10, %s7205_s0  ;;  %p7211_p1 = scmp.lt.s32.totalorder %s7205_s0, %s7205_s0 }
 0x1fc   :  { %p7212_p2 = por %p7211_p1, %p7210_p0 }
 0x1fe   :  { %p7213_p3 = pnand %p7212_p2, %p7206_p13 }
 0x200   :  { %7216 = shalt.err (!%p7213_p3)
}
 0x201   :  { %s8383_s22 = sld [smem:[#allocation72_spill]] }
 0x202   :  { %399 = dma.hbm_to_vmem [thread:$0]  %s8382_s18, 1024, %s394_s10, [#allocation39], %s7304_s1, %s7304_s1, %s7305_s4  }
 0x207   :  { %s7217_s27 = scalar_lea.hbm %s8383_s22, 32 }
 0x208   :  { %p7218_p4 = scmp.ne.s32.totalorder %s8383_s22, %s7217_s27  ;;  %p7221_p5 = scmp.lt.u32.totalorder %s7217_s27, %s8383_s22 }
 0x20a   :  { %p7223_p6 = pnand %p7221_p5, %p7218_p4 }
 0x20c   :  { %7226 = shalt.err (!%p7223_p6)
}
 0x20d   :  { %s7227_s25 = scalar_lea.vmem %s7771_s20, 32  ;;  %p7232_p8 = scmp.lt.s32.totalorder %s7771_s20, %s7771_s20 }
 0x20e   :  { %p7228_p7 = scmp.ne.s32.totalorder %s7771_s20, %s7227_s25  ;;  %p7233_p9 = scmp.lt.s32.totalorder %s7227_s25, %s7227_s25 }
 0x210   :  { %p7234_p10 = por %p7233_p9, %p7232_p8 }
 0x212   :  { %p7235_p11 = pnand %p7234_p10, %p7228_p7 }
 0x214   :  { %7238 = shalt.err (!%p7235_p11)
}
 0x215   :  { %411 = dma.hbm_to_vmem [thread:$0]  %s8383_s22, 32, %s7771_s20, [#allocation42], %s7306_s12, %s7306_s12, %s7307_s9  }
 0x216   :  { %7239 = dma.done.wait [#allocation4], 256  }
 0x217   :  { %7240 = vsyncadd [#allocation4], 4294967040 }
 0x218   :  { %7241 = dma.done.wait [#allocation6], 640  }
 0x219   :  { %7242 = vsyncadd [#allocation6], 4294966656 }
 0x21a   :  { %7243 = dma.done.wait [#allocation9], 1056  }
 0x21b   :  { %7244 = vsyncadd [#allocation9], 4294966240 }
 0x21c   :  { %7245 = dma.done.wait [#allocation12], 1056  }
 0x21d   :  { %7246 = vsyncadd [#allocation12], 4294966240 }
 0x21e   :  { %7247 = dma.done.wait [#allocation15], 64  }
 0x21f   :  { %7248 = vsyncadd [#allocation15], 4294967232 }
 0x220   :  { %7249 = dma.done.wait [#allocation18], 1056  }
 0x221   :  { %7250 = vsyncadd [#allocation18], 4294966240 }
 0x222   :  { %7251 = dma.done.wait [#allocation21], 64  }
 0x223   :  { %7252 = vsyncadd [#allocation21], 4294967232 }
 0x224   :  { %7253 = dma.done.wait [#allocation24], 64  }
 0x225   :  { %7254 = vsyncadd [#allocation24], 4294967232 }
 0x226   :  { %7255 = dma.done.wait [#allocation27], 1056  }
 0x227   :  { %7256 = vsyncadd [#allocation27], 4294966240 }
 0x228   :  { %7257 = dma.done.wait [#allocation30], 64  }
 0x229   :  { %7258 = vsyncadd [#allocation30], 4294967232 }
 0x22a   :  { %7259 = dma.done.wait [#allocation33], 1056  }
 0x22b   :  { %7260 = vsyncadd [#allocation33], 4294966240 }
 0x22c   :  { %7261 = dma.done.wait [#allocation36], 64  }
 0x22d   :  { %7262 = vsyncadd [#allocation36], 4294967232 }
 0x22e   :  { %7263 = dma.done.wait [#allocation39], 1056  }
 0x22f   :  { %7264 = vsyncadd [#allocation39], 4294966240 }
 0x230   :  { %7265 = dma.done.wait [#allocation42], 32  }
 0x231   :  { %7266 = vsyncadd [#allocation42], 4294967264  ;;  %s8384_s1 = sld [smem:[#allocation57_spill]]  ;;  %vm511_vm0 = vcmask 261120   ;;  %v500_v1 = vld [vmem:[#allocation5] sm:$0xff]  ;;  %v501_v2 = vld [vmem:[#allocation5 + $0x8] sm:$0xff] }
 0x232   :  { %v502_v3 = vld [vmem:[#allocation5 + $0x10] sm:$0xff]  ;;  %v6284_v4 = vpack.c.bf16 %v501_v2, %v500_v1  ;;  %v503_v5 = vld [vmem:[#allocation5 + $0x18] sm:$0xff]  ;;  %s8385_s9 = sld [smem:[#allocation58_spill]]  ;;  %v600_v32 = vld [vmem:[#allocation10 + $0x18] sm:$0xff]  ;;  %vm7333_vm1 = vmmov 0   ;;  %s7334_s29 = smov 88  }
 0x233   :  { %v498_v6 = vld [vmem:[#allocation3] sm:$0xff]  ;;  %v6288_v7 = vpack.c.bf16 %v503_v5, %v502_v3  ;;  %v499_v8 = vld [vmem:[#allocation3 + $0x8] sm:$0xff]  ;;  %v5620_v43 = vld [vmem:[#allocation8] ss:$0 sm:$0xff]  ;;  %s7335_s6 = smov 96   ;;  %s7336_s23 = smov 120  }
 0x234   :  { %5945 = vmatprep.mubr.msk.f32.mxu0 %vm511_vm0, %v498_v6  ;;  %6285 = vmatprep.subr.bf16.mxu0 %v6284_v4  ;;  %v597_v28 = vld [vmem:[#allocation10] sm:$0xff]  ;;  %v598_v29 = vld [vmem:[#allocation10 + $0x8] sm:$0xff]  ;;  %v599_v30 = vld [vmem:[#allocation10 + $0x10] sm:$0xff]  ;;  %s7337_s11 = smov 112   ;;  %s7338_s8 = smov 80   ;;  %vm1016_vm2 = vcmask 64512  }
 0x235   :  { %6287 = vmatpush3.bf16.msra.mxu0 %v6284_v4  ;;  %v6292_v31 = vpack.c.bf16 %v598_v29, %v597_v28  ;;  %v6296_v33 = vpack.c.bf16 %v600_v32, %v599_v30  ;;  %v602_v50 = vld [vmem:[#allocation13] sm:$0xff]  ;;  %v603_v51 = vld [vmem:[#allocation13 + $0x8] sm:$0xff]  ;;  %v604_v53 = vld [vmem:[#allocation13 + $0x10] sm:$0xff]  ;;  %s7339_s2 = smov 104   ;;  %s7340_s28 = smov 72   ;;  %vm1686_vm3 = vcmask 130048  }
 0x236   :  { %6289 = vmatprep.subr.bf16.mxu0 %v6288_v7  ;;  %v6300_v52 = vpack.c.bf16 %v603_v51, %v602_v50  ;;  %v605_v54 = vld [vmem:[#allocation13 + $0x18] sm:$0xff]  ;;  %v609_v28 = vld [vmem:[#allocation19] sm:$0xff]  ;;  %v610_v29 = vld [vmem:[#allocation19 + $0x8] sm:$0xff]  ;;  %v7332_v50 = vmov 0.0   ;;  %s7341_s24 = smov 64   ;;  %s7342_s21 = smov 48  }
 0x237   :  { %v5616_v9 = vld [vmem:[%s8384_s1] ss:$0 sm:$0xff]  ;;  %6293 = vmatprep.subr.bf16.mxu1 %v6292_v31  ;;  %v6304_v55 = vpack.c.bf16 %v605_v54, %v604_v53  ;;  %v5621_v56 = vld [vmem:[#allocation11] ss:$0 sm:$0xff]  ;;  %v611_v30 = vld [vmem:[#allocation19 + $0x10] sm:$0xff]  ;;  %s7343_s7 = smov 40  }
 0x238   :  { %6295 = vmatpush3.bf16.msra.mxu1 %v6292_v31  ;;  %v5619_v41 = vld [vmem:[%s8385_s9] ss:$0 sm:$0xff]  ;;  %v6308_v31 = vpack.c.bf16 %v610_v29, %v609_v28  ;;  %v5631_v51 = vld [vmem:[#allocation20] ss:$0 sm:$0xff]  ;;  %s7344_s15 = smov 56   ;;  %s8386_s16 = sld [smem:[#allocation63_spill]] }
 0x239   :  { %6291 = vmatpush3.bf16.msra.mxu0 %v6288_v7  ;;  %6297 = vmatprep.subr.bf16.mxu1 %v6296_v33  ;;  %v5626_v7 = vld [vmem:[#allocation14] ss:$0 sm:$0xff]  ;;  %s7345_s5 = smov 24   ;;  %vm1688_vm4 = vcmask 195584   ;;  %s8387_s18 = sld [smem:[#allocation67_spill]]  ;;  %vm2609_vm5 = vcmask 1040384  }
 0x23a   :  { %6301 = vmatprep.subr.bf16.mxu0 %v6300_v52  ;;  %v612_v32 = vld [vmem:[#allocation19 + $0x18] sm:$0xff]  ;;  %vm2625_vm6 = vcmask 1046528   ;;  %s8388_s19 = sld [smem:[#allocation73_spill]]  ;;  %vm5561_vm7 = vcmask 1024  }
 0x23c   :  { %5946 = vmatmul.mubr.msk.f32.vlgmr.msra.gmra.mrb[0].mxu0 %vm511_vm0, %v499_v8  ;;  %6299 = vmatpush3.bf16.msra.mxu1 %v6296_v33  ;;  %v6312_v33 = vpack.c.bf16 %v612_v32, %v611_v30 }
 0x23d   :  { %6303 = vmatpush3.bf16.msra.mxu0 %v6300_v52  ;;  %6309 = vmatprep.subr.bf16.mxu1 %v6308_v31 }
 0x23e   :  { %6305 = vmatprep.subr.bf16.mxu0 %v6304_v55 }
 0x241   :  { %6307 = vmatpush3.bf16.msra.mxu0 %v6304_v55 }
 0x242   :  { %5991 = vmatprep.subr.mxu0 %v7332_v50 }
 0x30f   :  { %v5947_v10 = vpop.f32.mrb[0].mxu0 }
 0x310   :  { %v584_v11 = vpop.f32.mrb[1].mxu0  ;;  %v590_v12 = vadd.f32 %v5947_v10, %v5616_v9 }
 0x311   :  { %v585_v13 = vadd.f32 %v5616_v9, %v584_v11 }
 0x312   :  { %v7797_v15 = vmax.f32 %v590_v12, 0.0 }
 0x313   :  { %v7795_v14 = vmax.f32 %v585_v13, 0.0 }
 0x314   :  { %v652_v17 = vsel %vm511_vm0, %v7797_v15, 0.0 }
 0x315   :  { %v649_v16 = vsel %vm511_vm0, %v7795_v14, 0.0 }
 0x316   :  { %650 = vadd.xlane.f32.xlu0 %v649_v16 }
 0x31a   :  { %653 = vadd.xlane.f32.xlu0 %v652_v17 }
 0x3a3   :  { %v651_v18 = vpop.xlane.xlu0 %650 }
 0x3a4   :  { %v656_v19 = vmul.f32 0.03125, %v651_v18 }
 0x3a6   :  { %v658_v20 = vsub.f32 %v7795_v14, %v656_v19 }
 0x3a7   :  { %v654_v21 = vpop.xlane.xlu0 %653 }
 0x3a8   :  { %v657_v22 = vmul.f32 0.03125, %v654_v21  ;;  %v660_v23 = vmul.f32 %v658_v20, %v658_v20 }
 0x3aa   :  { %v659_v24 = vsub.f32 %v7797_v15, %v657_v22  ;;  %v662_v25 = vsel %vm511_vm0, %v660_v23, 0.0 }
 0x3ab   :  { %663 = vadd.xlane.f32.xlu1 %v662_v25 }
 0x3ac   :  { %v661_v26 = vmul.f32 %v659_v24, %v659_v24 }
 0x3ae   :  { %v665_v27 = vsel %vm511_vm0, %v661_v26, 0.0 }
 0x3af   :  { %666 = vadd.xlane.f32.xlu1 %v665_v27 }
 0x438   :  { %v664_v34 = vpop.xlane.xlu1 %663 }
 0x439   :  { %v668_v35 = vmul.f32 0.03125, %v664_v34 }
 0x43b   :  { %v670_v36 = vadd.f32 1e-05, %v668_v35 }
 0x43c   :  { %v667_v37 = vpop.xlane.xlu1 %666 }
 0x43d   :  { %6499 = vrsqrt.f32 %v670_v36  ;;  %v669_v38 = vmul.f32 0.03125, %v667_v37 }
 0x43f   :  { %v671_v39 = vadd.f32 1e-05, %v669_v38 }
 0x441   :  { %6501 = vrsqrt.f32 %v671_v39 }
 0x447   :  { %v6500_v40 = vpop.eup %6499 }
 0x448   :  { %v674_v42 = vmul.f32 %v6500_v40, %v658_v20 }
 0x44a   :  { %v682_v44 = vmul.f32 %v5619_v41, %v674_v42 }
 0x44b   :  { %v6502_v45 = vpop.eup %6501 }
 0x44c   :  { %v675_v46 = vmul.f32 %v6502_v45, %v659_v24  ;;  %v690_v47 = vadd.f32 %v5620_v43, %v682_v44  ;;  %v5630_v45 = vld [vmem:[#allocation17] ss:$0 sm:$0xff] }
 0x44e   :  { %v683_v48 = vmul.f32 %v5619_v41, %v675_v46  ;;  %5956 = vmatprep.mubr.msk.f32.mxu1 %vm511_vm0, %v690_v47  ;;  %v5629_v41 = vld [vmem:[#allocation16] ss:$0 sm:$0xff] }
 0x450   :  { %v691_v49 = vadd.f32 %v5620_v43, %v683_v48 }
 0x452   :  { %5957 = vmatmul.mubr.msk.f32.vlgmr.msra.gmra.mrb[0].mxu1 %vm511_vm0, %v691_v49 }
 0x453   :  { %6311 = vmatpush3.bf16.msra.mxu1 %v6308_v31 }
 0x454   :  { %6313 = vmatprep.subr.bf16.mxu1 %v6312_v33 }
 0x457   :  { %6315 = vmatpush3.bf16.msra.mxu1 %v6312_v33 }
 0x458   :  { %5981 = vmatprep.subr.mxu1 %v7332_v50 }
 0x525   :  { %v5958_v57 = vpop.f32.mrb[0].mxu1 }
 0x526   :  { %v776_v58 = vadd.f32 %v5958_v57, %v5621_v56  ;;  %v770_v59 = vpop.f32.mrb[1].mxu1 }
 0x527   :  { %v771_v60 = vadd.f32 %v5621_v56, %v770_v59 }
 0x528   :  { %v5625_v61 = vmul.f32 -1.442695, %v776_v58 }
 0x529   :  { %v5624_v62 = vmul.f32 -1.442695, %v771_v60 }
 0x52a   :  { %6503 = vpow2.f32 %v5625_v61 }
 0x52b   :  { %6505 = vpow2.f32 %v5624_v62 }
 0x534   :  { %v6504_v63 = vpop.eup %6503 }
 0x535   :  { %v6506_v0 = vpop.eup %6505  ;;  %v786_v1 = vadd.f32 1.0, %v6504_v63 }
 0x536   :  { %v785_v2 = vadd.f32 1.0, %v6506_v0 }
 0x537   :  { %6507 = vrcp.f32 %v786_v1 }
 0x538   :  { %6509 = vrcp.f32 %v785_v2 }
 0x541   :  { %v6508_v3 = vpop.eup %6507 }
 0x542   :  { %v6510_v4 = vpop.eup %6509  ;;  %v792_v6 = vmul.f32 %v6508_v3, %v776_v58 }
 0x543   :  { %v791_v5 = vmul.f32 %v6510_v4, %v771_v60 }
 0x545   :  { %5967 = vmatprep.mubr.msk.f32.mxu0 %vm511_vm0, %v791_v5 }
 0x546   :  { %5968 = vmatmul.mubr.msk.f32.vlgmr.msra.gmra.mrb[2].mxu0 %vm511_vm0, %v792_v6 }
 0x547   :  { %5993 = vmatprep.mubr.msk.f32.mxu0 %vm7333_vm1, %v7332_v50 }
 0x619   :  { %v5969_v8 = vpop.f32.mrb[2].mxu0 }
 0x61a   :  { %v877_v9 = vadd.f32 %v5969_v8, %v5626_v7  ;;  %v871_v10 = vpop.f32.mrb[3].mxu0 }
 0x61b   :  { %v872_v11 = vadd.f32 %v5626_v7, %v871_v10 }
 0x61c   :  { %v881_v12 = vmul.f32 0.5, %v877_v9 }
 0x61d   :  { %v880_v13 = vmul.f32 0.5, %v872_v11 }
 0x61e   :  { %v7813_v16 = vadd.f32 %v881_v12, %v7797_v15 }
 0x61f   :  { %v7816_v17 = vadd.f32 %v880_v13, %v7795_v14 }
 0x620   :  { %v887_v18 = vsel %vm511_vm0, %v7813_v16, 0.0 }
 0x621   :  { %888 = vadd.xlane.f32.xlu1 %v887_v18  ;;  %v884_v19 = vsel %vm511_vm0, %v7816_v17, 0.0 }
 0x622   :  { %885 = vadd.xlane.f32.xlu0 %v884_v19 }
 0x6ae   :  { %v889_v20 = vpop.xlane.xlu1 %888 }
 0x6af   :  { %v891_v21 = vmul.f32 0.03125, %v889_v20  ;;  %v886_v22 = vpop.xlane.xlu0 %885 }
 0x6b0   :  { %v890_v23 = vmul.f32 0.03125, %v886_v22 }
 0x6b1   :  { %v893_v24 = vsub.f32 %v7813_v16, %v891_v21 }
 0x6b2   :  { %v892_v15 = vsub.f32 %v7816_v17, %v890_v23 }
 0x6b3   :  { %v895_v25 = vmul.f32 %v893_v24, %v893_v24 }
 0x6b4   :  { %v894_v26 = vmul.f32 %v892_v15, %v892_v15 }
 0x6b5   :  { %v899_v14 = vsel %vm511_vm0, %v895_v25, 0.0 }
 0x6b6   :  { %900 = vadd.xlane.f32.xlu1 %v899_v14  ;;  %v896_v27 = vsel %vm511_vm0, %v894_v26, 0.0 }
 0x6b7   :  { %897 = vadd.xlane.f32.xlu0 %v896_v27 }
 0x743   :  { %v901_v34 = vpop.xlane.xlu1 %900 }
 0x744   :  { %v903_v35 = vmul.f32 0.03125, %v901_v34  ;;  %v898_v36 = vpop.xlane.xlu0 %897 }
 0x745   :  { %v902_v37 = vmul.f32 0.03125, %v898_v36 }
 0x746   :  { %v905_v38 = vadd.f32 1e-05, %v903_v35 }
 0x747   :  { %v904_v39 = vadd.f32 1e-05, %v902_v37 }
 0x748   :  { %6511 = vrsqrt.f32 %v905_v38 }
 0x749   :  { %6513 = vrsqrt.f32 %v904_v39 }
 0x752   :  { %v6512_v40 = vpop.eup %6511 }
 0x753   :  { %v6514_v42 = vpop.eup %6513  ;;  %v909_v43 = vmul.f32 %v6512_v40, %v893_v24 }
 0x754   :  { %v908_v44 = vmul.f32 %v6514_v42, %v892_v15 }
 0x755   :  { %v917_v46 = vmul.f32 %v5629_v41, %v909_v43 }
 0x756   :  { %v916_v47 = vmul.f32 %v5629_v41, %v908_v44 }
 0x757   :  { %v925_v49 = vadd.f32 %v5630_v45, %v917_v46 }
 0x758   :  { %v924_v48 = vadd.f32 %v5630_v45, %v916_v47 }
 0x75a   :  { %5978 = vmatprep.mubr.msk.f32.mxu1 %vm511_vm0, %v924_v48 }
 0x75b   :  { %5979 = vmatmul.mubr.msk.f32.vlgmr.msra.gmra.mrb[2].mxu1 %vm511_vm0, %v925_v49 }
 0x75c   :  { %5983 = vmatprep.mubr.msk.f32.mxu1 %vm7333_vm1, %v7332_v50 }
 0x82e   :  { %v5980_v52 = vpop.f32.mrb[2].mxu1 }
 0x82f   :  { %v1004_v53 = vpop.f32.mrb[3].mxu1  ;;  %v7848_v55 = vadd.f32 %v5980_v52, %v5631_v51 }
 0x830   :  { %v7834_v54 = vadd.f32 %v5631_v51, %v1004_v53 }
 0x832   :  { %1180 = vrot.lane.b32.xlu1 %v7834_v54, %s7334_s29  ;;  %1014 = vrot.lane.b32.xlu0 %v7834_v54, %s7335_s6 }
 0x836   :  { %1178 = vrot.lane.b32.xlu1 %v7834_v54, %s7336_s23  ;;  %1343 = vrot.lane.b32.xlu0 %v7834_v54, %s7337_s11 }
 0x83a   :  { %1345 = vrot.lane.b32.xlu1 %v7834_v54, %s7338_s8  ;;  %1508 = vrot.lane.b32.xlu0 %v7834_v54, %s7339_s2 }
 0x83e   :  { %1510 = vrot.lane.b32.xlu1 %v7834_v54, %s7340_s28  ;;  %1856 = vrot.lane.b32.xlu0 %v7848_v55, %s7334_s29 }
 0x842   :  { %1691 = vrot.lane.b32.xlu1 %v7848_v55, %s7335_s6  ;;  %2021 = vrot.lane.b32.xlu0 %v7848_v55, %s7338_s8 }
 0x846   :  { %1854 = vrot.lane.b32.xlu1 %v7848_v55, %s7336_s23  ;;  %2186 = vrot.lane.b32.xlu0 %v7848_v55, %s7340_s28 }
 0x84a   :  { %2019 = vrot.lane.b32.xlu1 %v7848_v55, %s7337_s11 }
 0x84e   :  { %2184 = vrot.lane.b32.xlu1 %v7848_v55, %s7339_s2 }
 0x8a4   :  { %v1181_v56 = vpop.permute.xlu1 %1180  ;;  %v1015_v57 = vpop.permute.xlu0 %1014 }
 0x8a5   :  { %5982 = vmatpush3.xpose.msk.msra.mxu1 %vm1016_vm2, %v1015_v57  ;;  %5992 = vmatpush3.xpose.msk.msra.mxu0 %vm1016_vm2, %v1181_v56 }
 0x8a6   :  { %6001 = vmatprep.subr.mxu0 %v7332_v50  ;;  %5986 = vmatprep.subr.mxu1 %v7332_v50 }
 0x8a8   :  { %v1179_v58 = vpop.permute.xlu1 %1178  ;;  %5984 = vmatmul.mubr.msk.f32.vlgmr.msra.gmra.mrb[4].mxu1 %vm1016_vm2, %v7834_v54  ;;  %v1344_v59 = vpop.permute.xlu0 %1343 }
 0x8a9   :  { %5994 = vmatmul.mubr.msk.f32.vlgmr.msra.gmra.mrb[4].mxu0 %vm1016_vm2, %v1179_v58  ;;  %5988 = vmatprep.mubr.msk.f32.mxu1 %vm7333_vm1, %v7332_v50 }
 0x8aa   :  { %6003 = vmatprep.mubr.msk.f32.mxu0 %vm7333_vm1, %v7332_v50 }
 0x8ac   :  { %v1346_v60 = vpop.permute.xlu1 %1345  ;;  %v1509_v61 = vpop.permute.xlu0 %1508 }
 0x8ad   :  { %6002 = vmatpush3.xpose.msk.msra.mxu0 %vm1016_vm2, %v1346_v60 }
 0x8ae   :  { %6011 = vmatprep.subr.mxu0 %v7332_v50 }
 0x8b0   :  { %v1511_v62 = vpop.permute.xlu1 %1510  ;;  %6004 = vmatmul.mubr.msk.f32.vlgmr.msra.gmra.mrb[6].mxu0 %vm1016_vm2, %v1344_v59  ;;  %v1857_v63 = vpop.permute.xlu0 %1856 }
 0x8b1   :  { %6012 = vmatpush3.xpose.msk.msra.mxu0 %vm1016_vm2, %v1511_v62  ;;  %6013 = vmatprep.mubr.msk.f32.mxu0 %vm7333_vm1, %v7332_v50 }
 0x8b2   :  { %6021 = vmatprep.subr.mxu0 %v7332_v50 }
 0x8b4   :  { %v1692_v0 = vpop.permute.xlu1 %1691  ;;  %6014 = vmatmul.mubr.msk.f32.vlgmr.msra.gmra.mrb[8].mxu0 %vm1016_vm2, %v1509_v61  ;;  %v2022_v2 = vpop.permute.xlu0 %2021 }
 0x8b5   :  { %6022 = vmatpush3.xpose.msk.msra.mxu0 %vm1016_vm2, %v1692_v0  ;;  %6023 = vmatprep.mubr.msk.f32.mxu0 %vm7333_vm1, %v7332_v50 }
 0x8b6   :  { %6031 = vmatprep.subr.mxu0 %v7332_v50 }
 0x8b8   :  { %v1855_v1 = vpop.permute.xlu1 %1854  ;;  %6024 = vmatmul.mubr.msk.f32.vlgmr.msra.gmra.mrb[10].mxu0 %vm1016_vm2, %v7848_v55  ;;  %v2187_v4 = vpop.permute.xlu0 %2186 }
 0x8b9   :  { %6032 = vmatpush3.xpose.msk.msra.mxu0 %vm1016_vm2, %v1857_v63  ;;  %6033 = vmatprep.mubr.msk.f32.mxu0 %vm7333_vm1, %v7332_v50 }
 0x8ba   :  { %6041 = vmatprep.subr.mxu0 %v7332_v50 }
 0x8bc   :  { %6034 = vmatmul.mubr.msk.f32.vlgmr.msra.gmra.mrb[12].mxu0 %vm1016_vm2, %v1855_v1  ;;  %v2020_v3 = vpop.permute.xlu1 %2019 }
 0x8bd   :  { %6042 = vmatpush3.xpose.msk.msra.mxu0 %vm1016_vm2, %v2022_v2  ;;  %6043 = vmatprep.mubr.msk.f32.mxu0 %vm7333_vm1, %v7332_v50 }
 0x8be   :  { %6051 = vmatprep.subr.mxu0 %v7332_v50 }
 0x8c0   :  { %6044 = vmatmul.mubr.msk.f32.vlgmr.msra.gmra.mrb[14].mxu0 %vm1016_vm2, %v2020_v3  ;;  %v2185_v5 = vpop.permute.xlu1 %2184 }
 0x8c1   :  { %6052 = vmatpush3.xpose.msk.msra.mxu0 %vm1016_vm2, %v2187_v4  ;;  %6053 = vmatprep.mubr.msk.f32.mxu0 %vm7333_vm1, %v7332_v50 }
 0x8c4   :  { %6054 = vmatmul.mubr.msk.f32.vlgmr.msra.gmra.mrb[16].mxu0 %vm1016_vm2, %v2185_v5 }
 0x97b   :  { %v1087_v6 = vpop.f32.mrb[4].mxu1 }
 0x97c   :  { %v5985_v7 = vpop.f32.mrb[5].mxu1  ;;  %v1252_v8 = vpop.f32.mrb[4].mxu0  ;;  %v1091_v9 = vsel %vm1016_vm2, %v1087_v6, -inf }
 0x97d   :  { %v5995_v10 = vpop.f32.mrb[5].mxu0  ;;  %1092 = vmax.xlane.f32.xlu0 %v1091_v9  ;;  %v1256_v11 = vsel %vm1016_vm2, %v1252_v8, -inf }
 0x97e   :  { %1257 = vmax.xlane.f32.xlu1 %v1256_v11 }
 0x983   :  { %v1417_v12 = vpop.f32.mrb[6].mxu0 }
 0x984   :  { %v6005_v13 = vpop.f32.mrb[7].mxu0  ;;  %v1421_v18 = vsel %vm1016_vm2, %v1417_v12, -inf }
 0x985   :  { %1422 = vmax.xlane.f32.xlu0 %v1421_v18 }
 0x987   :  { %v1582_v19 = vpop.f32.mrb[8].mxu0 }
 0x988   :  { %v6015_v20 = vpop.f32.mrb[9].mxu0  ;;  %v1586_v21 = vsel %vm1016_vm2, %v1582_v19, -inf }
 0x989   :  { %1587 = vmax.xlane.f32.xlu0 %v1586_v21 }
 0x98b   :  { %v1763_v22 = vpop.f32.mrb[10].mxu0 }
 0x98c   :  { %v6025_v23 = vpop.f32.mrb[11].mxu0  ;;  %v1767_v24 = vsel %vm1016_vm2, %v1763_v22, -inf }
 0x98d   :  { %1768 = vmax.xlane.f32.xlu0 %v1767_v24 }
 0x98f   :  { %v1928_v15 = vpop.f32.mrb[12].mxu0 }
 0x990   :  { %v6035_v25 = vpop.f32.mrb[13].mxu0  ;;  %v1932_v26 = vsel %vm1016_vm2, %v1928_v15, -inf }
 0x991   :  { %1933 = vmax.xlane.f32.xlu1 %v1932_v26 }
 0x993   :  { %v2093_v14 = vpop.f32.mrb[14].mxu0 }
 0x994   :  { %v6045_v27 = vpop.f32.mrb[15].mxu0  ;;  %v2097_v28 = vsel %vm1016_vm2, %v2093_v14, -inf }
 0x995   :  { %2098 = vmax.xlane.f32.xlu0 %v2097_v28 }
 0x997   :  { %v7912_v29 = vpop.f32.mrb[16].mxu0 }
 0x998   :  { %v6055_v30 = vpop.f32.mrb[17].mxu0  ;;  %v2262_v31 = vsel %vm1016_vm2, %v7912_v29, -inf }
 0x9a2   :  { %1102 = vrot.lane.b32.xlu1 %v7834_v54, %s7341_s24 }
 0x9c6   :  { %2263 = vmax.xlane.f32.xlu1 %v2262_v31 }
 0x9d7   :  { %1432 = vrot.lane.b32.xlu1 %v7834_v54, %s7342_s21 }
 0x9db   :  { %1597 = vrot.lane.b32.xlu1 %v7834_v54, %s7343_s7 }
 0x9df   :  { %1778 = vrot.lane.b32.xlu1 %v7848_v55, %s7341_s24 }
 0xa0a   :  { %v1093_v32 = vpop.xlane.xlu0 %1092 }
 0xa0b   :  { %v1094_v33 = vsub.f32 %v1087_v6, %v1093_v32  ;;  %v1258_v34 = vpop.xlane.xlu1 %1257 }
 0xa0c   :  { %v1259_v35 = vsub.f32 %v1252_v8, %v1258_v34 }
 0xa0d   :  { %v1095_v36 = vmul.f32 1.442695, %v1094_v33 }
 0xa0e   :  { %v1260_v37 = vmul.f32 1.442695, %v1259_v35 }
 0xa0f   :  { %6515 = vpow2.f32 %v1095_v36 }
 0xa10   :  { %6517 = vpow2.f32 %v1260_v37 }
 0xa12   :  { %v1423_v38 = vpop.xlane.xlu0 %1422 }
 0xa13   :  { %v1424_v51 = vsub.f32 %v1417_v12, %v1423_v38 }
 0xa15   :  { %v1425_v53 = vmul.f32 1.442695, %v1424_v51 }
 0xa16   :  { %v1588_v39 = vpop.xlane.xlu0 %1587 }
 0xa17   :  { %v1589_v40 = vsub.f32 %v1582_v19, %v1588_v39 }
 0xa19   :  { %v6516_v41 = vpop.eup %6515  ;;  %v1590_v42 = vmul.f32 1.442695, %v1589_v40 }
 0xa1a   :  { %v7924_v43 = vpop.eup %6517  ;;  %v1097_v44 = vsel %vm1016_vm2, %v6516_v41, 0.0  ;;  %v1769_v52 = vpop.xlane.xlu0 %1768 }
 0xa1b   :  { %6519 = vpow2.f32 %v1590_v42  ;;  %1098 = vadd.xlane.f32.xlu0 %v1097_v44  ;;  %v1262_v45 = vsel %vm1016_vm2, %v7924_v43, 0.0  ;;  %v1770_v56 = vsub.f32 %v1763_v22, %v1769_v52 }
 0xa1c   :  { %1263 = vadd.xlane.f32.xlu1 %v1262_v45  ;;  %6521 = vpow2.f32 %v1425_v53  ;;  %v616_v53 = vld [vmem:[%s8386_s16 + $0x10] sm:$0xff] }
 0xa1d   :  { %v1771_v58 = vmul.f32 1.442695, %v1770_v56  ;;  %v617_v56 = vld [vmem:[%s8386_s16 + $0x18] sm:$0xff] }
 0xa1e   :  { %v1934_v46 = vpop.xlane.xlu1 %1933 }
 0xa1f   :  { %6523 = vpow2.f32 %v1771_v58  ;;  %v1935_v60 = vsub.f32 %v1928_v15, %v1934_v46  ;;  %v6320_v58 = vpack.c.bf16 %v617_v56, %v616_v53 }
 0xa21   :  { %v1936_v62 = vmul.f32 1.442695, %v1935_v60 }
 0xa22   :  { %v1103_v47 = vpop.permute.xlu1 %1102  ;;  %v2099_v57 = vpop.xlane.xlu0 %2098 }
 0xa23   :  { %5987 = vmatpush3.msra.mxu1 %v1103_v47  ;;  %v2100_v59 = vsub.f32 %v2093_v14, %v2099_v57  ;;  %v614_v47 = vld [vmem:[%s8386_s16] sm:$0xff] }
 0xa24   :  { %5996 = vmatprep.subr.mxu1 %v7332_v50 }
 0xa25   :  { %v7930_v48 = vpop.eup %6519  ;;  %v2101_v61 = vmul.f32 1.442695, %v2100_v59 }
 0xa26   :  { %v1592_v49 = vsel %vm1016_vm2, %v7930_v48, 0.0  ;;  %v6522_v63 = vpop.eup %6521 }
 0xa27   :  { %1593 = vadd.xlane.f32.xlu1 %v1592_v49  ;;  %6525 = vpow2.f32 %v2101_v61 }
 0xa28   :  { %6527 = vpow2.f32 %v1936_v62 }
 0xa29   :  { %v6524_v0 = vpop.eup %6523 }
 0xa2a   :  { %v1773_v2 = vsel %vm1016_vm2, %v6524_v0, 0.0 }
 0xa31   :  { %1267 = vrot.lane.b32.xlu0 %v7834_v54, %s7344_s15  ;;  %v1427_v54 = vsel %vm1016_vm2, %v6522_v63, 0.0  ;;  %v7940_v3 = vpop.eup %6525 }
 0xa32   :  { %v2103_v6 = vsel %vm1016_vm2, %v7940_v3, 0.0  ;;  %v6528_v7 = vpop.eup %6527 }
 0xa33   :  { %v1938_v8 = vsel %vm1016_vm2, %v6528_v7, 0.0 }
 0xa38   :  { %1943 = vrot.lane.b32.xlu1 %v7848_v55, %s7344_s15 }
 0xa50   :  { %1428 = vadd.xlane.f32.xlu0 %v1427_v54 }
 0xa53   :  { %v2264_v1 = vpop.xlane.xlu1 %2263 }
 0xa54   :  { %v2265_v4 = vsub.f32 %v7912_v29, %v2264_v1  ;;  %1774 = vadd.xlane.f32.xlu0 %v1773_v2 }
 0xa56   :  { %v2266_v5 = vmul.f32 1.442695, %v2265_v4 }
 0xa57   :  { %v1433_v11 = vpop.permute.xlu1 %1432 }
 0xa58   :  { %6529 = vpow2.f32 %v2266_v5  ;;  %2104 = vadd.xlane.f32.xlu0 %v2103_v6 }
 0xa5b   :  { %v1598_v12 = vpop.permute.xlu1 %1597 }
 0xa5c   :  { %1939 = vadd.xlane.f32.xlu1 %v1938_v8 }
 0xa5f   :  { %v1779_v13 = vpop.permute.xlu1 %1778 }
 0xa62   :  { %v7946_v9 = vpop.eup %6529 }
 0xa63   :  { %v2268_v10 = vsel %vm1016_vm2, %v7946_v9, 0.0 }
 0xa64   :  { %2269 = vadd.xlane.f32.xlu0 %v2268_v10 }
 0xa6d   :  { %2273 = vrot.lane.b32.xlu1 %v7848_v55, %s7343_s7 }
 0xa7a   :  { %2108 = vrot.lane.b32.xlu0 %v7848_v55, %s7342_s21 }
 0xaa8   :  { %v1099_v18 = vpop.xlane.xlu0 %1098 }
 0xaa9   :  { %6531 = vrcp.f32 %v1099_v18  ;;  %v1264_v19 = vpop.xlane.xlu1 %1263 }
 0xaaa   :  { %6533 = vrcp.f32 %v1264_v19  ;;  %v5660_v19 = vld [vmem:[#allocation22] ss:$0 sm:$0xff] }
 0xaac   :  { %v1268_v23 = vpop.permute.xlu0 %1267 }
 0xab3   :  { %v6532_v20 = vpop.eup %6531 }
 0xab4   :  { %v1101_v21 = vmul.f32 %v6532_v20, %v6516_v41  ;;  %v6534_v22 = vpop.eup %6533  ;;  %v1594_v55 = vpop.xlane.xlu1 %1593 }
 0xab5   :  { %v1266_v24 = vmul.f32 %v6534_v22, %v7924_v43 }
 0xab6   :  { %5989 = vmatmul.mubr.msk.f32.vlgmr.msra.gmra.mrb[6].mxu1 %vm1016_vm2, %v1101_v21 }
 0xab7   :  { %5997 = vmatpush3.msra.mxu1 %v1268_v23  ;;  %5998 = vmatprep.mubr.msk.f32.mxu1 %vm7333_vm1, %v7332_v50 }
 0xab8   :  { %6006 = vmatprep.subr.mxu1 %v7332_v50  ;;  %v1944_v26 = vpop.permute.xlu1 %1943 }
 0xaba   :  { %5999 = vmatmul.mubr.msk.f32.vlgmr.msra.gmra.mrb[8].mxu1 %vm1016_vm2, %v1266_v24 }
 0xabb   :  { %6007 = vmatpush3.msra.mxu1 %v1433_v11  ;;  %6008 = vmatprep.mubr.msk.f32.mxu1 %vm7333_vm1, %v7332_v50 }
 0xabc   :  { %6016 = vmatprep.subr.mxu1 %v7332_v50 }
 0xadd   :  { %v1429_v15 = vpop.xlane.xlu0 %1428 }
 0xade   :  { %6535 = vrcp.f32 %v1429_v15 }
 0xadf   :  { %6537 = vrcp.f32 %v1594_v55 }
 0xae1   :  { %v1775_v25 = vpop.xlane.xlu0 %1774 }
 0xae2   :  { %6539 = vrcp.f32 %v1775_v25 }
 0xae5   :  { %v2105_v27 = vpop.xlane.xlu0 %2104 }
 0xae8   :  { %v6536_v14 = vpop.eup %6535 }
 0xae9   :  { %v1940_v28 = vpop.xlane.xlu1 %1939  ;;  %v1431_v29 = vmul.f32 %v6536_v14, %v6522_v63  ;;  %v6538_v30 = vpop.eup %6537 }
 0xaea   :  { %6541 = vrcp.f32 %v1940_v28  ;;  %v1596_v31 = vmul.f32 %v6538_v30, %v7930_v48  ;;  %v615_v48 = vld [vmem:[%s8386_s16 + $0x8] sm:$0xff] }
 0xaeb   :  { %6009 = vmatmul.mubr.msk.f32.vlgmr.msra.gmra.mrb[10].mxu1 %vm1016_vm2, %v1431_v29  ;;  %6543 = vrcp.f32 %v2105_v27  ;;  %v6316_v51 = vpack.c.bf16 %v615_v48, %v614_v47  ;;  %v5662_v48 = vld [vmem:[#allocation25] ss:$0 sm:$0xff] }
 0xaec   :  { %6017 = vmatpush3.msra.mxu1 %v1598_v12  ;;  %6018 = vmatprep.mubr.msk.f32.mxu1 %vm7333_vm1, %v7332_v50  ;;  %v6540_v32 = vpop.eup %6539 }
 0xaed   :  { %6026 = vmatprep.subr.mxu1 %v7332_v50  ;;  %v1777_v33 = vmul.f32 %v6540_v32, %v6524_v0  ;;  %v2274_v40 = vpop.permute.xlu1 %2273  ;;  %6317 = vmatprep.subr.bf16.mxu0 %v6316_v51 }
 0xaee   :  { %6319 = vmatpush3.bf16.msra.mxu0 %v6316_v51 }
 0xaef   :  { %6019 = vmatmul.mubr.msk.f32.vlgmr.msra.gmra.mrb[12].mxu1 %vm1016_vm2, %v1596_v31  ;;  %6321 = vmatprep.subr.bf16.mxu0 %v6320_v58 }
 0xaf0   :  { %6027 = vmatpush3.msra.mxu1 %v1779_v13  ;;  %6028 = vmatprep.mubr.msk.f32.mxu1 %vm7333_vm1, %v7332_v50 }
 0xaf1   :  { %v2270_v34 = vpop.xlane.xlu0 %2269  ;;  %6036 = vmatprep.subr.mxu1 %v7332_v50 }
 0xaf2   :  { %6545 = vrcp.f32 %v2270_v34  ;;  %6323 = vmatpush3.bf16.msra.mxu0 %v6320_v58  ;;  %v622_v34 = vld [vmem:[#allocation26 + $0x8] sm:$0xff]  ;;  %v5663_v58 = vld [vmem:[#allocation28] ss:$0 sm:$0xff] }
 0xaf3   :  { %6029 = vmatmul.mubr.msk.f32.vlgmr.msra.gmra.mrb[14].mxu1 %vm1016_vm2, %v1777_v33  ;;  %v621_v33 = vld [vmem:[#allocation26] sm:$0xff] }
 0xaf4   :  { %v6542_v35 = vpop.eup %6541  ;;  %6037 = vmatpush3.msra.mxu1 %v1944_v26  ;;  %6038 = vmatprep.mubr.msk.f32.mxu1 %vm7333_vm1, %v7332_v50 }
 0xaf5   :  { %v1942_v36 = vmul.f32 %v6542_v35, %v6528_v7  ;;  %v2109_v37 = vpop.permute.xlu0 %2108  ;;  %6046 = vmatprep.subr.mxu1 %v7332_v50  ;;  %v6544_v38 = vpop.eup %6543  ;;  %v6324_v35 = vpack.c.bf16 %v622_v34, %v621_v33 }
 0xaf6   :  { %v2107_v39 = vmul.f32 %v6544_v38, %v7940_v3 }
 0xaf7   :  { %6039 = vmatmul.mubr.msk.f32.vlgmr.msra.gmra.mrb[16].mxu1 %vm1016_vm2, %v1942_v36  ;;  %v623_v36 = vld [vmem:[#allocation26 + $0x10] sm:$0xff] }
 0xaf8   :  { %6047 = vmatpush3.msra.mxu1 %v2109_v37  ;;  %6048 = vmatprep.mubr.msk.f32.mxu1 %vm7333_vm1, %v7332_v50  ;;  %v624_v37 = vld [vmem:[#allocation26 + $0x18] sm:$0xff] }
 0xaf9   :  { %6056 = vmatprep.subr.mxu1 %v7332_v50  ;;  %v6328_v38 = vpack.c.bf16 %v624_v37, %v623_v36 }
 0xafb   :  { %6049 = vmatmul.mubr.msk.f32.vlgmr.msra.gmra.mrb[18].mxu1 %vm1016_vm2, %v2107_v39 }
 0xafc   :  { %v6546_v41 = vpop.eup %6545  ;;  %6057 = vmatpush3.msra.mxu1 %v2274_v40  ;;  %6058 = vmatprep.mubr.msk.f32.mxu1 %vm7333_vm1, %v7332_v50 }
 0xafd   :  { %v2272_v42 = vmul.f32 %v6546_v41, %v7946_v9  ;;  %6325 = vmatprep.subr.bf16.mxu1 %v6324_v35 }
 0xaff   :  { %6059 = vmatmul.mubr.msk.f32.vlgmr.msra.gmra.mrb[20].mxu1 %vm1016_vm2, %v2272_v42 }
 0xb00   :  { %6327 = vmatpush3.bf16.msra.mxu1 %v6324_v35 }
 0xb01   :  { %6329 = vmatprep.subr.bf16.mxu1 %v6328_v38 }
 0xb04   :  { %6331 = vmatpush3.bf16.msra.mxu1 %v6328_v38 }
 0xb89   :  { %v1174_v43 = vpop.f32.mrb[6].mxu1 }
 0xb8a   :  { %v5990_v44 = vpop.f32.mrb[7].mxu1 }
 0xb8d   :  { %v1339_v45 = vpop.f32.mrb[8].mxu1 }
 0xb8e   :  { %1674 = vrot.lane.b32.xlu0 %v1339_v45, %s7305_s4  ;;  %v6000_v46 = vpop.f32.mrb[9].mxu1 }
 0xb8f   :  { %v5661_v46 = vld [vmem:[#allocation23] ss:$0 sm:$0xff] }
 0xbbe   :  { %v1504_v49 = vpop.f32.mrb[10].mxu1 }
 0xbbf   :  { %1678 = vrot.lane.b32.xlu1 %v1504_v49, %s7306_s12  ;;  %v6010_v52 = vpop.f32.mrb[11].mxu1 }
 0xbc2   :  { %v1669_v57 = vpop.f32.mrb[12].mxu1 }
 0xbc3   :  { %1682 = vrot.lane.b32.xlu1 %v1669_v57, %s7345_s5  ;;  %v6020_v59 = vpop.f32.mrb[13].mxu1 }
 0xbc6   :  { %v1850_v60 = vpop.f32.mrb[14].mxu1 }
 0xbc7   :  { %v6030_v61 = vpop.f32.mrb[15].mxu1 }
 0xbca   :  { %v2015_v62 = vpop.f32.mrb[16].mxu1 }
 0xbcb   :  { %2350 = vrot.lane.b32.xlu0 %v2015_v62, %s7305_s4  ;;  %v6040_v63 = vpop.f32.mrb[17].mxu1 }
 0xbce   :  { %v2180_v54 = vpop.f32.mrb[18].mxu1 }
 0xbcf   :  { %2354 = vrot.lane.b32.xlu0 %v2180_v54, %s7306_s12  ;;  %v6050_v0 = vpop.f32.mrb[19].mxu1 }
 0xbd2   :  { %v2345_v1 = vpop.f32.mrb[20].mxu1 }
 0xbd3   :  { %2358 = vrot.lane.b32.xlu1 %v2345_v1, %s7345_s5  ;;  %v6060_v2 = vpop.f32.mrb[21].mxu1 }
 0xc00   :  { %v1675_v3 = vpop.permute.xlu0 %1674 }
 0xc01   :  { %v1685_v5 = vsel %vm1016_vm2, %v1174_v43, %v1675_v3 }
 0xc31   :  { %v1679_v4 = vpop.permute.xlu1 %1678 }
 0xc32   :  { %v1687_v6 = vsel %vm1686_vm3, %v1685_v5, %v1679_v4  ;;  %v630_v5 = vld [vmem:[#allocation34] sm:$0xff] }
 0xc35   :  { %v1683_v7 = vpop.permute.xlu1 %1682 }
 0xc36   :  { %v1689_v8 = vsel %vm1688_vm4, %v1687_v6, %v1683_v7  ;;  %v631_v6 = vld [vmem:[#allocation34 + $0x8] sm:$0xff]  ;;  %v632_v7 = vld [vmem:[#allocation34 + $0x10] sm:$0xff] }
 0xc37   :  { %6069 = vmatprep.mubr.msk.f32.mxu0 %vm511_vm0, %v1689_v8 }
 0xc3d   :  { %v2351_v9 = vpop.permute.xlu0 %2350 }
 0xc3e   :  { %v2361_v11 = vsel %vm1016_vm2, %v1850_v60, %v2351_v9  ;;  %v6332_v9 = vpack.c.bf16 %v631_v6, %v630_v5 }
 0xc40   :  { %6333 = vmatprep.subr.bf16.mxu0 %v6332_v9 }
 0xc41   :  { %v2355_v10 = vpop.permute.xlu0 %2354 }
 0xc42   :  { %v2362_v12 = vsel %vm1686_vm3, %v2361_v11, %v2355_v10  ;;  %v633_v10 = vld [vmem:[#allocation34 + $0x18] sm:$0xff] }
 0xc43   :  { %v6336_v11 = vpack.c.bf16 %v633_v10, %v632_v7 }
 0xc45   :  { %v2359_v13 = vpop.permute.xlu1 %2358 }
 0xc46   :  { %v2363_v18 = vsel %vm1688_vm4, %v2362_v12, %v2359_v13  ;;  %v2611_v12 = vlaneseq }
 0xc47   :  { %6070 = vmatmul.mubr.msk.f32.vlgmr.msra.gmra.mrb[18].mxu0 %vm511_vm0, %v2363_v18 }
 0xc48   :  { %6335 = vmatpush3.bf16.msra.mxu0 %v6332_v9  ;;  %v8022_v13 = vshrl.u32 %v2611_v12, 7 }
 0xc49   :  { %6337 = vmatprep.subr.bf16.mxu0 %v6336_v11 }
 0xc4a   :  { %v2613_v18 = vsub.s32 0, %v8022_v13 }
 0xc4c   :  { %6339 = vmatpush3.bf16.msra.mxu0 %v6336_v11 }
 0xd1a   :  { %v6071_v20 = vpop.f32.mrb[18].mxu0 }
 0xd1b   :  { %v2446_v21 = vadd.f32 %v6071_v20, %v7813_v16  ;;  %v2436_v22 = vpop.f32.mrb[19].mxu0  ;;  %v626_v20 = vld [vmem:[%s8387_s18] sm:$0x7] }
 0xd1c   :  { %v2445_v23 = vadd.f32 %v2436_v22, %v7816_v17 }
 0xd1d   :  { %v8006_v24 = vadd.f32 %v5660_v19, %v2446_v21  ;;  %v2629_v21 = vsub.s32 2, %v8022_v13 }
 0xd1e   :  { %v8008_v55 = vadd.f32 %v5660_v19, %v2445_v23  ;;  %v2619_v19 = vsub.s32 1, %v8022_v13 }
 0xd1f   :  { %v2458_v15 = vsel %vm511_vm0, %v8006_v24, 0.0 }
 0xd20   :  { %2459 = vadd.xlane.f32.xlu1 %v2458_v15  ;;  %v2455_v25 = vsel %vm511_vm0, %v8008_v55, 0.0 }
 0xd21   :  { %2456 = vadd.xlane.f32.xlu0 %v2455_v25  ;;  %v2614_v25 = vrot.slane %v626_v20, %v2613_v18 }
 0xdad   :  { %v2460_v26 = vpop.xlane.xlu1 %2459 }
 0xdae   :  { %v2462_v14 = vmul.f32 0.03125, %v2460_v26  ;;  %v2457_v27 = vpop.xlane.xlu0 %2456  ;;  %v2620_v26 = vrot.slane %v626_v20, %v2619_v19 }
 0xdaf   :  { %v2461_v28 = vmul.f32 0.03125, %v2457_v27 }
 0xdb0   :  { %v2464_v16 = vsub.f32 %v8006_v24, %v2462_v14 }
 0xdb1   :  { %v2463_v17 = vsub.f32 %v8008_v55, %v2461_v28 }
 0xdb2   :  { %v2466_v31 = vmul.f32 %v2464_v16, %v2464_v16 }
 0xdb3   :  { %v2465_v29 = vmul.f32 %v2463_v17, %v2463_v17 }
 0xdb4   :  { %v2470_v32 = vsel %vm511_vm0, %v2466_v31, 0.0 }
 0xdb5   :  { %v2467_v30 = vsel %vm511_vm0, %v2465_v29, 0.0 }
 0xdb6   :  { %2468 = vadd.xlane.f32.xlu0 %v2467_v30 }
 0xdba   :  { %2471 = vadd.xlane.f32.xlu0 %v2470_v32 }
 0xe43   :  { %v2469_v39 = vpop.xlane.xlu0 %2468 }
 0xe44   :  { %v2473_v40 = vmul.f32 0.03125, %v2469_v39 }
 0xe46   :  { %v2475_v41 = vadd.f32 1e-05, %v2473_v40  ;;  %v5668_v40 = vld [vmem:[#allocation29] ss:$0 sm:$0xff] }
 0xe47   :  { %v2472_v42 = vpop.xlane.xlu0 %2471 }
 0xe48   :  { %6547 = vrsqrt.f32 %v2475_v41  ;;  %v2474_v43 = vmul.f32 0.03125, %v2472_v42 }
 0xe4a   :  { %v2476_v44 = vadd.f32 1e-05, %v2474_v43 }
 0xe4c   :  { %6549 = vrsqrt.f32 %v2476_v44 }
 0xe52   :  { %v6548_v45 = vpop.eup %6547 }
 0xe53   :  { %v2479_v47 = vmul.f32 %v6548_v45, %v2463_v17  ;;  %v5669_v45 = vld [vmem:[#allocation31] ss:$0 sm:$0xff] }
 0xe55   :  { %v2487_v49 = vmul.f32 %v5661_v46, %v2479_v47 }
 0xe56   :  { %v6550_v51 = vpop.eup %6549 }
 0xe57   :  { %v2480_v52 = vmul.f32 %v6550_v51, %v2464_v16  ;;  %v2495_v53 = vadd.f32 %v5662_v48, %v2487_v49  ;;  %v2630_v16 = vrot.slane %v626_v20, %v2629_v21 }
 0xe59   :  { %v2488_v56 = vmul.f32 %v5661_v46, %v2480_v52  ;;  %6080 = vmatprep.mubr.msk.f32.mxu1 %vm511_vm0, %v2495_v53 }
 0xe5b   :  { %v2496_v57 = vadd.f32 %v5662_v48, %v2488_v56  ;;  %v5670_v48 = vld [vmem:[#allocation32] ss:$0 sm:$0xff] }
 0xe5d   :  { %6081 = vmatmul.mubr.msk.f32.vlgmr.msra.gmra.mrb[22].mxu1 %vm511_vm0, %v2496_v57 }
 0xf30   :  { %v6082_v59 = vpop.f32.mrb[22].mxu1 }
 0xf31   :  { %v2581_v60 = vadd.f32 %v6082_v59, %v5663_v58  ;;  %v2575_v61 = vpop.f32.mrb[23].mxu1 }
 0xf32   :  { %v2576_v62 = vadd.f32 %v5663_v58, %v2575_v61 }
 0xf33   :  { %v5667_v63 = vmul.f32 -1.442695, %v2581_v60 }
 0xf34   :  { %v5666_v54 = vmul.f32 -1.442695, %v2576_v62 }
 0xf35   :  { %6551 = vpow2.f32 %v5667_v63 }
 0xf36   :  { %6553 = vpow2.f32 %v5666_v54 }
 0xf3f   :  { %v6552_v0 = vpop.eup %6551 }
 0xf40   :  { %v6554_v1 = vpop.eup %6553  ;;  %v2591_v2 = vadd.f32 1.0, %v6552_v0 }
 0xf41   :  { %v2590_v3 = vadd.f32 1.0, %v6554_v1  ;;  %v5675_v1 = vld [vmem:[#allocation35] ss:$0 sm:$0xff] }
 0xf42   :  { %6555 = vrcp.f32 %v2591_v2 }
 0xf43   :  { %6557 = vrcp.f32 %v2590_v3 }
 0xf4c   :  { %v6556_v4 = vpop.eup %6555 }
 0xf4d   :  { %v6558_v8 = vpop.eup %6557  ;;  %2600 = vrot.lane.b32.xlu1 %v6556_v4, %s7335_s6 }
 0xf4e   :  { %2598 = vrot.lane.b32.xlu0 %v6558_v8, %s7335_s6 }
 0xfbf   :  { %v2601_v22 = vpop.permute.xlu1 %2600 }
 0xfc0   :  { %v2605_v23 = vmul.f32 %v2601_v22, %v2581_v60  ;;  %v2599_v15 = vpop.permute.xlu0 %2598 }
 0xfc1   :  { %v2604_v14 = vmul.f32 %v2599_v15, %v2576_v62 }
 0xfc2   :  { %v2634_v27 = vrot.slane %v2605_v23, 7  ;;  %v2641_v28 = vrot.slane %v2605_v23, 1  ;;  %v2639_v33 = vmul.f32 %v2620_v26, %v2605_v23 }
 0xfc3   :  { %v2607_v17 = vrot.slane %v2604_v14, 7  ;;  %v2623_v29 = vrot.slane %v2604_v14, 1  ;;  %v2621_v37 = vmul.f32 %v2620_v26, %v2604_v14  ;;  %v637_v26 = vld [vmem:[#allocation40] sm:$0xff]  ;;  %v638_v14 = vld [vmem:[#allocation40 + $0x8] sm:$0xff] }
 0xfc4   :  { %v2636_v30 = vsel %vm2609_vm5, 0.0, %v2634_v27  ;;  %v2643_v31 = vsel %vm2625_vm6, %v2641_v28, 0.0  ;;  %v6340_v27 = vpack.c.bf16 %v638_v14, %v637_v26  ;;  %v639_v28 = vld [vmem:[#allocation40 + $0x10] sm:$0xff] }
 0xfc5   :  { %v2637_v32 = vmul.f32 %v2636_v30, %v2614_v25  ;;  %v2610_v34 = vsel %vm2609_vm5, 0.0, %v2607_v17  ;;  %v2626_v35 = vsel %vm2625_vm6, %v2623_v29, 0.0  ;;  %v2644_v39 = vmul.f32 %v2643_v31, %v2630_v16 }
 0xfc6   :  { %v2615_v36 = vmul.f32 %v2614_v25, %v2610_v34  ;;  %v2631_v42 = vmul.f32 %v2630_v16, %v2626_v35  ;;  %v640_v16 = vld [vmem:[#allocation40 + $0x18] sm:$0xff]  ;;  %6341 = vmatprep.subr.bf16.mxu1 %v6340_v27 }
 0xfc7   :  { %v2640_v38 = vadd.f32 %v2639_v33, %v2637_v32  ;;  %v6344_v17 = vpack.c.bf16 %v640_v16, %v639_v28  ;;  %6343 = vmatpush3.bf16.msra.mxu1 %v6340_v27 }
 0xfc8   :  { %v2622_v41 = vadd.f32 %v2621_v37, %v2615_v36  ;;  %v5676_v36 = vld [vmem:[#allocation37] ss:$0 sm:$0xff] }
 0xfc9   :  { %v2645_v43 = vadd.f32 %v2644_v39, %v2640_v38  ;;  %6345 = vmatprep.subr.bf16.mxu1 %v6344_v17 }
 0xfca   :  { %v2632_v44 = vadd.f32 %v2631_v42, %v2622_v41 }
 0xfcb   :  { %v2653_v46 = vadd.f32 %v5668_v40, %v2645_v43  ;;  %6347 = vmatpush3.bf16.msra.mxu1 %v6344_v17 }
 0xfcc   :  { %v2652_v47 = vadd.f32 %v5668_v40, %v2632_v44  ;;  %v5677_v40 = vld [vmem:[#allocation38] ss:$0 sm:$0xff] }
 0xfcd   :  { %v2661_v49 = vmul.f32 %v5669_v45, %v2653_v46  ;;  %v643_v46 = vld [vmem:[%s8388_s19 + $0x8] sm:$0xff] }
 0xfce   :  { %v2660_v51 = vmul.f32 %v5669_v45, %v2652_v47  ;;  %v642_v45 = vld [vmem:[%s8388_s19] sm:$0xff] }
 0xfcf   :  { %v2669_v52 = vadd.f32 %v5670_v48, %v2661_v49  ;;  %v6348_v47 = vpack.c.bf16 %v643_v46, %v642_v45  ;;  %v645_v49 = vld [vmem:[%s8388_s19 + $0x18] sm:$0xff] }
 0xfd0   :  { %v2668_v53 = vadd.f32 %v5670_v48, %v2660_v51  ;;  %v644_v48 = vld [vmem:[%s8388_s19 + $0x10] sm:$0xff] }
 0xfd1   :  { %v5672_v56 = vmul.f32 -1.442695, %v2669_v52  ;;  %6349 = vmatprep.subr.bf16.mxu0 %v6348_v47  ;;  %v6352_v51 = vpack.c.bf16 %v645_v49, %v644_v48 }
 0xfd2   :  { %v5671_v57 = vmul.f32 -1.442695, %v2668_v53 }
 0xfd3   :  { %6559 = vpow2.f32 %v5672_v56 }
 0xfd4   :  { %6561 = vpow2.f32 %v5671_v57 }
 0xfdd   :  { %v6560_v58 = vpop.eup %6559 }
 0xfde   :  { %v6562_v59 = vpop.eup %6561  ;;  %v2677_v60 = vadd.f32 1.0, %v6560_v58 }
 0xfdf   :  { %v2676_v61 = vadd.f32 1.0, %v6562_v59 }
 0xfe0   :  { %6563 = vrcp.f32 %v2677_v60 }
 0xfe1   :  { %6565 = vrcp.f32 %v2676_v61 }
 0xfea   :  { %v6564_v62 = vpop.eup %6563 }
 0xfeb   :  { %v6566_v63 = vpop.eup %6565  ;;  %v2683_v0 = vmul.f32 %v6564_v62, %v2669_v52  ;;  %v5678_v52 = vld [vmem:[#allocation41] ss:$0 sm:$0xff] }
 0xfec   :  { %v2682_v54 = vmul.f32 %v6566_v63, %v2668_v53 }
 0xfee   :  { %6091 = vmatprep.mubr.msk.f32.mxu0 %vm511_vm0, %v2682_v54 }
 0xfef   :  { %6092 = vmatmul.mubr.msk.f32.vlgmr.msra.gmra.mrb[20].mxu0 %vm511_vm0, %v2683_v0 }
 0xff0   :  { %6351 = vmatpush3.bf16.msra.mxu0 %v6348_v47 }
 0xff1   :  { %6353 = vmatprep.subr.bf16.mxu0 %v6352_v51 }
 0xff4   :  { %6355 = vmatpush3.bf16.msra.mxu0 %v6352_v51 }
0x10c2   :  { %v6093_v2 = vpop.f32.mrb[20].mxu0 }
0x10c3   :  { %v2766_v3 = vadd.f32 %v6093_v2, %v8006_v24  ;;  %v2756_v4 = vpop.f32.mrb[21].mxu0 }
0x10c4   :  { %v2765_v5 = vadd.f32 %v2756_v4, %v8008_v55  ;;  %v5683_v4 = vld [vmem:[%s7512_s3] ss:$0 sm:$0xff] }
0x10c5   :  { %v8042_v6 = vadd.f32 %v5675_v1, %v2766_v3 }
0x10c6   :  { %v8044_v7 = vadd.f32 %v5675_v1, %v2765_v5 }
0x10c7   :  { %v2778_v8 = vsel %vm511_vm0, %v8042_v6, 0.0 }
0x10c8   :  { %2779 = vadd.xlane.f32.xlu0 %v2778_v8  ;;  %v2775_v9 = vsel %vm511_vm0, %v8044_v7, 0.0 }
0x10c9   :  { %2776 = vadd.xlane.f32.xlu1 %v2775_v9 }
0x1155   :  { %v2780_v10 = vpop.xlane.xlu0 %2779 }
0x1156   :  { %v2782_v11 = vmul.f32 0.03125, %v2780_v10  ;;  %v2777_v12 = vpop.xlane.xlu1 %2776 }
0x1157   :  { %v2781_v20 = vmul.f32 0.03125, %v2777_v12 }
0x1158   :  { %v2784_v24 = vsub.f32 %v8042_v6, %v2782_v11 }
0x1159   :  { %v2783_v55 = vsub.f32 %v8044_v7, %v2781_v20 }
0x115a   :  { %v2786_v22 = vmul.f32 %v2784_v24, %v2784_v24 }
0x115b   :  { %v2785_v23 = vmul.f32 %v2783_v55, %v2783_v55 }
0x115c   :  { %v2790_v15 = vsel %vm511_vm0, %v2786_v22, 0.0 }
0x115d   :  { %2791 = vadd.xlane.f32.xlu1 %v2790_v15  ;;  %v2787_v25 = vsel %vm511_vm0, %v2785_v23, 0.0 }
0x115e   :  { %2788 = vadd.xlane.f32.xlu0 %v2787_v25 }
0x11ea   :  { %v2792_v29 = vpop.xlane.xlu1 %2791 }
0x11eb   :  { %v2794_v30 = vmul.f32 0.03125, %v2792_v29  ;;  %v2789_v31 = vpop.xlane.xlu0 %2788 }
0x11ec   :  { %v2793_v32 = vmul.f32 0.03125, %v2789_v31 }
0x11ed   :  { %v2796_v33 = vadd.f32 1e-05, %v2794_v30 }
0x11ee   :  { %v2795_v34 = vadd.f32 1e-05, %v2793_v32 }
0x11ef   :  { %6567 = vrsqrt.f32 %v2796_v33 }
0x11f0   :  { %6569 = vrsqrt.f32 %v2795_v34 }
0x11f9   :  { %v6568_v35 = vpop.eup %6567 }
0x11fa   :  { %v6570_v37 = vpop.eup %6569  ;;  %v2800_v38 = vmul.f32 %v6568_v35, %v2784_v24  ;;  %v5686_v35 = vld [vmem:[%s7517_s13] ss:$0 sm:$0xff] }
0x11fb   :  { %v2799_v39 = vmul.f32 %v6570_v37, %v2783_v55 }
0x11fc   :  { %v2808_v41 = vmul.f32 %v5676_v36, %v2800_v38  ;;  %v5687_v38 = vld [vmem:[%s7522_s14] ss:$0 sm:$0xff] }
0x11fd   :  { %v2807_v42 = vmul.f32 %v5676_v36, %v2799_v39 }
0x11fe   :  { %v2816_v44 = vadd.f32 %v5677_v40, %v2808_v41 }
0x11ff   :  { %v2815_v43 = vadd.f32 %v5677_v40, %v2807_v42 }
0x1201   :  { %6102 = vmatprep.mubr.msk.f32.mxu1 %vm511_vm0, %v2815_v43 }
0x1202   :  { %6103 = vmatmul.mubr.msk.f32.vlgmr.msra.gmra.mrb[24].mxu1 %vm511_vm0, %v2816_v44 }
0x12d5   :  { %v6104_v53 = vpop.f32.mrb[24].mxu1 }
0x12d6   :  { %v2901_v56 = vadd.f32 %v6104_v53, %v5678_v52  ;;  %v2895_v57 = vpop.f32.mrb[25].mxu1 }
0x12d7   :  { %v2896_v58 = vadd.f32 %v5678_v52, %v2895_v57 }
0x12d8   :  { %v5682_v59 = vmul.f32 -1.442695, %v2901_v56 }
0x12d9   :  { %v5681_v60 = vmul.f32 -1.442695, %v2896_v58 }
0x12da   :  { %6571 = vpow2.f32 %v5682_v59  ;;  %v3056_v59 = vld [vmem:[#allocation10 + $0x20] sm:$0xff] }
0x12db   :  { %6573 = vpow2.f32 %v5681_v60  ;;  %v3057_v60 = vld [vmem:[#allocation10 + $0x28] sm:$0xff] }
0x12e4   :  { %v6572_v61 = vpop.eup %6571 }
0x12e5   :  { %v6574_v62 = vpop.eup %6573  ;;  %v2911_v63 = vadd.f32 1.0, %v6572_v61  ;;  %v6356_v61 = vpack.c.bf16 %v3057_v60, %v3056_v59 }
0x12e6   :  { %v2910_v54 = vadd.f32 1.0, %v6574_v62  ;;  %v3058_v62 = vld [vmem:[#allocation10 + $0x30] sm:$0xff] }
0x12e7   :  { %6575 = vrcp.f32 %v2911_v63  ;;  %v3059_v63 = vld [vmem:[#allocation10 + $0x38] sm:$0xff]  ;;  %6357 = vmatprep.subr.bf16.mxu1 %v6356_v61 }
0x12e8   :  { %6577 = vrcp.f32 %v2910_v54  ;;  %v6360_v54 = vpack.c.bf16 %v3059_v63, %v3058_v62  ;;  %6359 = vmatpush3.bf16.msra.mxu1 %v6356_v61 }
0x12ea   :  { %6361 = vmatprep.subr.bf16.mxu1 %v6360_v54 }
0x12ec   :  { %6363 = vmatpush3.bf16.msra.mxu1 %v6360_v54  ;;  %v3074_v54 = vld [vmem:[#allocation19 + $0x20] sm:$0xff] }
0x12f1   :  { %v6576_v0 = vpop.eup %6575 }
0x12f2   :  { %v6578_v1 = vpop.eup %6577  ;;  %v2917_v3 = vmul.f32 %v6576_v0, %v2901_v56 }
0x12f3   :  { %v2916_v2 = vmul.f32 %v6578_v1, %v2896_v58 }
0x12f5   :  { %6113 = vmatprep.mubr.msk.f32.mxu0 %vm511_vm0, %v2916_v2 }
0x12f6   :  { %6114 = vmatmul.mubr.msk.f32.vlgmr.msra.gmra.mrb[22].mxu0 %vm511_vm0, %v2917_v3 }
0x13c9   :  { %v6115_v5 = vpop.f32.mrb[22].mxu0 }
0x13ca   :  { %v3002_v8 = vadd.f32 %v6115_v5, %v5683_v4  ;;  %v2996_v9 = vpop.f32.mrb[23].mxu0 }
0x13cb   :  { %v2997_v10 = vadd.f32 %v5683_v4, %v2996_v9  ;;  %v5701_v9 = vld [vmem:[%s8385_s9 + $0x1] ss:$0 sm:$0xff] }
0x13cc   :  { %v3006_v11 = vmul.f32 0.5, %v3002_v8 }
0x13cd   :  { %v3005_v12 = vmul.f32 0.5, %v2997_v10 }
0x13ce   :  { %v3008_v20 = vadd.f32 %v3006_v11, %v8042_v6 }
0x13cf   :  { %v3007_v24 = vadd.f32 %v3005_v12, %v8044_v7 }
0x13d0   :  { %v3012_v55 = vsel %vm511_vm0, %v3008_v20, 0.0 }
0x13d1   :  { %3013 = vadd.xlane.f32.xlu1 %v3012_v55  ;;  %v3009_v22 = vsel %vm511_vm0, %v3007_v24, 0.0 }
0x13d2   :  { %3010 = vadd.xlane.f32.xlu0 %v3009_v22 }
0x145e   :  { %v3014_v23 = vpop.xlane.xlu1 %3013 }
0x145f   :  { %v3016_v15 = vmul.f32 0.03125, %v3014_v23  ;;  %v3011_v25 = vpop.xlane.xlu0 %3010 }
0x1460   :  { %v3015_v26 = vmul.f32 0.03125, %v3011_v25  ;;  %v3064_v25 = vld [vmem:[#allocation13 + $0x28] sm:$0xff] }
0x1461   :  { %v3018_v14 = vsub.f32 %v3008_v20, %v3016_v15  ;;  %v5702_v20 = vld [vmem:[#allocation8 + $0x1] ss:$0 sm:$0xff]  ;;  %v3063_v15 = vld [vmem:[#allocation13 + $0x20] sm:$0xff] }
0x1462   :  { %v3017_v27 = vsub.f32 %v3007_v24, %v3015_v26  ;;  %v6364_v26 = vpack.c.bf16 %v3064_v25, %v3063_v15  ;;  %v5712_v15 = vld [vmem:[#allocation17 + $0x1] ss:$0 sm:$0xff] }
0x1463   :  { %v3020_v28 = vmul.f32 %v3018_v14, %v3018_v14 }
0x1464   :  { %v3019_v16 = vmul.f32 %v3017_v27, %v3017_v27  ;;  %6365 = vmatprep.subr.bf16.mxu0 %v6364_v26 }
0x1465   :  { %v3024_v17 = vsel %vm511_vm0, %v3020_v28, 0.0  ;;  %6367 = vmatpush3.bf16.msra.mxu0 %v6364_v26 }
0x1466   :  { %3025 = vadd.xlane.f32.xlu1 %v3024_v17  ;;  %v3021_v6 = vsel %vm511_vm0, %v3019_v16, 0.0  ;;  %v5703_v16 = vld [vmem:[#allocation11 + $0x1] ss:$0 sm:$0xff] }
0x1467   :  { %3022 = vadd.xlane.f32.xlu0 %v3021_v6 }
0x14f3   :  { %v3026_v7 = vpop.xlane.xlu1 %3025 }
0x14f4   :  { %v3028_v29 = vmul.f32 0.03125, %v3026_v7  ;;  %v3023_v30 = vpop.xlane.xlu0 %3022 }
0x14f5   :  { %v3027_v31 = vmul.f32 0.03125, %v3023_v30 }
0x14f6   :  { %v3030_v32 = vadd.f32 1e-05, %v3028_v29 }
0x14f7   :  { %v3029_v33 = vadd.f32 1e-05, %v3027_v31 }
0x14f8   :  { %6579 = vrsqrt.f32 %v3030_v32 }
0x14f9   :  { %6581 = vrsqrt.f32 %v3029_v33 }
0x1502   :  { %v6580_v34 = vpop.eup %6579 }
0x1503   :  { %v6582_v36 = vpop.eup %6581  ;;  %v3034_v37 = vmul.f32 %v6580_v34, %v3018_v14  ;;  %v3065_v14 = vld [vmem:[#allocation13 + $0x30] sm:$0xff] }
0x1504   :  { %v3033_v39 = vmul.f32 %v6582_v36, %v3017_v27  ;;  %v3066_v27 = vld [vmem:[#allocation13 + $0x38] sm:$0xff] }
0x1505   :  { %v3042_v40 = vmul.f32 %v5686_v35, %v3034_v37  ;;  %v6368_v28 = vpack.c.bf16 %v3066_v27, %v3065_v14 }
0x1506   :  { %v3041_v41 = vmul.f32 %v5686_v35, %v3033_v39 }
0x1507   :  { %v8071_v42 = vadd.f32 %v5687_v38, %v3042_v40  ;;  %6369 = vmatprep.subr.bf16.mxu0 %v6368_v28  ;;  %v5708_v40 = vld [vmem:[#allocation14 + $0x1] ss:$0 sm:$0xff] }
0x1508   :  { %v8073_v43 = vadd.f32 %v5687_v38, %v3041_v41  ;;  %6371 = vmatpush3.bf16.msra.mxu0 %v6368_v28  ;;  %v5713_v28 = vld [vmem:[#allocation20 + $0x1] ss:$0 sm:$0xff] }
0x1509   :  { %v3138_v44 = vsel %vm511_vm0, %v8071_v42, 0.0  ;;  %6149 = vmatprep.subr.mxu0 %v7332_v50 }
0x150a   :  { %3139 = vadd.xlane.f32.xlu1 %v3138_v44  ;;  %v3135_v45 = vsel %vm511_vm0, %v8073_v43, 0.0 }
0x150b   :  { %3136 = vadd.xlane.f32.xlu0 %v3135_v45 }
0x1597   :  { %v3140_v46 = vpop.xlane.xlu1 %3139 }
0x1598   :  { %v3142_v47 = vmul.f32 0.03125, %v3140_v46  ;;  %v3137_v48 = vpop.xlane.xlu0 %3136 }
0x1599   :  { %v3141_v49 = vmul.f32 0.03125, %v3137_v48 }
0x159a   :  { %v3144_v51 = vsub.f32 %v8071_v42, %v3142_v47 }
0x159b   :  { %v3143_v52 = vsub.f32 %v8073_v43, %v3141_v49 }
0x159c   :  { %v3146_v53 = vmul.f32 %v3144_v51, %v3144_v51 }
0x159d   :  { %v3145_v56 = vmul.f32 %v3143_v52, %v3143_v52 }
0x159e   :  { %v3150_v57 = vsel %vm511_vm0, %v3146_v53, 0.0 }
0x159f   :  { %3151 = vadd.xlane.f32.xlu1 %v3150_v57  ;;  %v3147_v58 = vsel %vm511_vm0, %v3145_v56, 0.0 }
0x15a0   :  { %3148 = vadd.xlane.f32.xlu0 %v3147_v58 }
0x162c   :  { %v3152_v0 = vpop.xlane.xlu1 %3151 }
0x162d   :  { %v3154_v1 = vmul.f32 0.03125, %v3152_v0  ;;  %v3149_v2 = vpop.xlane.xlu0 %3148  ;;  %v3075_v0 = vld [vmem:[#allocation19 + $0x28] sm:$0xff] }
0x162e   :  { %v3153_v3 = vmul.f32 0.03125, %v3149_v2  ;;  %v3076_v2 = vld [vmem:[#allocation19 + $0x30] sm:$0xff] }
0x162f   :  { %v3156_v4 = vadd.f32 1e-05, %v3154_v1  ;;  %v6372_v1 = vpack.c.bf16 %v3075_v0, %v3074_v54 }
0x1630   :  { %v3155_v5 = vadd.f32 1e-05, %v3153_v3  ;;  %v3077_v3 = vld [vmem:[#allocation19 + $0x38] sm:$0xff] }
0x1631   :  { %6583 = vrsqrt.f32 %v3156_v4  ;;  %6373 = vmatprep.subr.bf16.mxu1 %v6372_v1  ;;  %v6376_v4 = vpack.c.bf16 %v3077_v3, %v3076_v2 }
0x1632   :  { %6585 = vrsqrt.f32 %v3155_v5 }
0x163b   :  { %v6584_v8 = vpop.eup %6583 }
0x163c   :  { %v6586_v10 = vpop.eup %6585  ;;  %v3160_v11 = vmul.f32 %v6584_v8, %v3144_v51 }
0x163d   :  { %v3159_v12 = vmul.f32 %v6586_v10, %v3143_v52 }
0x163e   :  { %v3168_v24 = vmul.f32 %v5701_v9, %v3160_v11 }
0x163f   :  { %v3167_v55 = vmul.f32 %v5701_v9, %v3159_v12 }
0x1640   :  { %v3176_v23 = vadd.f32 %v5702_v20, %v3168_v24  ;;  %v5711_v24 = vld [vmem:[#allocation16 + $0x1] ss:$0 sm:$0xff] }
0x1641   :  { %v3175_v22 = vadd.f32 %v5702_v20, %v3167_v55 }
0x1643   :  { %6124 = vmatprep.mubr.msk.f32.mxu1 %vm511_vm0, %v3175_v22 }
0x1644   :  { %6125 = vmatmul.mubr.msk.f32.vlgmr.msra.gmra.mrb[26].mxu1 %vm511_vm0, %v3176_v23 }
0x1645   :  { %6375 = vmatpush3.bf16.msra.mxu1 %v6372_v1 }
0x1646   :  { %6377 = vmatprep.subr.bf16.mxu1 %v6376_v4 }
0x1649   :  { %6379 = vmatpush3.bf16.msra.mxu1 %v6376_v4 }
0x164a   :  { %6154 = vmatprep.subr.mxu1 %v7332_v50 }
0x1717   :  { %v6126_v17 = vpop.f32.mrb[26].mxu1 }
0x1718   :  { %v3261_v6 = vadd.f32 %v6126_v17, %v5703_v16  ;;  %v3255_v7 = vpop.f32.mrb[27].mxu1 }
0x1719   :  { %v3256_v29 = vadd.f32 %v5703_v16, %v3255_v7 }
0x171a   :  { %v5707_v30 = vmul.f32 -1.442695, %v3261_v6 }
0x171b   :  { %v5706_v31 = vmul.f32 -1.442695, %v3256_v29 }
0x171c   :  { %6587 = vpow2.f32 %v5707_v30 }
0x171d   :  { %6589 = vpow2.f32 %v5706_v31 }
0x1726   :  { %v6588_v32 = vpop.eup %6587 }
0x1727   :  { %v6590_v33 = vpop.eup %6589  ;;  %v3271_v34 = vadd.f32 1.0, %v6588_v32 }
0x1728   :  { %v3270_v35 = vadd.f32 1.0, %v6590_v33 }
0x1729   :  { %6591 = vrcp.f32 %v3271_v34 }
0x172a   :  { %6593 = vrcp.f32 %v3270_v35 }
0x1733   :  { %v6592_v36 = vpop.eup %6591 }
0x1734   :  { %v6594_v37 = vpop.eup %6593  ;;  %v3277_v39 = vmul.f32 %v6592_v36, %v3261_v6 }
0x1735   :  { %v3276_v38 = vmul.f32 %v6594_v37, %v3256_v29 }
0x1737   :  { %6135 = vmatprep.mubr.msk.f32.mxu0 %vm511_vm0, %v3276_v38 }
0x1738   :  { %6136 = vmatmul.mubr.msk.f32.vlgmr.msra.gmra.mrb[24].mxu0 %vm511_vm0, %v3277_v39 }
0x1739   :  { %6151 = vmatprep.mubr.msk.f32.mxu0 %vm7333_vm1, %v7332_v50 }
0x180b   :  { %v6137_v41 = vpop.f32.mrb[24].mxu0 }
0x180c   :  { %v3362_v44 = vadd.f32 %v6137_v41, %v5708_v40  ;;  %v3356_v45 = vpop.f32.mrb[25].mxu0 }
0x180d   :  { %v3357_v46 = vadd.f32 %v5708_v40, %v3356_v45 }
0x180e   :  { %v3366_v47 = vmul.f32 0.5, %v3362_v44 }
0x180f   :  { %v3365_v48 = vmul.f32 0.5, %v3357_v46 }
0x1810   :  { %v8092_v49 = vadd.f32 %v3366_v47, %v8071_v42 }
0x1811   :  { %v8095_v51 = vadd.f32 %v3365_v48, %v8073_v43 }
0x1812   :  { %v3372_v52 = vsel %vm511_vm0, %v8092_v49, 0.0 }
0x1813   :  { %3373 = vadd.xlane.f32.xlu1 %v3372_v52  ;;  %v3369_v53 = vsel %vm511_vm0, %v8095_v51, 0.0 }
0x1814   :  { %3370 = vadd.xlane.f32.xlu0 %v3369_v53 }
0x18a0   :  { %v3374_v56 = vpop.xlane.xlu1 %3373 }
0x18a1   :  { %v3376_v57 = vmul.f32 0.03125, %v3374_v56  ;;  %v3371_v58 = vpop.xlane.xlu0 %3370 }
0x18a2   :  { %v3375_v59 = vmul.f32 0.03125, %v3371_v58 }
0x18a3   :  { %v3378_v60 = vsub.f32 %v8092_v49, %v3376_v57 }
0x18a4   :  { %v3377_v42 = vsub.f32 %v8095_v51, %v3375_v59 }
0x18a5   :  { %v3380_v61 = vmul.f32 %v3378_v60, %v3378_v60 }
0x18a6   :  { %v3379_v62 = vmul.f32 %v3377_v42, %v3377_v42 }
0x18a7   :  { %v3384_v43 = vsel %vm511_vm0, %v3380_v61, 0.0 }
0x18a8   :  { %3385 = vadd.xlane.f32.xlu1 %v3384_v43  ;;  %v3381_v63 = vsel %vm511_vm0, %v3379_v62, 0.0 }
0x18a9   :  { %3382 = vadd.xlane.f32.xlu0 %v3381_v63 }
0x1935   :  { %v3386_v5 = vpop.xlane.xlu1 %3385 }
0x1936   :  { %v3388_v8 = vmul.f32 0.03125, %v3386_v5  ;;  %v3383_v9 = vpop.xlane.xlu0 %3382 }
0x1937   :  { %v3387_v10 = vmul.f32 0.03125, %v3383_v9 }
0x1938   :  { %v3390_v11 = vadd.f32 1e-05, %v3388_v8 }
0x1939   :  { %v3389_v12 = vadd.f32 1e-05, %v3387_v10 }
0x193a   :  { %6595 = vrsqrt.f32 %v3390_v11 }
0x193b   :  { %6597 = vrsqrt.f32 %v3389_v12 }
0x1944   :  { %v6596_v20 = vpop.eup %6595 }
0x1945   :  { %v6598_v55 = vpop.eup %6597  ;;  %v3394_v22 = vmul.f32 %v6596_v20, %v3378_v60 }
0x1946   :  { %v3393_v23 = vmul.f32 %v6598_v55, %v3377_v42 }
0x1947   :  { %v3402_v25 = vmul.f32 %v5711_v24, %v3394_v22 }
0x1948   :  { %v3401_v26 = vmul.f32 %v5711_v24, %v3393_v23 }
0x1949   :  { %v3410_v27 = vadd.f32 %v5712_v15, %v3402_v25 }
0x194a   :  { %v3409_v14 = vadd.f32 %v5712_v15, %v3401_v26 }
0x194c   :  { %6146 = vmatprep.mubr.msk.f32.mxu1 %vm511_vm0, %v3409_v14 }
0x194d   :  { %6147 = vmatmul.mubr.msk.f32.vlgmr.msra.gmra.mrb[28].mxu1 %vm511_vm0, %v3410_v27 }
0x194e   :  { %6156 = vmatprep.mubr.msk.f32.mxu1 %vm7333_vm1, %v7332_v50 }
0x1a20   :  { %v6148_v16 = vpop.f32.mrb[28].mxu1 }
0x1a21   :  { %v3489_v17 = vpop.f32.mrb[29].mxu1  ;;  %v8124_v7 = vadd.f32 %v6148_v16, %v5713_v28 }
0x1a22   :  { %v8110_v6 = vadd.f32 %v5713_v28, %v3489_v17 }
0x1a24   :  { %3664 = vrot.lane.b32.xlu1 %v8110_v6, %s7334_s29  ;;  %3499 = vrot.lane.b32.xlu0 %v8110_v6, %s7335_s6 }
0x1a28   :  { %3662 = vrot.lane.b32.xlu1 %v8110_v6, %s7336_s23  ;;  %3827 = vrot.lane.b32.xlu0 %v8110_v6, %s7337_s11 }
0x1a2c   :  { %3829 = vrot.lane.b32.xlu1 %v8110_v6, %s7338_s8  ;;  %3992 = vrot.lane.b32.xlu0 %v8110_v6, %s7339_s2 }
0x1a30   :  { %3994 = vrot.lane.b32.xlu1 %v8110_v6, %s7340_s28  ;;  %4338 = vrot.lane.b32.xlu0 %v8124_v7, %s7334_s29 }
0x1a34   :  { %4173 = vrot.lane.b32.xlu1 %v8124_v7, %s7335_s6  ;;  %4503 = vrot.lane.b32.xlu0 %v8124_v7, %s7338_s8 }
0x1a38   :  { %4336 = vrot.lane.b32.xlu1 %v8124_v7, %s7336_s23  ;;  %4668 = vrot.lane.b32.xlu0 %v8124_v7, %s7340_s28 }
0x1a3c   :  { %4501 = vrot.lane.b32.xlu1 %v8124_v7, %s7337_s11 }
0x1a40   :  { %4666 = vrot.lane.b32.xlu1 %v8124_v7, %s7339_s2 }
0x1a96   :  { %v3665_v29 = vpop.permute.xlu1 %3664  ;;  %v3500_v30 = vpop.permute.xlu0 %3499 }
0x1a97   :  { %6150 = vmatpush3.xpose.msk.msra.mxu0 %vm1016_vm2, %v3500_v30 }
0x1a98   :  { %6159 = vmatprep.subr.mxu0 %v7332_v50 }
0x1a9a   :  { %v3663_v31 = vpop.permute.xlu1 %3662  ;;  %6152 = vmatmul.mubr.msk.f32.vlgmr.msra.gmra.mrb[26].mxu0 %vm1016_vm2, %v8110_v6  ;;  %v3828_v32 = vpop.permute.xlu0 %3827 }
0x1a9b   :  { %6160 = vmatpush3.xpose.msk.msra.mxu0 %vm1016_vm2, %v3665_v29  ;;  %6161 = vmatprep.mubr.msk.f32.mxu0 %vm7333_vm1, %v7332_v50 }
0x1a9c   :  { %6169 = vmatprep.subr.mxu0 %v7332_v50 }
0x1a9e   :  { %v3830_v33 = vpop.permute.xlu1 %3829  ;;  %6162 = vmatmul.mubr.msk.f32.vlgmr.msra.gmra.mrb[28].mxu0 %vm1016_vm2, %v3663_v31  ;;  %v3993_v34 = vpop.permute.xlu0 %3992 }
0x1a9f   :  { %6170 = vmatpush3.xpose.msk.msra.mxu0 %vm1016_vm2, %v3830_v33  ;;  %6171 = vmatprep.mubr.msk.f32.mxu0 %vm7333_vm1, %v7332_v50 }
0x1aa0   :  { %6179 = vmatprep.subr.mxu0 %v7332_v50 }
0x1aa2   :  { %v3995_v35 = vpop.permute.xlu1 %3994  ;;  %6172 = vmatmul.mubr.msk.f32.vlgmr.msra.gmra.mrb[30].mxu0 %vm1016_vm2, %v3828_v32  ;;  %v4339_v36 = vpop.permute.xlu0 %4338 }
0x1aa3   :  { %6180 = vmatpush3.xpose.msk.msra.mxu0 %vm1016_vm2, %v3995_v35  ;;  %6181 = vmatprep.mubr.msk.f32.mxu0 %vm7333_vm1, %v7332_v50 }
0x1aa4   :  { %6189 = vmatprep.subr.mxu0 %v7332_v50 }
0x1aa6   :  { %v4174_v37 = vpop.permute.xlu1 %4173  ;;  %6182 = vmatmul.mubr.msk.f32.vlgmr.msra.gmra.mrb[32].mxu0 %vm1016_vm2, %v3993_v34  ;;  %v4504_v39 = vpop.permute.xlu0 %4503 }
0x1aa7   :  { %6190 = vmatpush3.xpose.msk.msra.mxu0 %vm1016_vm2, %v4174_v37  ;;  %6191 = vmatprep.mubr.msk.f32.mxu0 %vm7333_vm1, %v7332_v50 }
0x1aa8   :  { %6199 = vmatprep.subr.mxu0 %v7332_v50 }
0x1aaa   :  { %v4337_v38 = vpop.permute.xlu1 %4336  ;;  %6192 = vmatmul.mubr.msk.f32.vlgmr.msra.gmra.mrb[34].mxu0 %vm1016_vm2, %v8124_v7  ;;  %v4669_v41 = vpop.permute.xlu0 %4668 }
0x1aab   :  { %6200 = vmatpush3.xpose.msk.msra.mxu0 %vm1016_vm2, %v4339_v36  ;;  %6201 = vmatprep.mubr.msk.f32.mxu0 %vm7333_vm1, %v7332_v50 }
0x1aac   :  { %6209 = vmatprep.subr.mxu0 %v7332_v50 }
0x1aae   :  { %6202 = vmatmul.mubr.msk.f32.vlgmr.msra.gmra.mrb[36].mxu0 %vm1016_vm2, %v4337_v38  ;;  %v4502_v40 = vpop.permute.xlu1 %4501 }
0x1aaf   :  { %6210 = vmatpush3.xpose.msk.msra.mxu0 %vm1016_vm2, %v4504_v39  ;;  %6211 = vmatprep.mubr.msk.f32.mxu0 %vm7333_vm1, %v7332_v50 }
0x1ab0   :  { %6219 = vmatprep.subr.mxu0 %v7332_v50 }
0x1ab2   :  { %6212 = vmatmul.mubr.msk.f32.vlgmr.msra.gmra.mrb[38].mxu0 %vm1016_vm2, %v4502_v40  ;;  %v4667_v44 = vpop.permute.xlu1 %4666 }
0x1ab3   :  { %6220 = vmatpush3.xpose.msk.msra.mxu0 %vm1016_vm2, %v4669_v41  ;;  %6221 = vmatprep.mubr.msk.f32.mxu0 %vm7333_vm1, %v7332_v50 }
0x1ab6   :  { %6222 = vmatmul.mubr.msk.f32.vlgmr.msra.gmra.mrb[40].mxu0 %vm1016_vm2, %v4667_v44 }
0x1b6d   :  { %v3571_v45 = vpop.f32.mrb[26].mxu0 }
0x1b6e   :  { %v6153_v46 = vpop.f32.mrb[27].mxu0  ;;  %v3575_v47 = vsel %vm1016_vm2, %v3571_v45, -inf }
0x1b6f   :  { %3576 = vmax.xlane.f32.xlu0 %v3575_v47 }
0x1b71   :  { %v3736_v48 = vpop.f32.mrb[28].mxu0 }
0x1b72   :  { %v6163_v52 = vpop.f32.mrb[29].mxu0  ;;  %v3740_v53 = vsel %vm1016_vm2, %v3736_v48, -inf }
0x1b73   :  { %3741 = vmax.xlane.f32.xlu1 %v3740_v53 }
0x1b75   :  { %v3901_v56 = vpop.f32.mrb[30].mxu0 }
0x1b76   :  { %v6173_v57 = vpop.f32.mrb[31].mxu0  ;;  %v3905_v58 = vsel %vm1016_vm2, %v3901_v56, -inf }
0x1b77   :  { %3906 = vmax.xlane.f32.xlu0 %v3905_v58 }
0x1b79   :  { %v4066_v59 = vpop.f32.mrb[32].mxu0 }
0x1b7a   :  { %v6183_v60 = vpop.f32.mrb[33].mxu0  ;;  %v4070_v42 = vsel %vm1016_vm2, %v4066_v59, -inf }
0x1b7b   :  { %4071 = vmax.xlane.f32.xlu0 %v4070_v42 }
0x1b7d   :  { %v4245_v61 = vpop.f32.mrb[34].mxu0 }
0x1b7e   :  { %v6193_v62 = vpop.f32.mrb[35].mxu0  ;;  %v4249_v43 = vsel %vm1016_vm2, %v4245_v61, -inf }
0x1b7f   :  { %4250 = vmax.xlane.f32.xlu0 %v4249_v43 }
0x1b81   :  { %v4410_v63 = vpop.f32.mrb[36].mxu0 }
0x1b82   :  { %v6203_v54 = vpop.f32.mrb[37].mxu0  ;;  %v4414_v0 = vsel %vm1016_vm2, %v4410_v63, -inf }
0x1b83   :  { %4415 = vmax.xlane.f32.xlu1 %v4414_v0 }
0x1b85   :  { %v4575_v1 = vpop.f32.mrb[38].mxu0 }
0x1b86   :  { %v6213_v2 = vpop.f32.mrb[39].mxu0  ;;  %v4579_v3 = vsel %vm1016_vm2, %v4575_v1, -inf }
0x1b87   :  { %4580 = vmax.xlane.f32.xlu0 %v4579_v3 }
0x1b89   :  { %v4740_v4 = vpop.f32.mrb[40].mxu0 }
0x1b8a   :  { %v6223_v5 = vpop.f32.mrb[41].mxu0  ;;  %v4744_v8 = vsel %vm1016_vm2, %v4740_v4, -inf }
0x1b94   :  { %3586 = vrot.lane.b32.xlu1 %v8110_v6, %s7341_s24 }
0x1bb8   :  { %4745 = vmax.xlane.f32.xlu1 %v4744_v8 }
0x1bc9   :  { %3916 = vrot.lane.b32.xlu1 %v8110_v6, %s7342_s21 }
0x1bcd   :  { %4081 = vrot.lane.b32.xlu1 %v8110_v6, %s7343_s7 }
0x1bd1   :  { %4260 = vrot.lane.b32.xlu1 %v8124_v7, %s7341_s24 }
0x1bfc   :  { %v3577_v9 = vpop.xlane.xlu0 %3576 }
0x1bfd   :  { %v3578_v10 = vsub.f32 %v3571_v45, %v3577_v9 }
0x1bff   :  { %v3579_v11 = vmul.f32 1.442695, %v3578_v10 }
0x1c00   :  { %v3742_v12 = vpop.xlane.xlu1 %3741 }
0x1c01   :  { %6599 = vpow2.f32 %v3579_v11  ;;  %v3743_v20 = vsub.f32 %v3736_v48, %v3742_v12 }
0x1c03   :  { %v3744_v24 = vmul.f32 1.442695, %v3743_v20 }
0x1c04   :  { %v3907_v55 = vpop.xlane.xlu0 %3906 }
0x1c05   :  { %6601 = vpow2.f32 %v3744_v24  ;;  %v3908_v30 = vsub.f32 %v3901_v56, %v3907_v55 }
0x1c07   :  { %v3909_v32 = vmul.f32 1.442695, %v3908_v30 }
0x1c08   :  { %v4072_v22 = vpop.xlane.xlu0 %4071 }
0x1c09   :  { %v4073_v23 = vsub.f32 %v4066_v59, %v4072_v22 }
0x1c0b   :  { %v6600_v15 = vpop.eup %6599  ;;  %v4074_v25 = vmul.f32 1.442695, %v4073_v23 }
0x1c0c   :  { %v3581_v26 = vsel %vm1016_vm2, %v6600_v15, 0.0  ;;  %v4251_v31 = vpop.xlane.xlu0 %4250 }
0x1c0d   :  { %6603 = vpow2.f32 %v4074_v25  ;;  %3582 = vadd.xlane.f32.xlu0 %v3581_v26  ;;  %v4252_v33 = vsub.f32 %v4245_v61, %v4251_v31  ;;  %v5689_v31 = vld [vmem:[%s8386_s16 + $0x20] sm:$0xff] }
0x1c0e   :  { %6605 = vpow2.f32 %v3909_v32  ;;  %v5690_v32 = vld [vmem:[%s8386_s16 + $0x28] sm:$0xff] }
0x1c0f   :  { %v6602_v14 = vpop.eup %6601  ;;  %v4253_v35 = vmul.f32 1.442695, %v4252_v33 }
0x1c10   :  { %v4416_v27 = vpop.xlane.xlu1 %4415  ;;  %v3746_v28 = vsel %vm1016_vm2, %v6602_v14, 0.0 }
0x1c11   :  { %3747 = vadd.xlane.f32.xlu1 %v3746_v28  ;;  %6607 = vpow2.f32 %v4253_v35  ;;  %v4417_v37 = vsub.f32 %v4410_v63, %v4416_v27 }
0x1c13   :  { %v4418_v39 = vmul.f32 1.442695, %v4417_v37 }
0x1c14   :  { %v3587_v16 = vpop.permute.xlu1 %3586  ;;  %v4581_v34 = vpop.xlane.xlu0 %4580 }
0x1c15   :  { %6155 = vmatpush3.msra.mxu1 %v3587_v16  ;;  %v4582_v36 = vsub.f32 %v4575_v1, %v4581_v34  ;;  %v6380_v34 = vpack.c.bf16 %v5690_v32, %v5689_v31 }
0x1c16   :  { %6164 = vmatprep.subr.mxu1 %v7332_v50 }
0x1c17   :  { %v8200_v17 = vpop.eup %6603  ;;  %v4583_v38 = vmul.f32 1.442695, %v4582_v36  ;;  %6381 = vmatprep.subr.bf16.mxu0 %v6380_v34  ;;  %v5692_v36 = vld [vmem:[%s8386_s16 + $0x38] sm:$0xff] }
0x1c18   :  { %v4076_v29 = vsel %vm1016_vm2, %v8200_v17, 0.0  ;;  %v6606_v40 = vpop.eup %6605  ;;  %6383 = vmatpush3.bf16.msra.mxu0 %v6380_v34 }
0x1c19   :  { %4077 = vadd.xlane.f32.xlu1 %v4076_v29  ;;  %6609 = vpow2.f32 %v4583_v38 }
0x1c1a   :  { %6611 = vpow2.f32 %v4418_v39 }
0x1c1b   :  { %v6608_v41 = vpop.eup %6607 }
0x1c1c   :  { %v4255_v45 = vsel %vm1016_vm2, %v6608_v41, 0.0 }
0x1c23   :  { %3751 = vrot.lane.b32.xlu0 %v8110_v6, %s7344_s15  ;;  %v3911_v6 = vsel %vm1016_vm2, %v6606_v40, 0.0  ;;  %v8210_v46 = vpop.eup %6609 }
0x1c24   :  { %v4585_v52 = vsel %vm1016_vm2, %v8210_v46, 0.0  ;;  %v6612_v53 = vpop.eup %6611 }
0x1c25   :  { %v4420_v56 = vsel %vm1016_vm2, %v6612_v53, 0.0 }
0x1c2a   :  { %4425 = vrot.lane.b32.xlu1 %v8124_v7, %s7344_s15 }
0x1c42   :  { %3912 = vadd.xlane.f32.xlu0 %v3911_v6 }
0x1c45   :  { %v4746_v44 = vpop.xlane.xlu1 %4745 }
0x1c46   :  { %v4747_v47 = vsub.f32 %v4740_v4, %v4746_v44  ;;  %4256 = vadd.xlane.f32.xlu0 %v4255_v45 }
0x1c48   :  { %v4748_v48 = vmul.f32 1.442695, %v4747_v47 }
0x1c49   :  { %v3917_v59 = vpop.permute.xlu1 %3916 }
0x1c4a   :  { %6613 = vpow2.f32 %v4748_v48  ;;  %4586 = vadd.xlane.f32.xlu0 %v4585_v52 }
0x1c4d   :  { %v4082_v60 = vpop.permute.xlu1 %4081 }
0x1c4e   :  { %4421 = vadd.xlane.f32.xlu1 %v4420_v56 }
0x1c51   :  { %v4261_v42 = vpop.permute.xlu1 %4260 }
0x1c54   :  { %v8215_v57 = vpop.eup %6613 }
0x1c55   :  { %v4750_v58 = vsel %vm1016_vm2, %v8215_v57, 0.0 }
0x1c56   :  { %4751 = vadd.xlane.f32.xlu0 %v4750_v58 }
0x1c5f   :  { %4755 = vrot.lane.b32.xlu1 %v8124_v7, %s7343_s7 }
0x1c6c   :  { %4590 = vrot.lane.b32.xlu0 %v8124_v7, %s7342_s21 }
0x1c9a   :  { %v3583_v61 = vpop.xlane.xlu0 %3582 }
0x1c9b   :  { %6615 = vrcp.f32 %v3583_v61 }
0x1c9e   :  { %v3748_v62 = vpop.xlane.xlu1 %3747  ;;  %v3752_v54 = vpop.permute.xlu0 %3751 }
0x1c9f   :  { %6617 = vrcp.f32 %v3748_v62 }
0x1ca5   :  { %v6616_v43 = vpop.eup %6615 }
0x1ca6   :  { %v3585_v63 = vmul.f32 %v6616_v43, %v6600_v15  ;;  %v4078_v7 = vpop.xlane.xlu1 %4077 }
0x1ca8   :  { %6157 = vmatmul.mubr.msk.f32.vlgmr.msra.gmra.mrb[30].mxu1 %vm1016_vm2, %v3585_v63 }
0x1ca9   :  { %v6618_v0 = vpop.eup %6617  ;;  %6165 = vmatpush3.msra.mxu1 %v3752_v54  ;;  %6166 = vmatprep.mubr.msk.f32.mxu1 %vm7333_vm1, %v7332_v50  ;;  %v5742_v54 = vld [vmem:[#allocation22 + $0x1] ss:$0 sm:$0xff] }
0x1caa   :  { %v3750_v1 = vmul.f32 %v6618_v0, %v6602_v14  ;;  %6174 = vmatprep.subr.mxu1 %v7332_v50  ;;  %v4426_v4 = vpop.permute.xlu1 %4425 }
0x1cac   :  { %6167 = vmatmul.mubr.msk.f32.vlgmr.msra.gmra.mrb[32].mxu1 %vm1016_vm2, %v3750_v1 }
0x1cad   :  { %6175 = vmatpush3.msra.mxu1 %v3917_v59  ;;  %6176 = vmatprep.mubr.msk.f32.mxu1 %vm7333_vm1, %v7332_v50 }
0x1cae   :  { %6184 = vmatprep.subr.mxu1 %v7332_v50 }
0x1ccf   :  { %v3913_v2 = vpop.xlane.xlu0 %3912 }
0x1cd0   :  { %6619 = vrcp.f32 %v3913_v2 }
0x1cd1   :  { %6621 = vrcp.f32 %v4078_v7 }
0x1cd3   :  { %v4257_v3 = vpop.xlane.xlu0 %4256 }
0x1cd4   :  { %6623 = vrcp.f32 %v4257_v3 }
0x1cd7   :  { %v4587_v9 = vpop.xlane.xlu0 %4586 }
0x1cda   :  { %v6620_v5 = vpop.eup %6619 }
0x1cdb   :  { %v3915_v8 = vmul.f32 %v6620_v5, %v6606_v40  ;;  %v4422_v10 = vpop.xlane.xlu1 %4421  ;;  %v6622_v11 = vpop.eup %6621 }
0x1cdc   :  { %6625 = vrcp.f32 %v4422_v10  ;;  %v4080_v12 = vmul.f32 %v6622_v11, %v8200_v17 }
0x1cdd   :  { %6177 = vmatmul.mubr.msk.f32.vlgmr.msra.gmra.mrb[34].mxu1 %vm1016_vm2, %v3915_v8  ;;  %6627 = vrcp.f32 %v4587_v9 }
0x1cde   :  { %6185 = vmatpush3.msra.mxu1 %v4082_v60  ;;  %6186 = vmatprep.mubr.msk.f32.mxu1 %vm7333_vm1, %v7332_v50  ;;  %v6624_v20 = vpop.eup %6623 }
0x1cdf   :  { %6194 = vmatprep.subr.mxu1 %v7332_v50  ;;  %v4259_v24 = vmul.f32 %v6624_v20, %v6608_v41  ;;  %v4756_v14 = vpop.permute.xlu1 %4755 }
0x1ce1   :  { %6187 = vmatmul.mubr.msk.f32.vlgmr.msra.gmra.mrb[36].mxu1 %vm1016_vm2, %v4080_v12 }
0x1ce2   :  { %6195 = vmatpush3.msra.mxu1 %v4261_v42  ;;  %6196 = vmatprep.mubr.msk.f32.mxu1 %vm7333_vm1, %v7332_v50 }
0x1ce3   :  { %v4752_v55 = vpop.xlane.xlu0 %4751  ;;  %6204 = vmatprep.subr.mxu1 %v7332_v50 }
0x1ce4   :  { %6629 = vrcp.f32 %v4752_v55 }
0x1ce5   :  { %6197 = vmatmul.mubr.msk.f32.vlgmr.msra.gmra.mrb[38].mxu1 %vm1016_vm2, %v4259_v24 }
0x1ce6   :  { %v6626_v22 = vpop.eup %6625  ;;  %6205 = vmatpush3.msra.mxu1 %v4426_v4  ;;  %6206 = vmatprep.mubr.msk.f32.mxu1 %vm7333_vm1, %v7332_v50 }
0x1ce7   :  { %v4424_v23 = vmul.f32 %v6626_v22, %v6612_v53  ;;  %v4591_v15 = vpop.permute.xlu0 %4590  ;;  %6214 = vmatprep.subr.mxu1 %v7332_v50  ;;  %v6628_v25 = vpop.eup %6627 }
0x1ce8   :  { %v4589_v26 = vmul.f32 %v6628_v25, %v8210_v46 }
0x1ce9   :  { %6207 = vmatmul.mubr.msk.f32.vlgmr.msra.gmra.mrb[40].mxu1 %vm1016_vm2, %v4424_v23  ;;  %v3092_v23 = vld [vmem:[#allocation26 + $0x20] sm:$0xff] }
0x1cea   :  { %6215 = vmatpush3.msra.mxu1 %v4591_v15  ;;  %6216 = vmatprep.mubr.msk.f32.mxu1 %vm7333_vm1, %v7332_v50  ;;  %v3093_v15 = vld [vmem:[#allocation26 + $0x28] sm:$0xff] }
0x1ceb   :  { %6224 = vmatprep.subr.mxu1 %v7332_v50  ;;  %v6388_v25 = vpack.c.bf16 %v3093_v15, %v3092_v23 }
0x1ced   :  { %6217 = vmatmul.mubr.msk.f32.vlgmr.msra.gmra.mrb[42].mxu1 %vm1016_vm2, %v4589_v26  ;;  %v3094_v26 = vld [vmem:[#allocation26 + $0x30] sm:$0xff] }
0x1cee   :  { %v6630_v27 = vpop.eup %6629  ;;  %6225 = vmatpush3.msra.mxu1 %v4756_v14  ;;  %6226 = vmatprep.mubr.msk.f32.mxu1 %vm7333_vm1, %v7332_v50  ;;  %v5691_v50 = vld [vmem:[%s8386_s16 + $0x30] sm:$0xff]  ;;  %v3095_v14 = vld [vmem:[#allocation26 + $0x38] sm:$0xff] }
0x1cef   :  { %v4754_v28 = vmul.f32 %v6630_v27, %v8215_v57  ;;  %v6384_v38 = vpack.c.bf16 %v5692_v36, %v5691_v50  ;;  %6389 = vmatprep.subr.bf16.mxu1 %v6388_v25  ;;  %v6392_v27 = vpack.c.bf16 %v3095_v14, %v3094_v26  ;;  %v5750_v26 = vld [vmem:[#allocation29 + $0x1] ss:$0 sm:$0xff] }
0x1cf1   :  { %6227 = vmatmul.mubr.msk.f32.vlgmr.msra.gmra.mrb[44].mxu1 %vm1016_vm2, %v4754_v28  ;;  %6385 = vmatprep.subr.bf16.mxu0 %v6384_v38 }
0x1cf2   :  { %6387 = vmatpush3.bf16.msra.mxu0 %v6384_v38  ;;  %6391 = vmatpush3.bf16.msra.mxu1 %v6388_v25 }
0x1cf3   :  { %6393 = vmatprep.subr.bf16.mxu1 %v6392_v27 }
0x1cf6   :  { %6395 = vmatpush3.bf16.msra.mxu1 %v6392_v27 }
0x1d7b   :  { %v3658_v16 = vpop.f32.mrb[30].mxu1 }
0x1d7c   :  { %v6158_v17 = vpop.f32.mrb[31].mxu1 }
0x1d7f   :  { %v3823_v29 = vpop.f32.mrb[32].mxu1 }
0x1d80   :  { %4158 = vrot.lane.b32.xlu0 %v3823_v29, %s7305_s4  ;;  %v6168_v30 = vpop.f32.mrb[33].mxu1 }
0x1db0   :  { %v3988_v33 = vpop.f32.mrb[34].mxu1 }
0x1db1   :  { %4162 = vrot.lane.b32.xlu1 %v3988_v33, %s7306_s12  ;;  %v6178_v35 = vpop.f32.mrb[35].mxu1  ;;  %v5743_v33 = vld [vmem:[#allocation23 + $0x1] ss:$0 sm:$0xff] }
0x1db2   :  { %v5744_v35 = vld [vmem:[#allocation25 + $0x1] ss:$0 sm:$0xff] }
0x1db4   :  { %v4153_v37 = vpop.f32.mrb[36].mxu1 }
0x1db5   :  { %4166 = vrot.lane.b32.xlu1 %v4153_v37, %s7345_s5  ;;  %v6188_v39 = vpop.f32.mrb[37].mxu1 }
0x1db8   :  { %v4332_v40 = vpop.f32.mrb[38].mxu1 }
0x1db9   :  { %v6198_v6 = vpop.f32.mrb[39].mxu1 }
0x1dba   :  { %v5745_v6 = vld [vmem:[#allocation28 + $0x1] ss:$0 sm:$0xff] }
0x1dbc   :  { %v4497_v41 = vpop.f32.mrb[40].mxu1 }
0x1dbd   :  { %4832 = vrot.lane.b32.xlu0 %v4497_v41, %s7305_s4  ;;  %v6208_v44 = vpop.f32.mrb[41].mxu1 }
0x1dc0   :  { %v4662_v45 = vpop.f32.mrb[42].mxu1 }
0x1dc1   :  { %4836 = vrot.lane.b32.xlu0 %v4662_v45, %s7306_s12  ;;  %v6218_v46 = vpop.f32.mrb[43].mxu1 }
0x1dc4   :  { %v4827_v47 = vpop.f32.mrb[44].mxu1 }
0x1dc5   :  { %4840 = vrot.lane.b32.xlu1 %v4827_v47, %s7345_s5  ;;  %v6228_v48 = vpop.f32.mrb[45].mxu1 }
0x1df2   :  { %v4159_v52 = vpop.permute.xlu0 %4158 }
0x1df3   :  { %v4169_v56 = vsel %vm1016_vm2, %v3658_v16, %v4159_v52 }
0x1e23   :  { %v4163_v53 = vpop.permute.xlu1 %4162 }
0x1e24   :  { %v4170_v57 = vsel %vm1686_vm3, %v4169_v56, %v4163_v53 }
0x1e27   :  { %v4167_v58 = vpop.permute.xlu1 %4166 }
0x1e28   :  { %v4171_v59 = vsel %vm1688_vm4, %v4170_v57, %v4167_v58 }
0x1e29   :  { %6237 = vmatprep.mubr.msk.f32.mxu0 %vm511_vm0, %v4171_v59  ;;  %v3107_v59 = vld [vmem:[#allocation34 + $0x20] sm:$0xff] }
0x1e2f   :  { %v4833_v60 = vpop.permute.xlu0 %4832 }
0x1e30   :  { %v4843_v61 = vsel %vm1016_vm2, %v4332_v40, %v4833_v60  ;;  %v3108_v60 = vld [vmem:[#allocation34 + $0x28] sm:$0xff] }
0x1e33   :  { %v4837_v42 = vpop.permute.xlu0 %4836 }
0x1e34   :  { %v4844_v62 = vsel %vm1686_vm3, %v4843_v61, %v4837_v42  ;;  %v3109_v42 = vld [vmem:[#allocation34 + $0x30] sm:$0xff] }
0x1e37   :  { %v4841_v43 = vpop.permute.xlu1 %4840 }
0x1e38   :  { %v4845_v63 = vsel %vm1688_vm4, %v4844_v62, %v4841_v43  ;;  %v6396_v62 = vpack.c.bf16 %v3108_v60, %v3107_v59  ;;  %v3110_v43 = vld [vmem:[#allocation34 + $0x38] sm:$0xff] }
0x1e39   :  { %6238 = vmatmul.mubr.msk.f32.vlgmr.msra.gmra.mrb[42].mxu0 %vm511_vm0, %v4845_v63  ;;  %v6400_v63 = vpack.c.bf16 %v3110_v43, %v3109_v42 }
0x1e3a   :  { %6397 = vmatprep.subr.bf16.mxu0 %v6396_v62 }
0x1e3b   :  { %6399 = vmatpush3.bf16.msra.mxu0 %v6396_v62 }
0x1e3c   :  { %6401 = vmatprep.subr.bf16.mxu0 %v6400_v63 }
0x1e3f   :  { %6403 = vmatpush3.bf16.msra.mxu0 %v6400_v63 }
0x1f0c   :  { %v6239_v0 = vpop.f32.mrb[42].mxu0 }
0x1f0d   :  { %v4928_v1 = vadd.f32 %v6239_v0, %v8092_v49  ;;  %v4918_v7 = vpop.f32.mrb[43].mxu0 }
0x1f0e   :  { %v4927_v2 = vadd.f32 %v4918_v7, %v8095_v51 }
0x1f0f   :  { %v8274_v3 = vadd.f32 %v5742_v54, %v4928_v1 }
0x1f10   :  { %v8276_v4 = vadd.f32 %v5742_v54, %v4927_v2  ;;  %v5693_v54 = vld [vmem:[%s8387_s18 + $0x4] sm:$0x7] }
0x1f11   :  { %v4940_v5 = vsel %vm511_vm0, %v8274_v3, 0.0  ;;  %v5095_v2 = vrot.slane %v5693_v54, %v2613_v18 }
0x1f12   :  { %4941 = vadd.xlane.f32.xlu1 %v4940_v5  ;;  %v4937_v8 = vsel %vm511_vm0, %v8276_v4, 0.0  ;;  %v5101_v5 = vrot.slane %v5693_v54, %v2619_v19 }
0x1f13   :  { %4938 = vadd.xlane.f32.xlu0 %v4937_v8 }
0x1f9f   :  { %v4942_v9 = vpop.xlane.xlu1 %4941 }
0x1fa0   :  { %v4944_v10 = vmul.f32 0.03125, %v4942_v9  ;;  %v4939_v11 = vpop.xlane.xlu0 %4938 }
0x1fa1   :  { %v4943_v12 = vmul.f32 0.03125, %v4939_v11  ;;  %v5110_v11 = vrot.slane %v5693_v54, %v2629_v21  ;;  %v3118_v54 = vld [vmem:[#allocation40 + $0x20] sm:$0xff] }
0x1fa2   :  { %v4946_v49 = vsub.f32 %v8274_v3, %v4944_v10 }
0x1fa3   :  { %v4945_v51 = vsub.f32 %v8276_v4, %v4943_v12 }
0x1fa4   :  { %v4948_v55 = vmul.f32 %v4946_v49, %v4946_v49 }
0x1fa5   :  { %v4947_v20 = vmul.f32 %v4945_v51, %v4945_v51 }
0x1fa6   :  { %v4952_v22 = vsel %vm511_vm0, %v4948_v55, 0.0 }
0x1fa7   :  { %v4949_v24 = vsel %vm511_vm0, %v4947_v20, 0.0 }
0x1fa8   :  { %4950 = vadd.xlane.f32.xlu0 %v4949_v24 }
0x1fac   :  { %4953 = vadd.xlane.f32.xlu0 %v4952_v22 }
0x2035   :  { %v4951_v28 = vpop.xlane.xlu0 %4950 }
0x2036   :  { %v4955_v16 = vmul.f32 0.03125, %v4951_v28  ;;  %v5751_v28 = vld [vmem:[#allocation31 + $0x1] ss:$0 sm:$0xff] }
0x2038   :  { %v4957_v17 = vadd.f32 1e-05, %v4955_v16 }
0x2039   :  { %v4954_v29 = vpop.xlane.xlu0 %4953 }
0x203a   :  { %6631 = vrsqrt.f32 %v4957_v17  ;;  %v4956_v30 = vmul.f32 0.03125, %v4954_v29  ;;  %v5752_v29 = vld [vmem:[#allocation32 + $0x1] ss:$0 sm:$0xff] }
0x203c   :  { %v4958_v31 = vadd.f32 1e-05, %v4956_v30 }
0x203e   :  { %6633 = vrsqrt.f32 %v4958_v31 }
0x2044   :  { %v6632_v32 = vpop.eup %6631 }
0x2045   :  { %v4961_v34 = vmul.f32 %v6632_v32, %v4945_v51 }
0x2047   :  { %v4969_v50 = vmul.f32 %v5743_v33, %v4961_v34 }
0x2048   :  { %v6634_v36 = vpop.eup %6633 }
0x2049   :  { %v4962_v37 = vmul.f32 %v6634_v36, %v4946_v49  ;;  %v4977_v38 = vadd.f32 %v5744_v35, %v4969_v50 }
0x204b   :  { %v4970_v39 = vmul.f32 %v5743_v33, %v4962_v37  ;;  %6248 = vmatprep.mubr.msk.f32.mxu1 %vm511_vm0, %v4977_v38 }
0x204d   :  { %v4978_v40 = vadd.f32 %v5744_v35, %v4970_v39 }
0x204f   :  { %6249 = vmatmul.mubr.msk.f32.vlgmr.msra.gmra.mrb[46].mxu1 %vm511_vm0, %v4978_v40 }
0x2122   :  { %v6250_v41 = vpop.f32.mrb[46].mxu1 }
0x2123   :  { %v5063_v44 = vadd.f32 %v6250_v41, %v5745_v6  ;;  %v5057_v45 = vpop.f32.mrb[47].mxu1 }
0x2124   :  { %v5058_v46 = vadd.f32 %v5745_v6, %v5057_v45 }
0x2125   :  { %v5749_v47 = vmul.f32 -1.442695, %v5063_v44 }
0x2126   :  { %v5748_v48 = vmul.f32 -1.442695, %v5058_v46 }
0x2127   :  { %6635 = vpow2.f32 %v5749_v47 }
0x2128   :  { %6637 = vpow2.f32 %v5748_v48 }
0x2131   :  { %v6636_v52 = vpop.eup %6635 }
0x2132   :  { %v6638_v53 = vpop.eup %6637  ;;  %v5073_v56 = vadd.f32 1.0, %v6636_v52 }
0x2133   :  { %v5072_v57 = vadd.f32 1.0, %v6638_v53 }
0x2134   :  { %6639 = vrcp.f32 %v5073_v56 }
0x2135   :  { %6641 = vrcp.f32 %v5072_v57 }
0x213e   :  { %v6640_v58 = vpop.eup %6639 }
0x213f   :  { %v6642_v61 = vpop.eup %6641  ;;  %5082 = vrot.lane.b32.xlu1 %v6640_v58, %s7335_s6 }
0x2140   :  { %5080 = vrot.lane.b32.xlu0 %v6642_v61, %s7335_s6 }
0x21b1   :  { %v5083_v0 = vpop.permute.xlu1 %5082 }
0x21b2   :  { %v5087_v1 = vmul.f32 %v5083_v0, %v5063_v44  ;;  %v5081_v7 = vpop.permute.xlu0 %5080  ;;  %v5757_v44 = vld [vmem:[#allocation35 + $0x1] ss:$0 sm:$0xff]  ;;  %v3119_v0 = vld [vmem:[#allocation40 + $0x28] sm:$0xff] }
0x21b3   :  { %v5086_v8 = vmul.f32 %v5081_v7, %v5058_v46  ;;  %v3120_v7 = vld [vmem:[#allocation40 + $0x30] sm:$0xff] }
0x21b4   :  { %v5114_v9 = vrot.slane %v5087_v1, 7  ;;  %v5121_v10 = vrot.slane %v5087_v1, 1  ;;  %v5119_v55 = vmul.f32 %v5101_v5, %v5087_v1  ;;  %v6404_v1 = vpack.c.bf16 %v3119_v0, %v3118_v54 }
0x21b5   :  { %v5089_v12 = vrot.slane %v5086_v8, 7  ;;  %v5104_v49 = vrot.slane %v5086_v8, 1  ;;  %v5102_v19 = vmul.f32 %v5101_v5, %v5086_v8 }
0x21b6   :  { %v5116_v51 = vsel %vm2609_vm5, 0.0, %v5114_v9  ;;  %v5123_v20 = vsel %vm2625_vm6, %v5121_v10, 0.0  ;;  %6405 = vmatprep.subr.bf16.mxu1 %v6404_v1 }
0x21b7   :  { %v5117_v24 = vmul.f32 %v5116_v51, %v5095_v2  ;;  %v5091_v22 = vsel %vm2609_vm5, 0.0, %v5089_v12  ;;  %v5106_v18 = vsel %vm2625_vm6, %v5104_v49, 0.0  ;;  %v5124_v25 = vmul.f32 %v5123_v20, %v5110_v11  ;;  %6407 = vmatpush3.bf16.msra.mxu1 %v6404_v1  ;;  %v5758_v20 = vld [vmem:[#allocation37 + $0x1] ss:$0 sm:$0xff] }
0x21b8   :  { %v5096_v23 = vmul.f32 %v5095_v2, %v5091_v22  ;;  %v5111_v13 = vmul.f32 %v5110_v11, %v5106_v18  ;;  %v3121_v2 = vld [vmem:[#allocation40 + $0x38] sm:$0xff] }
0x21b9   :  { %v5120_v15 = vadd.f32 %v5119_v55, %v5117_v24  ;;  %v6408_v5 = vpack.c.bf16 %v3121_v2, %v3120_v7  ;;  %v5759_v18 = vld [vmem:[#allocation38 + $0x1] ss:$0 sm:$0xff] }
0x21ba   :  { %v5103_v14 = vadd.f32 %v5102_v19, %v5096_v23 }
0x21bb   :  { %v5125_v21 = vadd.f32 %v5124_v25, %v5120_v15  ;;  %6409 = vmatprep.subr.bf16.mxu1 %v6408_v5 }
0x21bc   :  { %v5112_v27 = vadd.f32 %v5111_v13, %v5103_v14  ;;  %6411 = vmatpush3.bf16.msra.mxu1 %v6408_v5  ;;  %v5695_v14 = vld [vmem:[%s8388_s19 + $0x28] sm:$0xff] }
0x21bd   :  { %v5133_v16 = vadd.f32 %v5750_v26, %v5125_v21  ;;  %v5696_v21 = vld [vmem:[%s8388_s19 + $0x30] sm:$0xff] }
0x21be   :  { %v5132_v17 = vadd.f32 %v5750_v26, %v5112_v27  ;;  %v5694_v26 = vld [vmem:[%s8388_s19 + $0x20] sm:$0xff]  ;;  %v5697_v27 = vld [vmem:[%s8388_s19 + $0x38] sm:$0xff] }
0x21bf   :  { %v5141_v30 = vmul.f32 %v5751_v28, %v5133_v16  ;;  %v6412_v13 = vpack.c.bf16 %v5695_v14, %v5694_v26  ;;  %v5760_v16 = vld [vmem:[#allocation41 + $0x1] ss:$0 sm:$0xff] }
0x21c0   :  { %v5140_v31 = vmul.f32 %v5751_v28, %v5132_v17  ;;  %v6416_v28 = vpack.c.bf16 %v5697_v27, %v5696_v21 }
0x21c1   :  { %v5149_v32 = vadd.f32 %v5752_v29, %v5141_v30  ;;  %6413 = vmatprep.subr.bf16.mxu0 %v6412_v13 }
0x21c2   :  { %v5148_v33 = vadd.f32 %v5752_v29, %v5140_v31 }
0x21c3   :  { %v5754_v34 = vmul.f32 -1.442695, %v5149_v32 }
0x21c4   :  { %v5753_v35 = vmul.f32 -1.442695, %v5148_v33 }
0x21c5   :  { %6643 = vpow2.f32 %v5754_v34 }
0x21c6   :  { %6645 = vpow2.f32 %v5753_v35 }
0x21cf   :  { %v6644_v50 = vpop.eup %6643 }
0x21d0   :  { %v6646_v36 = vpop.eup %6645  ;;  %v5157_v37 = vadd.f32 1.0, %v6644_v50 }
0x21d1   :  { %v5156_v38 = vadd.f32 1.0, %v6646_v36 }
0x21d2   :  { %6647 = vrcp.f32 %v5157_v37 }
0x21d3   :  { %6649 = vrcp.f32 %v5156_v38 }
0x21dc   :  { %v6648_v39 = vpop.eup %6647 }
0x21dd   :  { %v6650_v40 = vpop.eup %6649  ;;  %v5163_v41 = vmul.f32 %v6648_v39, %v5149_v32 }
0x21de   :  { %v5162_v6 = vmul.f32 %v6650_v40, %v5148_v33 }
0x21e0   :  { %6259 = vmatprep.mubr.msk.f32.mxu0 %vm511_vm0, %v5162_v6  ;;  %v5765_v6 = vld [vmem:[%s7512_s3 + $0x1] ss:$0 sm:$0xff] }
0x21e1   :  { %6260 = vmatmul.mubr.msk.f32.vlgmr.msra.gmra.mrb[44].mxu0 %vm511_vm0, %v5163_v41 }
0x21e2   :  { %6415 = vmatpush3.bf16.msra.mxu0 %v6412_v13 }
0x21e3   :  { %6417 = vmatprep.subr.bf16.mxu0 %v6416_v28 }
0x21e6   :  { %6419 = vmatpush3.bf16.msra.mxu0 %v6416_v28 }
0x22b4   :  { %v6261_v45 = vpop.f32.mrb[44].mxu0 }
0x22b5   :  { %v5246_v46 = vadd.f32 %v6261_v45, %v8274_v3  ;;  %v5236_v47 = vpop.f32.mrb[45].mxu0 }
0x22b6   :  { %v5245_v48 = vadd.f32 %v5236_v47, %v8276_v4 }
0x22b7   :  { %v8305_v52 = vadd.f32 %v5757_v44, %v5246_v46 }
0x22b8   :  { %v8307_v53 = vadd.f32 %v5757_v44, %v5245_v48 }
0x22b9   :  { %v5258_v56 = vsel %vm511_vm0, %v8305_v52, 0.0 }
0x22ba   :  { %5259 = vadd.xlane.f32.xlu0 %v5258_v56  ;;  %v5255_v57 = vsel %vm511_vm0, %v8307_v53, 0.0 }
0x22bb   :  { %5256 = vadd.xlane.f32.xlu1 %v5255_v57 }
0x2347   :  { %v5260_v58 = vpop.xlane.xlu0 %5259 }
0x2348   :  { %v5262_v59 = vmul.f32 0.03125, %v5260_v58  ;;  %v5257_v60 = vpop.xlane.xlu1 %5256 }
0x2349   :  { %v5261_v42 = vmul.f32 0.03125, %v5257_v60 }
0x234a   :  { %v5264_v3 = vsub.f32 %v8305_v52, %v5262_v59 }
0x234b   :  { %v5263_v4 = vsub.f32 %v8307_v53, %v5261_v42 }
0x234c   :  { %v5266_v61 = vmul.f32 %v5264_v3, %v5264_v3 }
0x234d   :  { %v5265_v62 = vmul.f32 %v5263_v4, %v5263_v4 }
0x234e   :  { %v5270_v43 = vsel %vm511_vm0, %v5266_v61, 0.0 }
0x234f   :  { %5271 = vadd.xlane.f32.xlu1 %v5270_v43  ;;  %v5267_v63 = vsel %vm511_vm0, %v5265_v62, 0.0 }
0x2350   :  { %5268 = vadd.xlane.f32.xlu0 %v5267_v63 }
0x23dc   :  { %v5272_v8 = vpop.xlane.xlu1 %5271 }
0x23dd   :  { %v5274_v9 = vmul.f32 0.03125, %v5272_v8  ;;  %v5269_v10 = vpop.xlane.xlu0 %5268 }
0x23de   :  { %v5273_v11 = vmul.f32 0.03125, %v5269_v10 }
0x23df   :  { %v5276_v12 = vadd.f32 1e-05, %v5274_v9  ;;  %v5768_v9 = vld [vmem:[%s7517_s13 + $0x1] ss:$0 sm:$0xff] }
0x23e0   :  { %v5275_v49 = vadd.f32 1e-05, %v5273_v11 }
0x23e1   :  { %6651 = vrsqrt.f32 %v5276_v12  ;;  %v5769_v12 = vld [vmem:[%s7522_s14 + $0x1] ss:$0 sm:$0xff] }
0x23e2   :  { %6653 = vrsqrt.f32 %v5275_v49 }
0x23eb   :  { %v6652_v51 = vpop.eup %6651 }
0x23ec   :  { %v6654_v24 = vpop.eup %6653  ;;  %v5280_v55 = vmul.f32 %v6652_v51, %v5264_v3 }
0x23ed   :  { %v5279_v22 = vmul.f32 %v6654_v24, %v5263_v4 }
0x23ee   :  { %v5288_v23 = vmul.f32 %v5758_v20, %v5280_v55 }
0x23ef   :  { %v5287_v19 = vmul.f32 %v5758_v20, %v5279_v22  ;;  %v5531_v20 = vld [vmem:[#allocation7] sm:$0xff] }
0x23f0   :  { %v5296_v25 = vadd.f32 %v5759_v18, %v5288_v23 }
0x23f1   :  { %v5295_v15 = vadd.f32 %v5759_v18, %v5287_v19 }
0x23f3   :  { %6270 = vmatprep.mubr.msk.f32.mxu1 %vm511_vm0, %v5295_v15 }
0x23f4   :  { %6271 = vmatmul.mubr.msk.f32.vlgmr.msra.gmra.mrb[48].mxu1 %vm511_vm0, %v5296_v25 }
0x24c7   :  { %v6272_v17 = vpop.f32.mrb[48].mxu1 }
0x24c8   :  { %v5381_v29 = vadd.f32 %v6272_v17, %v5760_v16  ;;  %v5375_v30 = vpop.f32.mrb[49].mxu1 }
0x24c9   :  { %v5376_v31 = vadd.f32 %v5760_v16, %v5375_v30 }
0x24ca   :  { %v5764_v32 = vmul.f32 -1.442695, %v5381_v29 }
0x24cb   :  { %v5763_v33 = vmul.f32 -1.442695, %v5376_v31 }
0x24cc   :  { %6655 = vpow2.f32 %v5764_v32 }
0x24cd   :  { %6657 = vpow2.f32 %v5763_v33  ;;  %v5770_v33 = vld [vmem:[#allocation2] ss:$0 sm:$0xff] }
0x24d6   :  { %v6656_v34 = vpop.eup %6655 }
0x24d7   :  { %v6658_v35 = vpop.eup %6657  ;;  %v5391_v50 = vadd.f32 1.0, %v6656_v34 }
0x24d8   :  { %v5390_v36 = vadd.f32 1.0, %v6658_v35 }
0x24d9   :  { %6659 = vrcp.f32 %v5391_v50 }
0x24da   :  { %6661 = vrcp.f32 %v5390_v36 }
0x24e3   :  { %v6660_v37 = vpop.eup %6659 }
0x24e4   :  { %v6662_v38 = vpop.eup %6661  ;;  %v5397_v40 = vmul.f32 %v6660_v37, %v5381_v29 }
0x24e5   :  { %v5396_v39 = vmul.f32 %v6662_v38, %v5376_v31 }
0x24e7   :  { %6281 = vmatprep.mubr.msk.f32.mxu0 %vm511_vm0, %v5396_v39 }
0x24e8   :  { %6282 = vmatmul.mubr.msk.f32.vlgmr.msra.gmra.mrb[46].mxu0 %vm511_vm0, %v5397_v40 }
0x25bb   :  { %v6283_v41 = vpop.f32.mrb[46].mxu0 }
0x25bc   :  { %v5482_v44 = vadd.f32 %v6283_v41, %v5765_v6  ;;  %v5476_v45 = vpop.f32.mrb[47].mxu0 }
0x25bd   :  { %v5477_v46 = vadd.f32 %v5765_v6, %v5476_v45 }
0x25be   :  { %v5486_v47 = vmul.f32 0.5, %v5482_v44 }
0x25bf   :  { %v5485_v48 = vmul.f32 0.5, %v5477_v46 }
0x25c0   :  { %v5488_v56 = vadd.f32 %v5486_v47, %v8305_v52 }
0x25c1   :  { %v5487_v57 = vadd.f32 %v5485_v48, %v8307_v53 }
0x25c2   :  { %v5492_v58 = vsel %vm511_vm0, %v5488_v56, 0.0 }
0x25c3   :  { %5493 = vadd.xlane.f32.xlu1 %v5492_v58  ;;  %v5489_v59 = vsel %vm511_vm0, %v5487_v57, 0.0 }
0x25c4   :  { %5490 = vadd.xlane.f32.xlu0 %v5489_v59 }
0x2650   :  { %v5494_v60 = vpop.xlane.xlu1 %5493 }
0x2651   :  { %v5496_v42 = vmul.f32 0.03125, %v5494_v60  ;;  %v5491_v3 = vpop.xlane.xlu0 %5490 }
0x2652   :  { %v5495_v4 = vmul.f32 0.03125, %v5491_v3 }
0x2653   :  { %v5498_v61 = vsub.f32 %v5488_v56, %v5496_v42 }
0x2654   :  { %v5497_v62 = vsub.f32 %v5487_v57, %v5495_v4 }
0x2655   :  { %v5500_v43 = vmul.f32 %v5498_v61, %v5498_v61 }
0x2656   :  { %v5499_v63 = vmul.f32 %v5497_v62, %v5497_v62 }
0x2657   :  { %v5504_v54 = vsel %vm511_vm0, %v5500_v43, 0.0 }
0x2658   :  { %5505 = vadd.xlane.f32.xlu1 %v5504_v54  ;;  %v5501_v52 = vsel %vm511_vm0, %v5499_v63, 0.0 }
0x2659   :  { %5502 = vadd.xlane.f32.xlu0 %v5501_v52 }
0x26e5   :  { %v5506_v53 = vpop.xlane.xlu1 %5505 }
0x26e6   :  { %v5508_v0 = vmul.f32 0.03125, %v5506_v53  ;;  %v5503_v1 = vpop.xlane.xlu0 %5502 }
0x26e7   :  { %v5507_v7 = vmul.f32 0.03125, %v5503_v1 }
0x26e8   :  { %v5510_v2 = vadd.f32 1e-05, %v5508_v0 }
0x26e9   :  { %v5509_v5 = vadd.f32 1e-05, %v5507_v7 }
0x26ea   :  { %6663 = vrsqrt.f32 %v5510_v2 }
0x26eb   :  { %6665 = vrsqrt.f32 %v5509_v5 }
0x26f4   :  { %v6664_v8 = vpop.eup %6663 }
0x26f5   :  { %v6666_v10 = vpop.eup %6665  ;;  %v5514_v11 = vmul.f32 %v6664_v8, %v5498_v61 }
0x26f6   :  { %v5513_v49 = vmul.f32 %v6666_v10, %v5497_v62 }
0x26f7   :  { %v5522_v51 = vmul.f32 %v5768_v9, %v5514_v11 }
0x26f8   :  { %v5521_v24 = vmul.f32 %v5768_v9, %v5513_v49 }
0x26f9   :  { %v5530_v55 = vadd.f32 %v5769_v12, %v5522_v51 }
0x26fa   :  { %v5529_v22 = vadd.f32 %v5769_v12, %v5521_v24 }
0x26fb   :  { %v5543_v18 = vmul.f32 %v5531_v20, %v5530_v55 }
0x26fc   :  { %v5533_v23 = vmul.f32 %v5531_v20, %v5529_v22 }
0x26fd   :  { %v5544_v19 = vsel %vm511_vm0, %v5543_v18, 0.0 }
0x26fe   :  { %5545 = vadd.xlane.f32.xlu1 %v5544_v19  ;;  %v5534_v15 = vsel %vm511_vm0, %v5533_v23, 0.0 }
0x26ff   :  { %5535 = vadd.xlane.f32.xlu0 %v5534_v15 }
0x278b   :  { %v5546_v25 = vpop.xlane.xlu1 %5545 }
0x278c   :  { %v5547_v26 = vrot.slane %v5546_v25, 4  ;;  %v5536_v14 = vpop.xlane.xlu0 %5535 }
0x278d   :  { %v5537_v13 = vrot.slane %v5536_v14, 4 }
0x278e   :  { %v5548_v21 = vadd.f32 %v5547_v26, %v5546_v25 }
0x278f   :  { %v5538_v27 = vadd.f32 %v5537_v13, %v5536_v14 }
0x2790   :  { %v5549_v28 = vrot.slane %v5548_v21, 2 }
0x2791   :  { %v5539_v16 = vrot.slane %v5538_v27, 2 }
0x2792   :  { %v5550_v17 = vadd.f32 %v5549_v28, %v5548_v21 }
0x2793   :  { %v5540_v29 = vadd.f32 %v5539_v16, %v5538_v27 }
0x2794   :  { %v5551_v30 = vrot.slane %v5550_v17, 1 }
0x2795   :  { %v5541_v31 = vrot.slane %v5540_v29, 1 }
0x2796   :  { %v5552_v32 = vadd.f32 %v5551_v30, %v5550_v17 }
0x2797   :  { %v5542_v34 = vadd.f32 %v5541_v31, %v5540_v29 }
0x2799   :  { %v5553_v35 = vsel %vm2609_vm5, %v5542_v34, %v5552_v32 }
0x279a   :  { %v5560_v50 = vadd.f32 %v5770_v33, %v5553_v35 }
0x279c   :  { %5562 = vst.msk [vmem:[%s7527_s26] sm:$0x3] %vm5561_vm7, %v5560_v50 }
0x279d   :  { %5567 = vsyncpa [#allocation4], 1 }
0x279e   :  { %5568 = vsyncpa [#allocation6], 1 }
0x279f   :  { %5569 = vsyncpa [#allocation9], 1 }
0x27a0   :  { %5570 = vsyncpa [#allocation12], 1 }
0x27a1   :  { %5571 = vsyncpa [#allocation15], 1 }
0x27a2   :  { %5572 = vsyncpa [#allocation18], 1 }
0x27a3   :  { %5573 = vsyncpa [#allocation21], 1 }
0x27a4   :  { %5574 = vsyncpa [#allocation24], 1 }
0x27a5   :  { %5575 = vsyncpa [#allocation27], 1 }
0x27a6   :  { %5576 = vsyncpa [#allocation30], 1 }
0x27a7   :  { %5577 = vsyncpa [#allocation33], 1 }
0x27a8   :  { %5578 = vsyncpa [#allocation36], 1 }
0x27a9   :  { %5579 = vsyncpa [#allocation39], 1 }
0x27aa   :  { %5580 = vsyncpa [#allocation42], 1 }

</bundles_post_ra>
